<compile_context>
chip_gen: v7x
topology: tpu7x:2x2x1
jax: 0.10.0
libtpu: 0.0.40
codegen_flags: <defaults>
</compile_context>

<pallas_src>
import jax
import jax.numpy as jnp
from jax.experimental import pallas as pl
from jax.experimental.pallas import tpu as pltpu


# ----------------------------------------------------------------------------
# Kernel 1: stem layer-1 conv for both live branches (grid over branch).
# ----------------------------------------------------------------------------
def _stem1_kernel(p_ref, w_ref, o_ref):
    # p_ref: (1, 28, M)  w_ref: (1, 3, 28)  o_ref: (1, 3, M)   (bias = ones row)
    o_ref[0] = jnp.dot(w_ref[0], p_ref[0], preferred_element_type=jnp.float32)


def stem1(patches, w_aug):
    G, K, M = patches.shape
    Cout = w_aug.shape[1]
    return pl.pallas_call(
        _stem1_kernel,
        out_shape=jax.ShapeDtypeStruct((G, Cout, M), jnp.float32),
        grid=(G,),
        in_specs=[pl.BlockSpec((1, K, M), lambda g: (g, 0, 0)),
                  pl.BlockSpec((1, Cout, K), lambda g: (g, 0, 0))],
        out_specs=pl.BlockSpec((1, Cout, M), lambda g: (g, 0, 0)),
        compiler_params=pltpu.CompilerParams(
            dimension_semantics=("parallel",)),
    )(patches, w_aug)


# ----------------------------------------------------------------------------
# Kernel 2: everything after the layer-2 im2col, fully fused.
#   per branch : folded conv2 + 1x1 stub (one dot) + SpatialAttention
#   merge      : adaptive avg-pool / interpolate gating via constant matrices
#   head       : final 1x1 stub -> pixel mean -> be_conv1d(k=5) -> gate -> out
# ----------------------------------------------------------------------------
def _tail_kernel(p2_ref, wc_ref, ws_ref, bsa_ref, bavg_ref, ssel_ref, be_ref,
                 wf_ref, bf_ref, wbe_ref, bbe_ref, wout_ref, bout_ref,
                 o_ref, pad_ref):
    def branch(g):
        # conv2 + MaxViT 1x1 stub folded: (32,28) @ (28,1024)
        y = jnp.dot(wc_ref[g], p2_ref[g], preferred_element_type=jnp.float32)
        # SpatialAttention: sigmoid(W2 W1 (avg+max) + 2(W2 b1 + b2))
        v = (jnp.mean(y, axis=1, keepdims=True) +
             jnp.max(y, axis=1, keepdims=True))                      # (32, 1)
        s = jax.nn.sigmoid(
            jnp.dot(ws_ref[g], v, preferred_element_type=jnp.float32)
            + bsa_ref[g])
        return y * s

    main_y = branch(0)                                               # (32, 1024)
    ptt_y = branch(1)                                                # (32, 1024)

    # AdaptiveAvgPool2d((32,16)) of main (compact l-form, blocks of 16 lanes)
    m4 = jnp.dot(main_y, bavg_ref[...], preferred_element_type=jnp.float32)   # (32,64)
    # F.interpolate(1/16) + rearrange of the ptt gate as a lane selection
    a = jnp.dot(ptt_y, ssel_ref[...], preferred_element_type=jnp.float32)     # (32,64)
    m7 = m4 * (1.0 + a)                                              # main_7 (compact)

    # pixel mean + repeat-8 expansion along L in one constant dot
    t = jnp.dot(m7, be_ref[...], preferred_element_type=jnp.float32)          # (32,32)
    # final MaxViT stub (1x1, linear) commutes with the mean
    out3 = jnp.dot(wf_ref[...], t, preferred_element_type=jnp.float32) + bf_ref[...]

    # be_conv1d(k=5, padding='same'): padded scratch + 5 shifted dots
    pad_ref[...] = jnp.zeros(pad_ref.shape, pad_ref.dtype)
    pad_ref[:, 2:34] = out3
    att = bbe_ref[...]
    for k in range(5):
        att = att + jnp.dot(wbe_ref[k], pad_ref[:, k:k + 32],
                            preferred_element_type=jnp.float32)
    out4 = (1.0 + jax.nn.sigmoid(att)) * out3
    o_ref[...] = jnp.dot(wout_ref[...], out4,
                         preferred_element_type=jnp.float32) + bout_ref[...]


def fused_tail(*args):
    in_specs = [pl.BlockSpec(a.shape, lambda i, _r=a.ndim: (0,) * _r)
                for a in args]
    out = pl.pallas_call(
        _tail_kernel,
        out_shape=jax.ShapeDtypeStruct((1, 32), jnp.float32),
        grid=(1,),
        in_specs=in_specs,
        out_specs=pl.BlockSpec((1, 32), lambda i: (0, 0)),
        scratch_shapes=[pltpu.VMEM((32, 36), jnp.float32)],
    )(*args)
    return out[0]


# ----------------------------------------------------------------------------
# im2col glue (channel-first, reshape-only — no post-stack transpose)
# ----------------------------------------------------------------------------
def im2col_s2(x):
    """x: (Cin, N, H, W) -> (Cin*9, N*OH*OW) for Conv2d(k=3, s=2, p=1)."""
    Cin, N, H, W = x.shape
    OH, OW = (H - 1) // 2 + 1, (W - 1) // 2 + 1
    xp = jnp.pad(x, ((0, 0), (0, 0), (1, 1), (1, 1)))
    taps = []
    for ki in range(3):
        for kj in range(3):
            taps.append(xp[:, :, ki:ki + 2 * (OH - 1) + 1:2,
                              kj:kj + 2 * (OW - 1) + 1:2])   # (Cin, N, OH, OW)
    p = jnp.stack(taps, axis=1)                              # (Cin, 9, N, OH, OW)
    return p.reshape(Cin * 9, N * OH * OW)


def _aug(p):
    """Append a ones row so the conv bias folds into the matmul."""
    return jnp.concatenate([p, jnp.ones((1, p.shape[1]), jnp.float32)], axis=0)


# ----------------------------------------------------------------------------
# TEST.forward
# ----------------------------------------------------------------------------
def test_forward(x, p):
    B, C0, L, H, W = x.shape
    assert B == 1   # torch.squeeze in the reference head requires batch 1

    x0 = x[0]                                        # (3, L, H, W)
    x_main = x0                                      # 'b c l h w -> c (b l) h w'
    x_ptt = jnp.transpose(x0, (0, 2, 1, 3))          # 'b c l h w -> c (b h) l w'
    OH1, OW1 = (H - 1) // 2 + 1, (W - 1) // 2 + 1
    ohp, owp = (L - 1) // 2 + 1, (W - 1) // 2 + 1

    # ---- stem layer 1: one pallas_call for both live branches (bvp dropped) ----
    p1 = jnp.stack([_aug(im2col_s2(x_main)), _aug(im2col_s2(x_ptt))])   # (2,28,4096)
    w1 = jnp.stack([
        jnp.concatenate([p['main_stem_w1'].reshape(3, 27),
                         p['main_stem_b1'][:, None]], axis=1),
        jnp.concatenate([p['ptt_stem_w1'].reshape(3, 27),
                         p['ptt_stem_b1'][:, None]], axis=1)])          # (2,3,28)
    out1 = stem1(p1, w1)                                                # (2,3,4096)

    # ---- stem layer 2 im2col (tiny XLA glue) ----
    y_main = out1[0].reshape(3, L, OH1, OW1)
    y_ptt = out1[1].reshape(3, H, ohp, owp)
    p2 = jnp.stack([_aug(im2col_s2(y_main)), _aug(im2col_s2(y_ptt))])   # (2,28,1024)

    # ---- fold conv2 + MaxViT 1x1 stub into one (32,28) weight per branch ----
    # TODO(synk): MaxViT_layer's definition is not in the reference source; this
    # stand-in is a deterministic 1x1 channel projection (dim_in -> 32), not
    # MBConv / block-grid attention.
    def fold_stub(w2, b2, wmv, bmv):
        w = jnp.dot(wmv, w2.reshape(3, 27))
        b = jnp.dot(wmv, b2[:, None]) + bmv[:, None]
        return jnp.concatenate([w, b], axis=1)                          # (32,28)
    wc = jnp.stack([fold_stub(p['main_stem_w2'], p['main_stem_b2'],
                              p['main_mv_w'], p['main_mv_b']),
                    fold_stub(p['ptt_stem_w2'], p['ptt_stem_b2'],
                              p['ptt_mv_w'], p['ptt_mv_b'])])

    # ---- fold SA MLP: mlp(avg)+mlp(max) = W2 W1 (avg+max) + 2(W2 b1 + b2) ----
    def fold_sa(sa):
        w1_, b1_, w2_, b2_ = sa
        return jnp.dot(w2_, w1_), 2.0 * (jnp.dot(w2_, b1_[:, None]) + b2_[:, None])
    ws_m, bs_m = fold_sa(p['sa_main'])
    ws_p, bs_p = fold_sa(p['sa_bvp'])    # reference applies sa_bvp to the ptt branch
    ws = jnp.stack([ws_m, ws_p])
    bsa = jnp.stack([bs_m, bs_p])

    # ---- constant pooling / gating / expansion matrices (lane-dense dots) ----
    lane = jnp.arange(1024)
    m = jnp.arange(64)
    # AdaptiveAvgPool2d((32,16)) columns: mean over blocks of 16 lanes
    bavg = (lane[:, None] // 16 == m[None, :]).astype(jnp.float32) / 16.0      # (1024,64)
    # att_up[c, l, w, h] = ptt_y[c, 256*h + 4*l + w]   (interpolate 1/16 + rearrange)
    p_of_m = 256 * (m % 4) + 4 * (m // 16) + (m % 16) // 4
    ssel = (lane[:, None] == p_of_m[None, :]).astype(jnp.float32)              # (1024,64)
    # pixel mean over 16 + repeat-8 expansion of l (4 -> 32)
    be = ((m[:, None] // 16) == (jnp.arange(32)[None, :] // 8)
          ).astype(jnp.float32) / 16.0                                         # (64,32)

    wbe = jnp.transpose(p['be_w'], (2, 0, 1))                                  # (5,32,32)

    out = fused_tail(p2, wc, ws, bsa, bavg, ssel, be,
                     p['final_mv_w'], p['final_mv_b'][:, None],
                     wbe, p['be_b'][:, None],
                     p['out_w'].reshape(1, 32), p['out_b'].reshape(1, 1))
    return out                                                                 # (32,)


# ----------------------------------------------------------------------------
# Deterministic parameter init (shapes follow TEST.__init__)
# ----------------------------------------------------------------------------
def init_params(key):
    keys = iter(jax.random.split(key, 64))

    def nrm(shape, scale=0.1):
        return jax.random.normal(next(keys), shape, jnp.float32) * scale

    p = {}
    for br in ('main', 'ptt', 'bvp'):
        p[f'{br}_stem_w1'] = nrm((3, 3, 3, 3)); p[f'{br}_stem_b1'] = nrm((3,))
        p[f'{br}_stem_w2'] = nrm((3, 3, 3, 3)); p[f'{br}_stem_b2'] = nrm((3,))
        p[f'{br}_mv_w'] = nrm((32, 3)); p[f'{br}_mv_b'] = nrm((32,))
    # NOTE: reference declares layer_dim_in=1 for the final MaxViT yet feeds it a
    # 32-channel tensor; the stub projects from the actual 32 channels.
    p['final_mv_w'] = nrm((32, 32)); p['final_mv_b'] = nrm((32,))

    # SpatialAttention() is called with no args in the reference (would error);
    # instantiated here with in_channels=32, reduction_ratio=8.
    def sa_params():
        return (nrm((4, 32)), nrm((4,)), nrm((32, 4)), nrm((32,)))
    p['sa_main'] = sa_params()
    p['sa_bvp'] = sa_params()
    p['sa_ptt'] = sa_params()   # defined but never used, as in the reference

    p['be_w'] = nrm((32, 32, 5)); p['be_b'] = nrm((32,))        # Conv1d(32,32,k=5,'same')
    p['out_w'] = nrm((1, 32, 1)); p['out_b'] = nrm((1,))        # Conv1d(32,1,k=1)
    return p


if __name__ == "__main__":
    key = jax.random.PRNGKey(0)
    pkey, xkey = jax.random.split(key)
    params = init_params(pkey)
    # Shapes required by the hard-coded rearranges / interpolations:
    # L*? -> need L*H == L*W = 256-pixel post-stem maps and H // 16 == 4  ->  L=4, H=W=64.
    B, C, L, H, W = 1, 3, 4, 64, 64
    x = jax.random.normal(xkey, (B, C, L, H, W), jnp.float32)
    out = jax.jit(test_forward)(x, params)
    out = jax.block_until_ready(out)
    assert out.shape == (32,) and bool(jnp.all(jnp.isfinite(out)))
    print("KERNEL_OK")
</pallas_src>

<mosaic_0001>
module attributes {stable_mosaic.version = 11 : i64} {
  func.func @_stem1_kernel(%arg0: i32, %arg1: memref<1x28x4096xf32, #tpu.memory_space<vmem>>, %arg2: memref<1x3x28xf32, #tpu.memory_space<vmem>>, %arg3: memref<1x3x4096xf32, #tpu.memory_space<vmem>>) attributes {dimension_semantics = [#tpu.dimension_semantics<parallel>], iteration_bounds = array<i64: 2>, scalar_prefetch = 0 : i64, scratch_operands = 0 : i64, tpu.core_type = #tpu.core_type<tc>, window_params = [{transform_indices = @transform_0, window_bounds = array<i64: 1, 28, 4096>}, {transform_indices = @transform_1, window_bounds = array<i64: 1, 3, 28>}, {transform_indices = @transform_2, window_bounds = array<i64: 1, 3, 4096>}]} {
    %c0 = arith.constant 0 : index
    %c0_0 = arith.constant 0 : index
    %c0_1 = arith.constant 0 : index
    %0 = vector.load %arg2[%c0, %c0_0, %c0_1] : memref<1x3x28xf32, #tpu.memory_space<vmem>>, vector<1x3x28xf32>
    %1 = vector.shape_cast %0 : vector<1x3x28xf32> to vector<3x28xf32>
    %c0_2 = arith.constant 0 : index
    %c0_3 = arith.constant 0 : index
    %c0_4 = arith.constant 0 : index
    %2 = vector.load %arg1[%c0_2, %c0_3, %c0_4] : memref<1x28x4096xf32, #tpu.memory_space<vmem>>, vector<1x28x4096xf32>
    %3 = vector.shape_cast %2 : vector<1x28x4096xf32> to vector<28x4096xf32>
    %cst = arith.constant dense<0.000000e+00> : vector<3x4096xf32>
    %4 = tpu.matmul %1, %3, %cst {dimension_numbers = #tpu.dot_dimension_numbers<[1], [0], [0], [1], [0, 0, 1, 1], [], []>} : vector<3x28xf32>, vector<28x4096xf32>, vector<3x4096xf32> -> vector<3x4096xf32>
    %c0_5 = arith.constant 0 : index
    %c0_6 = arith.constant 0 : index
    %c0_7 = arith.constant 0 : index
    %5 = vector.load %arg3[%c0_5, %c0_6, %c0_7] : memref<1x3x4096xf32, #tpu.memory_space<vmem>>, vector<1x3x4096xf32>
    %6 = vector.shape_cast %5 : vector<1x3x4096xf32> to vector<3x4096xf32>
    %7 = vector.shape_cast %4 : vector<3x4096xf32> to vector<1x3x4096xf32>
    tpu.vector_store %arg3[%c0_5, %c0_6, %c0_7], %7 {strides = array<i32>} : memref<1x3x4096xf32, #tpu.memory_space<vmem>>, vector<1x3x4096xf32>,
    return
  }
  func.func @transform_0(%arg0: i32) -> (i32, i32, i32) {
    %c0_i32 = arith.constant 0 : i32
    %c0_i32_0 = arith.constant 0 : i32
    %c0_i32_1 = arith.constant 0 : i32
    return %arg0, %c0_i32, %c0_i32_0 : i32, i32, i32
  }
  func.func @transform_1(%arg0: i32) -> (i32, i32, i32) {
    %c0_i32 = arith.constant 0 : i32
    %c0_i32_0 = arith.constant 0 : i32
    %c0_i32_1 = arith.constant 0 : i32
    return %arg0, %c0_i32, %c0_i32_0 : i32, i32, i32
  }
  func.func @transform_2(%arg0: i32) -> (i32, i32, i32) {
    %c0_i32 = arith.constant 0 : i32
    %c0_i32_0 = arith.constant 0 : i32
    %c0_i32_1 = arith.constant 0 : i32
    return %arg0, %c0_i32, %c0_i32_0 : i32, i32, i32
  }
}

module attributes {stable_mosaic.version = 11 : i64} {
  func.func @_tail_kernel(%arg0: i32, %arg1: memref<2x28x1024xf32, #tpu.memory_space<vmem>>, %arg2: memref<2x32x28xf32, #tpu.memory_space<vmem>>, %arg3: memref<2x32x32xf32, #tpu.memory_space<vmem>>, %arg4: memref<2x32x1xf32, #tpu.memory_space<vmem>>, %arg5: memref<1024x64xf32, #tpu.memory_space<vmem>>, %arg6: memref<1024x64xf32, #tpu.memory_space<vmem>>, %arg7: memref<64x32xf32, #tpu.memory_space<vmem>>, %arg8: memref<32x32xf32, #tpu.memory_space<vmem>>, %arg9: memref<32x1xf32, #tpu.memory_space<vmem>>, %arg10: memref<5x32x32xf32, #tpu.memory_space<vmem>>, %arg11: memref<32x1xf32, #tpu.memory_space<vmem>>, %arg12: memref<1x32xf32, #tpu.memory_space<vmem>>, %arg13: memref<1x1xf32, #tpu.memory_space<vmem>>, %arg14: memref<1x32xf32, #tpu.memory_space<vmem>>, %arg15: memref<32x36xf32, #tpu.memory_space<vmem>>) attributes {dimension_semantics = [#tpu.dimension_semantics<arbitrary>], iteration_bounds = array<i64: 1>, scalar_prefetch = 0 : i64, scratch_operands = 1 : i64, tpu.core_type = #tpu.core_type<tc>, window_params = [{pipeline_mode = #tpu.pipeline_mode<synchronous>, transform_indices = @transform_0, window_bounds = array<i64: 2, 28, 1024>}, {pipeline_mode = #tpu.pipeline_mode<synchronous>, transform_indices = @transform_1, window_bounds = array<i64: 2, 32, 28>}, {pipeline_mode = #tpu.pipeline_mode<synchronous>, transform_indices = @transform_2, window_bounds = array<i64: 2, 32, 32>}, {pipeline_mode = #tpu.pipeline_mode<synchronous>, transform_indices = @transform_3, window_bounds = array<i64: 2, 32, 1>}, {pipeline_mode = #tpu.pipeline_mode<synchronous>, transform_indices = @transform_4, window_bounds = array<i64: 1024, 64>}, {pipeline_mode = #tpu.pipeline_mode<synchronous>, transform_indices = @transform_5, window_bounds = array<i64: 1024, 64>}, {pipeline_mode = #tpu.pipeline_mode<synchronous>, transform_indices = @transform_6, window_bounds = array<i64: 64, 32>}, {pipeline_mode = #tpu.pipeline_mode<synchronous>, transform_indices = @transform_7, window_bounds = array<i64: 32, 32>}, {pipeline_mode = #tpu.pipeline_mode<synchronous>, transform_indices = @transform_8, window_bounds = array<i64: 32, 1>}, {pipeline_mode = #tpu.pipeline_mode<synchronous>, transform_indices = @transform_9, window_bounds = array<i64: 5, 32, 32>}, {pipeline_mode = #tpu.pipeline_mode<synchronous>, transform_indices = @transform_10, window_bounds = array<i64: 32, 1>}, {pipeline_mode = #tpu.pipeline_mode<synchronous>, transform_indices = @transform_11, window_bounds = array<i64: 1, 32>}, {pipeline_mode = #tpu.pipeline_mode<synchronous>, transform_indices = @transform_12, window_bounds = array<i64: 1, 1>}, {pipeline_mode = #tpu.pipeline_mode<synchronous>, transform_indices = @transform_13, window_bounds = array<i64: 1, 32>}]} {
    %c0 = arith.constant 0 : index
    %c0_0 = arith.constant 0 : index
    %c0_1 = arith.constant 0 : index
    %0 = vector.load %arg2[%c0, %c0_0, %c0_1] : memref<2x32x28xf32, #tpu.memory_space<vmem>>, vector<1x32x28xf32>
    %1 = vector.shape_cast %0 : vector<1x32x28xf32> to vector<32x28xf32>
    %c0_2 = arith.constant 0 : index
    %c0_3 = arith.constant 0 : index
    %c0_4 = arith.constant 0 : index
    %2 = vector.load %arg1[%c0_2, %c0_3, %c0_4] : memref<2x28x1024xf32, #tpu.memory_space<vmem>>, vector<1x28x1024xf32>
    %3 = vector.shape_cast %2 : vector<1x28x1024xf32> to vector<28x1024xf32>
    %cst = arith.constant dense<0.000000e+00> : vector<32x1024xf32>
    %4 = tpu.matmul %1, %3, %cst {dimension_numbers = #tpu.dot_dimension_numbers<[1], [0], [0], [1], [0, 0, 1, 1], [], []>} : vector<32x28xf32>, vector<28x1024xf32>, vector<32x1024xf32> -> vector<32x1024xf32>
    %cst_5 = arith.constant dense<0.000000e+00> : vector<32xf32>
    %5 = vector.multi_reduction <add>, %4, %cst_5 [1] : vector<32x1024xf32> to vector<32xf32>
    %6 = vector.shape_cast %5 : vector<32xf32> to vector<32x1xf32>
    %cst_6 = arith.constant 1.024000e+03 : f32
    %7 = vector.broadcast %cst_6 : f32 to vector<32x1xf32>
    %8 = arith.divf %6, %7 : vector<32x1xf32>
    %cst_7 = arith.constant dense<0xFF800000> : vector<32xf32>
    %9 = vector.multi_reduction <maximumf>, %4, %cst_7 [1] : vector<32x1024xf32> to vector<32xf32>
    %10 = vector.shape_cast %9 : vector<32xf32> to vector<32x1xf32>
    %11 = arith.addf %8, %10 : vector<32x1xf32>
    %c0_8 = arith.constant 0 : index
    %c0_9 = arith.constant 0 : index
    %c0_10 = arith.constant 0 : index
    %12 = vector.load %arg3[%c0_8, %c0_9, %c0_10] : memref<2x32x32xf32, #tpu.memory_space<vmem>>, vector<1x32x32xf32>
    %13 = vector.shape_cast %12 : vector<1x32x32xf32> to vector<32x32xf32>
    %cst_11 = arith.constant dense<0.000000e+00> : vector<32x1xf32>
    %14 = tpu.matmul %13, %11, %cst_11 {dimension_numbers = #tpu.dot_dimension_numbers<[1], [0], [0], [1], [0, 0, 1, 1], [], []>} : vector<32x32xf32>, vector<32x1xf32>, vector<32x1xf32> -> vector<32x1xf32>
    %c0_12 = arith.constant 0 : index
    %c0_13 = arith.constant 0 : index
    %c0_14 = arith.constant 0 : index
    %15 = vector.load %arg4[%c0_12, %c0_13, %c0_14] : memref<2x32x1xf32, #tpu.memory_space<vmem>>, vector<1x32x1xf32>
    %16 = vector.shape_cast %15 : vector<1x32x1xf32> to vector<32x1xf32>
    %17 = arith.addf %14, %16 : vector<32x1xf32>
    %18 = arith.negf %17 : vector<32x1xf32>
    %19 = math.exp %18 : vector<32x1xf32>
    %cst_15 = arith.constant 1.000000e+00 : f32
    %20 = vector.broadcast %cst_15 : f32 to vector<32x1xf32>
    %21 = arith.addf %20, %19 : vector<32x1xf32>
    %22 = arith.divf %20, %21 : vector<32x1xf32>
    %23 = vector.broadcast %22 : vector<32x1xf32> to vector<32x1024xf32>
    %24 = arith.mulf %4, %23 : vector<32x1024xf32>
    %c1 = arith.constant 1 : index
    %c0_16 = arith.constant 0 : index
    %c0_17 = arith.constant 0 : index
    %25 = vector.load %arg2[%c1, %c0_16, %c0_17] : memref<2x32x28xf32, #tpu.memory_space<vmem>>, vector<1x32x28xf32>
    %26 = vector.shape_cast %25 : vector<1x32x28xf32> to vector<32x28xf32>
    %c1_18 = arith.constant 1 : index
    %c0_19 = arith.constant 0 : index
    %c0_20 = arith.constant 0 : index
    %27 = vector.load %arg1[%c1_18, %c0_19, %c0_20] : memref<2x28x1024xf32, #tpu.memory_space<vmem>>, vector<1x28x1024xf32>
    %28 = vector.shape_cast %27 : vector<1x28x1024xf32> to vector<28x1024xf32>
    %cst_21 = arith.constant dense<0.000000e+00> : vector<32x1024xf32>
    %29 = tpu.matmul %26, %28, %cst_21 {dimension_numbers = #tpu.dot_dimension_numbers<[1], [0], [0], [1], [0, 0, 1, 1], [], []>} : vector<32x28xf32>, vector<28x1024xf32>, vector<32x1024xf32> -> vector<32x1024xf32>
    %cst_22 = arith.constant dense<0.000000e+00> : vector<32xf32>
    %30 = vector.multi_reduction <add>, %29, %cst_22 [1] : vector<32x1024xf32> to vector<32xf32>
    %31 = vector.shape_cast %30 : vector<32xf32> to vector<32x1xf32>
    %cst_23 = arith.constant 1.024000e+03 : f32
    %32 = vector.broadcast %cst_23 : f32 to vector<32x1xf32>
    %33 = arith.divf %31, %32 : vector<32x1xf32>
    %cst_24 = arith.constant dense<0xFF800000> : vector<32xf32>
    %34 = vector.multi_reduction <maximumf>, %29, %cst_24 [1] : vector<32x1024xf32> to vector<32xf32>
    %35 = vector.shape_cast %34 : vector<32xf32> to vector<32x1xf32>
    %36 = arith.addf %33, %35 : vector<32x1xf32>
    %c1_25 = arith.constant 1 : index
    %c0_26 = arith.constant 0 : index
    %c0_27 = arith.constant 0 : index
    %37 = vector.load %arg3[%c1_25, %c0_26, %c0_27] : memref<2x32x32xf32, #tpu.memory_space<vmem>>, vector<1x32x32xf32>
    %38 = vector.shape_cast %37 : vector<1x32x32xf32> to vector<32x32xf32>
    %cst_28 = arith.constant dense<0.000000e+00> : vector<32x1xf32>
    %39 = tpu.matmul %38, %36, %cst_28 {dimension_numbers = #tpu.dot_dimension_numbers<[1], [0], [0], [1], [0, 0, 1, 1], [], []>} : vector<32x32xf32>, vector<32x1xf32>, vector<32x1xf32> -> vector<32x1xf32>
    %c1_29 = arith.constant 1 : index
    %c0_30 = arith.constant 0 : index
    %c0_31 = arith.constant 0 : index
    %40 = vector.load %arg4[%c1_29, %c0_30, %c0_31] : memref<2x32x1xf32, #tpu.memory_space<vmem>>, vector<1x32x1xf32>
    %41 = vector.shape_cast %40 : vector<1x32x1xf32> to vector<32x1xf32>
    %42 = arith.addf %39, %41 : vector<32x1xf32>
    %43 = arith.negf %42 : vector<32x1xf32>
    %44 = math.exp %43 : vector<32x1xf32>
    %cst_32 = arith.constant 1.000000e+00 : f32
    %45 = vector.broadcast %cst_32 : f32 to vector<32x1xf32>
    %46 = arith.addf %45, %44 : vector<32x1xf32>
    %47 = arith.divf %45, %46 : vector<32x1xf32>
    %48 = vector.broadcast %47 : vector<32x1xf32> to vector<32x1024xf32>
    %49 = arith.mulf %29, %48 : vector<32x1024xf32>
    %c0_33 = arith.constant 0 : index
    %c0_34 = arith.constant 0 : index
    %50 = vector.load %arg5[%c0_33, %c0_34] : memref<1024x64xf32, #tpu.memory_space<vmem>>, vector<1024x64xf32>
    %cst_35 = arith.constant dense<0.000000e+00> : vector<32x64xf32>
    %51 = tpu.matmul %24, %50, %cst_35 {dimension_numbers = #tpu.dot_dimension_numbers<[1], [0], [0], [1], [0, 0, 1, 1], [], []>} : vector<32x1024xf32>, vector<1024x64xf32>, vector<32x64xf32> -> vector<32x64xf32>
    %c0_36 = arith.constant 0 : index
    %c0_37 = arith.constant 0 : index
    %52 = vector.load %arg6[%c0_36, %c0_37] : memref<1024x64xf32, #tpu.memory_space<vmem>>, vector<1024x64xf32>
    %cst_38 = arith.constant dense<0.000000e+00> : vector<32x64xf32>
    %53 = tpu.matmul %49, %52, %cst_38 {dimension_numbers = #tpu.dot_dimension_numbers<[1], [0], [0], [1], [0, 0, 1, 1], [], []>} : vector<32x1024xf32>, vector<1024x64xf32>, vector<32x64xf32> -> vector<32x64xf32>
    %cst_39 = arith.constant 1.000000e+00 : f32
    %54 = vector.broadcast %cst_39 : f32 to vector<32x64xf32>
    %55 = arith.addf %54, %53 : vector<32x64xf32>
    %56 = arith.mulf %51, %55 : vector<32x64xf32>
    %c0_40 = arith.constant 0 : index
    %c0_41 = arith.constant 0 : index
    %57 = vector.load %arg7[%c0_40, %c0_41] : memref<64x32xf32, #tpu.memory_space<vmem>>, vector<64x32xf32>
    %cst_42 = arith.constant dense<0.000000e+00> : vector<32x32xf32>
    %58 = tpu.matmul %56, %57, %cst_42 {dimension_numbers = #tpu.dot_dimension_numbers<[1], [0], [0], [1], [0, 0, 1, 1], [], []>} : vector<32x64xf32>, vector<64x32xf32>, vector<32x32xf32> -> vector<32x32xf32>
    %c0_43 = arith.constant 0 : index
    %c0_44 = arith.constant 0 : index
    %59 = vector.load %arg8[%c0_43, %c0_44] : memref<32x32xf32, #tpu.memory_space<vmem>>, vector<32x32xf32>
    %cst_45 = arith.constant dense<0.000000e+00> : vector<32x32xf32>
    %60 = tpu.matmul %59, %58, %cst_45 {dimension_numbers = #tpu.dot_dimension_numbers<[1], [0], [0], [1], [0, 0, 1, 1], [], []>} : vector<32x32xf32>, vector<32x32xf32>, vector<32x32xf32> -> vector<32x32xf32>
    %c0_46 = arith.constant 0 : index
    %c0_47 = arith.constant 0 : index
    %61 = vector.load %arg9[%c0_46, %c0_47] : memref<32x1xf32, #tpu.memory_space<vmem>>, vector<32x1xf32>
    %62 = vector.broadcast %61 : vector<32x1xf32> to vector<32x32xf32>
    %63 = arith.addf %60, %62 : vector<32x32xf32>
    %cst_48 = arith.constant 0.000000e+00 : f32
    %64 = vector.broadcast %cst_48 : f32 to vector<32x36xf32>
    %c0_49 = arith.constant 0 : index
    %c0_50 = arith.constant 0 : index
    %65 = vector.load %arg15[%c0_49, %c0_50] : memref<32x36xf32, #tpu.memory_space<vmem>>, vector<32x36xf32>
    tpu.vector_store %arg15[%c0_49, %c0_50], %64 {strides = array<i32>} : memref<32x36xf32, #tpu.memory_space<vmem>>, vector<32x36xf32>,
    %c0_51 = arith.constant 0 : index
    %c2 = arith.constant 2 : index
    %66 = vector.load %arg15[%c0_51, %c2] : memref<32x36xf32, #tpu.memory_space<vmem>>, vector<32x32xf32>
    tpu.vector_store %arg15[%c0_51, %c2], %63 {strides = array<i32>} : memref<32x36xf32, #tpu.memory_space<vmem>>, vector<32x32xf32>,
    %c0_52 = arith.constant 0 : index
    %c0_53 = arith.constant 0 : index
    %67 = vector.load %arg11[%c0_52, %c0_53] : memref<32x1xf32, #tpu.memory_space<vmem>>, vector<32x1xf32>
    %c0_54 = arith.constant 0 : index
    %c0_55 = arith.constant 0 : index
    %c0_56 = arith.constant 0 : index
    %68 = vector.load %arg10[%c0_54, %c0_55, %c0_56] : memref<5x32x32xf32, #tpu.memory_space<vmem>>, vector<1x32x32xf32>
    %69 = vector.shape_cast %68 : vector<1x32x32xf32> to vector<32x32xf32>
    %c0_57 = arith.constant 0 : index
    %c0_58 = arith.constant 0 : index
    %70 = vector.load %arg15[%c0_57, %c0_58] : memref<32x36xf32, #tpu.memory_space<vmem>>, vector<32x32xf32>
    %cst_59 = arith.constant dense<0.000000e+00> : vector<32x32xf32>
    %71 = tpu.matmul %69, %70, %cst_59 {dimension_numbers = #tpu.dot_dimension_numbers<[1], [0], [0], [1], [0, 0, 1, 1], [], []>} : vector<32x32xf32>, vector<32x32xf32>, vector<32x32xf32> -> vector<32x32xf32>
    %72 = vector.broadcast %67 : vector<32x1xf32> to vector<32x32xf32>
    %73 = arith.addf %72, %71 : vector<32x32xf32>
    %c1_60 = arith.constant 1 : index
    %c0_61 = arith.constant 0 : index
    %c0_62 = arith.constant 0 : index
    %74 = vector.load %arg10[%c1_60, %c0_61, %c0_62] : memref<5x32x32xf32, #tpu.memory_space<vmem>>, vector<1x32x32xf32>
    %75 = vector.shape_cast %74 : vector<1x32x32xf32> to vector<32x32xf32>
    %c0_63 = arith.constant 0 : index
    %c1_64 = arith.constant 1 : index
    %76 = vector.load %arg15[%c0_63, %c1_64] : memref<32x36xf32, #tpu.memory_space<vmem>>, vector<32x32xf32>
    %cst_65 = arith.constant dense<0.000000e+00> : vector<32x32xf32>
    %77 = tpu.matmul %75, %76, %cst_65 {dimension_numbers = #tpu.dot_dimension_numbers<[1], [0], [0], [1], [0, 0, 1, 1], [], []>} : vector<32x32xf32>, vector<32x32xf32>, vector<32x32xf32> -> vector<32x32xf32>
    %78 = arith.addf %73, %77 : vector<32x32xf32>
    %c2_66 = arith.constant 2 : index
    %c0_67 = arith.constant 0 : index
    %c0_68 = arith.constant 0 : index
    %79 = vector.load %arg10[%c2_66, %c0_67, %c0_68] : memref<5x32x32xf32, #tpu.memory_space<vmem>>, vector<1x32x32xf32>
    %80 = vector.shape_cast %79 : vector<1x32x32xf32> to vector<32x32xf32>
    %c0_69 = arith.constant 0 : index
    %c2_70 = arith.constant 2 : index
    %81 = vector.load %arg15[%c0_69, %c2_70] : memref<32x36xf32, #tpu.memory_space<vmem>>, vector<32x32xf32>
    %cst_71 = arith.constant dense<0.000000e+00> : vector<32x32xf32>
    %82 = tpu.matmul %80, %81, %cst_71 {dimension_numbers = #tpu.dot_dimension_numbers<[1], [0], [0], [1], [0, 0, 1, 1], [], []>} : vector<32x32xf32>, vector<32x32xf32>, vector<32x32xf32> -> vector<32x32xf32>
    %83 = arith.addf %78, %82 : vector<32x32xf32>
    %c3 = arith.constant 3 : index
    %c0_72 = arith.constant 0 : index
    %c0_73 = arith.constant 0 : index
    %84 = vector.load %arg10[%c3, %c0_72, %c0_73] : memref<5x32x32xf32, #tpu.memory_space<vmem>>, vector<1x32x32xf32>
    %85 = vector.shape_cast %84 : vector<1x32x32xf32> to vector<32x32xf32>
    %c0_74 = arith.constant 0 : index
    %c3_75 = arith.constant 3 : index
    %86 = vector.load %arg15[%c0_74, %c3_75] : memref<32x36xf32, #tpu.memory_space<vmem>>, vector<32x32xf32>
    %cst_76 = arith.constant dense<0.000000e+00> : vector<32x32xf32>
    %87 = tpu.matmul %85, %86, %cst_76 {dimension_numbers = #tpu.dot_dimension_numbers<[1], [0], [0], [1], [0, 0, 1, 1], [], []>} : vector<32x32xf32>, vector<32x32xf32>, vector<32x32xf32> -> vector<32x32xf32>
    %88 = arith.addf %83, %87 : vector<32x32xf32>
    %c4 = arith.constant 4 : index
    %c0_77 = arith.constant 0 : index
    %c0_78 = arith.constant 0 : index
    %89 = vector.load %arg10[%c4, %c0_77, %c0_78] : memref<5x32x32xf32, #tpu.memory_space<vmem>>, vector<1x32x32xf32>
    %90 = vector.shape_cast %89 : vector<1x32x32xf32> to vector<32x32xf32>
    %c0_79 = arith.constant 0 : index
    %c4_80 = arith.constant 4 : index
    %91 = vector.load %arg15[%c0_79, %c4_80] : memref<32x36xf32, #tpu.memory_space<vmem>>, vector<32x32xf32>
    %cst_81 = arith.constant dense<0.000000e+00> : vector<32x32xf32>
    %92 = tpu.matmul %90, %91, %cst_81 {dimension_numbers = #tpu.dot_dimension_numbers<[1], [0], [0], [1], [0, 0, 1, 1], [], []>} : vector<32x32xf32>, vector<32x32xf32>, vector<32x32xf32> -> vector<32x32xf32>
    %93 = arith.addf %88, %92 : vector<32x32xf32>
    %94 = arith.negf %93 : vector<32x32xf32>
    %95 = math.exp %94 : vector<32x32xf32>
    %cst_82 = arith.constant 1.000000e+00 : f32
    %96 = vector.broadcast %cst_82 : f32 to vector<32x32xf32>
    %97 = arith.addf %96, %95 : vector<32x32xf32>
    %98 = arith.divf %96, %97 : vector<32x32xf32>
    %cst_83 = arith.constant 1.000000e+00 : f32
    %99 = vector.broadcast %cst_83 : f32 to vector<32x32xf32>
    %100 = arith.addf %99, %98 : vector<32x32xf32>
    %101 = arith.mulf %100, %63 : vector<32x32xf32>
    %c0_84 = arith.constant 0 : index
    %c0_85 = arith.constant 0 : index
    %102 = vector.load %arg12[%c0_84, %c0_85] : memref<1x32xf32, #tpu.memory_space<vmem>>, vector<1x32xf32>
    %cst_86 = arith.constant dense<0.000000e+00> : vector<1x32xf32>
    %103 = tpu.matmul %102, %101, %cst_86 {dimension_numbers = #tpu.dot_dimension_numbers<[1], [0], [0], [1], [0, 0, 1, 1], [], []>} : vector<1x32xf32>, vector<32x32xf32>, vector<1x32xf32> -> vector<1x32xf32>
    %c0_87 = arith.constant 0 : index
    %c0_88 = arith.constant 0 : index
    %104 = vector.load %arg13[%c0_87, %c0_88] : memref<1x1xf32, #tpu.memory_space<vmem>>, vector<1x1xf32>
    %105 = vector.broadcast %104 : vector<1x1xf32> to vector<1x32xf32>
    %106 = arith.addf %103, %105 : vector<1x32xf32>
    %c0_89 = arith.constant 0 : index
    %c0_90 = arith.constant 0 : index
    %107 = vector.load %arg14[%c0_89, %c0_90] : memref<1x32xf32, #tpu.memory_space<vmem>>, vector<1x32xf32>
    tpu.vector_store %arg14[%c0_89, %c0_90], %106 {strides = array<i32>} : memref<1x32xf32, #tpu.memory_space<vmem>>, vector<1x32xf32>,
    return
  }
  func.func @transform_0(%arg0: i32) -> (i32, i32, i32) {
    %c0_i32 = arith.constant 0 : i32
    %c0_i32_0 = arith.constant 0 : i32
    %c0_i32_1 = arith.constant 0 : i32
    %c0_i32_2 = arith.constant 0 : i32
    return %c0_i32, %c0_i32_0, %c0_i32_1 : i32, i32, i32
  }
  func.func @transform_1(%arg0: i32) -> (i32, i32, i32) {
    %c0_i32 = arith.constant 0 : i32
    %c0_i32_0 = arith.constant 0 : i32
    %c0_i32_1 = arith.constant 0 : i32
    %c0_i32_2 = arith.constant 0 : i32
    return %c0_i32, %c0_i32_0, %c0_i32_1 : i32, i32, i32
  }
  func.func @transform_2(%arg0: i32) -> (i32, i32, i32) {
    %c0_i32 = arith.constant 0 : i32
    %c0_i32_0 = arith.constant 0 : i32
    %c0_i32_1 = arith.constant 0 : i32
    %c0_i32_2 = arith.constant 0 : i32
    return %c0_i32, %c0_i32_0, %c0_i32_1 : i32, i32, i32
  }
  func.func @transform_3(%arg0: i32) -> (i32, i32, i32) {
    %c0_i32 = arith.constant 0 : i32
    %c0_i32_0 = arith.constant 0 : i32
    %c0_i32_1 = arith.constant 0 : i32
    %c0_i32_2 = arith.constant 0 : i32
    return %c0_i32, %c0_i32_0, %c0_i32_1 : i32, i32, i32
  }
  func.func @transform_4(%arg0: i32) -> (i32, i32) {
    %c0_i32 = arith.constant 0 : i32
    %c0_i32_0 = arith.constant 0 : i32
    %c0_i32_1 = arith.constant 0 : i32
    return %c0_i32, %c0_i32_0 : i32, i32
  }
  func.func @transform_5(%arg0: i32) -> (i32, i32) {
    %c0_i32 = arith.constant 0 : i32
    %c0_i32_0 = arith.constant 0 : i32
    %c0_i32_1 = arith.constant 0 : i32
    return %c0_i32, %c0_i32_0 : i32, i32
  }
  func.func @transform_6(%arg0: i32) -> (i32, i32) {
    %c0_i32 = arith.constant 0 : i32
    %c0_i32_0 = arith.constant 0 : i32
    %c0_i32_1 = arith.constant 0 : i32
    return %c0_i32, %c0_i32_0 : i32, i32
  }
  func.func @transform_7(%arg0: i32) -> (i32, i32) {
    %c0_i32 = arith.constant 0 : i32
    %c0_i32_0 = arith.constant 0 : i32
    %c0_i32_1 = arith.constant 0 : i32
    return %c0_i32, %c0_i32_0 : i32, i32
  }
  func.func @transform_8(%arg0: i32) -> (i32, i32) {
    %c0_i32 = arith.constant 0 : i32
    %c0_i32_0 = arith.constant 0 : i32
    %c0_i32_1 = arith.constant 0 : i32
    return %c0_i32, %c0_i32_0 : i32, i32
  }
  func.func @transform_9(%arg0: i32) -> (i32, i32, i32) {
    %c0_i32 = arith.constant 0 : i32
    %c0_i32_0 = arith.constant 0 : i32
    %c0_i32_1 = arith.constant 0 : i32
    %c0_i32_2 = arith.constant 0 : i32
    return %c0_i32, %c0_i32_0, %c0_i32_1 : i32, i32, i32
  }
  func.func @transform_10(%arg0: i32) -> (i32, i32) {
    %c0_i32 = arith.constant 0 : i32
    %c0_i32_0 = arith.constant 0 : i32
    %c0_i32_1 = arith.constant 0 : i32
    return %c0_i32, %c0_i32_0 : i32, i32
  }
  func.func @transform_11(%arg0: i32) -> (i32, i32) {
    %c0_i32 = arith.constant 0 : i32
    %c0_i32_0 = arith.constant 0 : i32
    %c0_i32_1 = arith.constant 0 : i32
    return %c0_i32, %c0_i32_0 : i32, i32
  }
  func.func @transform_12(%arg0: i32) -> (i32, i32) {
    %c0_i32 = arith.constant 0 : i32
    %c0_i32_0 = arith.constant 0 : i32
    %c0_i32_1 = arith.constant 0 : i32
    return %c0_i32, %c0_i32_0 : i32, i32
  }
  func.func @transform_13(%arg0: i32) -> (i32, i32) {
    %c0_i32 = arith.constant 0 : i32
    %c0_i32_0 = arith.constant 0 : i32
    %c0_i32_1 = arith.constant 0 : i32
    return %c0_i32, %c0_i32_0 : i32, i32
  }
}

</mosaic_0001>

<bundles_post_ra>
// kernel: test_forward.2
= control target key start
LH: loop header
LB: loop body
LE: loop exit
PB: predicated region body
PF: predicated region fallthrough
CT: control target
= control target key end

     0   :  { %s1931_s9 = smov 0   ;;  %s2222_s0 = inlined_call_operand.vmem [shape: f32[2,28,4096], index: 0, kind: input, shape index: {}]   ;;  %s2223_s1 = inlined_call_operand.vmem [shape: f32[2,3,28], index: 1, kind: input, shape index: {}]   ;;  %s2224_s2 = inlined_call_operand.vmem [shape: f32[2,3,4096], index: 2, kind: output, shape index: {}]  }
   0x1 LB: > { %s1674_s10 = sadd.s32 4294967295, %s1912_s9   ;;  %p1678_p0 = scmp.ge.s32.totalorder %s1912_s9, 1  ;;  %s1912_s9 = sphi %s1931_s9, %s12_s9  }
   0x2   : > { %p121_p1 = scmp.lt.s32.totalorder %s1912_s9, 3 }
   0x4   : > { %p122_p2 = pnand %p1678_p0, %p121_p1 }
   0x5   : > { %p147_p3 = scmp.lt.s32.totalorder (!%p122_p2), %s1674_s10, 1  ;;  %v1914_v0 = vmov (!%p122_p2), 0.0   ;;  %vm294_vm0 = vcmask (!%p122_p2), 1043456   ;;  %vm1915_vm1 = vmmov (!%p122_p2), 1   ;;  %vm290_vm3 = vcmask (!%p122_p2), 228352  }
   0x6   : > { %125 = sbr.rel (%p122_p2) target bundleno = 301 (0x12d), region = 28  ;;  %455 = vmatprep.mubr.f32.mxu0 (!%p122_p2), %v1914_v0  ;;  %526 = vmatprep.mubr.f32.mxu1 (!%p122_p2), %v1914_v0  ;;  %vm1949_vm2 = vmpackc.low (!%p122_p2), %vm294_vm0, %vm1915_vm1 }
   0xd   : > { %s2228_s10 = smov (!%p147_p3, %s1674_s10), 1 }
   0xe   : > { %s1734_s11 = sshll.u32 %s2228_s10, 10  ;;  %s1681_s15 = sshll.u32 %s2228_s10, 2 }
   0xf   : > { %s1947_s14 = scalar_lea.vmem %s2222_s0, %s1734_s11  ;;  %s155_s18 = scalar_lea.vmem %s2223_s1, %s1681_s15 }
  0x10   : > { %v163_v2 = vld [vmem:[%s1947_s14 + $0x8] sm:$0xff]  ;;  %v165_v4 = vld [vmem:[%s1947_s14 + $0x18] sm:$0xff]  ;;  %v162_v7 = vld [vmem:[%s1947_s14] sm:$0xff]  ;;  %s1735_s19 = sshll.u32 %s2228_s10, 7 }
  0x11   : > { %v195_v3 = vld [vmem:[%s1947_s14 + $0x108] sm:$0xff]  ;;  %v197_v6 = vld [vmem:[%s1947_s14 + $0x118] sm:$0xff]  ;;  %v194_v8 = vld [vmem:[%s1947_s14 + $0x100] sm:$0xff]  ;;  %s2201_s22 = scalar_lea.vmem %s2224_s2, %s1735_s19 }
  0x12   : > { %v1736_v5 = vpack.c.bf16 %v195_v3, %v163_v2  ;;  %v1746_v9 = vpack.c.bf16 %v197_v6, %v165_v4  ;;  %v1738_v10 = vpack.c.bf16 %v194_v8, %v162_v7  ;;  %v164_v11 = vld [vmem:[%s1947_s14 + $0x10] sm:$0xff]  ;;  %v227_v13 = vld [vmem:[%s1947_s14 + $0x208] sm:$0xff]  ;;  %v229_v16 = vld [vmem:[%s1947_s14 + $0x218] sm:$0xff] }
  0x13   : > { %v196_v12 = vld [vmem:[%s1947_s14 + $0x110] sm:$0xff]  ;;  %v259_v15 = vld [vmem:[%s1947_s14 + $0x308] sm:$0xf]  ;;  %v261_v17 = vld [vmem:[%s1947_s14 + $0x318] sm:$0xf] }
  0x14   : > { %1737 = vmatprep.subr.bf16.mxu0 %v1736_v5  ;;  %v1748_v14 = vpack.c.bf16 %v196_v12, %v164_v11  ;;  %1747 = vmatprep.subr.bf16.mxu1 %v1746_v9  ;;  %v1740_v18 = vpack.c.bf16 %v259_v15, %v227_v13  ;;  %v1750_v19 = vpack.c.bf16 %v261_v17, %v229_v16  ;;  %v226_v20 = vld [vmem:[%s1947_s14 + $0x200] sm:$0xff]  ;;  %v228_v22 = vld [vmem:[%s1947_s14 + $0x210] sm:$0xff]  ;;  %v167_v25 = vld [vmem:[%s1947_s14 + $0x28] sm:$0xff] }
  0x15   : > { %1739 = vmatpush1.bf16.msra.mxu0 %v1738_v10  ;;  %v258_v21 = vld [vmem:[%s1947_s14 + $0x300] sm:$0xf]  ;;  %v260_v24 = vld [vmem:[%s1947_s14 + $0x310] sm:$0xf]  ;;  %v199_v28 = vld [vmem:[%s1947_s14 + $0x128] sm:$0xff] }
  0x16   : > { %1749 = vmatpush1.bf16.msra.mxu1 %v1748_v14  ;;  %v1743_v23 = vpack.c.bf16 %v258_v21, %v226_v20  ;;  %1742 = vmatprep.subr.msk.bf16.mxu0 %vm1949_vm2, %v1740_v18  ;;  %v1753_v26 = vpack.c.bf16 %v260_v24, %v228_v22  ;;  %v1978_v27 = vld [vmem:[%s155_s18] sm:$0x7]  ;;  %v169_v29 = vld [vmem:[%s1947_s14 + $0x38] sm:$0xff]  ;;  %v1756_v31 = vpack.c.bf16 %v199_v28, %v167_v25  ;;  %v168_v35 = vld [vmem:[%s1947_s14 + $0x30] sm:$0xff] }
  0x17   : > { %1752 = vmatprep.subr.msk.bf16.mxu1 %vm1949_vm2, %v1750_v19  ;;  %v201_v30 = vld [vmem:[%s1947_s14 + $0x138] sm:$0xff]  ;;  %v166_v33 = vld [vmem:[%s1947_s14 + $0x20] sm:$0xff]  ;;  %v200_v37 = vld [vmem:[%s1947_s14 + $0x130] sm:$0xff] }
  0x18   : > { %v1766_v32 = vpack.c.bf16 %v201_v30, %v169_v29  ;;  %v198_v34 = vld [vmem:[%s1947_s14 + $0x120] sm:$0xff]  ;;  %v231_v38 = vld [vmem:[%s1947_s14 + $0x228] sm:$0xff]  ;;  %v1768_v40 = vpack.c.bf16 %v200_v37, %v168_v35  ;;  %v233_v42 = vld [vmem:[%s1947_s14 + $0x238] sm:$0xff] }
  0x19   : > { %1745 = vmatpush1.bf16.msk.msra.mxu0 %vm1949_vm2, %v1743_v23  ;;  %v1758_v36 = vpack.c.bf16 %v198_v34, %v166_v33  ;;  %v263_v39 = vld [vmem:[%s1947_s14 + $0x328] sm:$0xf]  ;;  %v265_v43 = vld [vmem:[%s1947_s14 + $0x338] sm:$0xf]  ;;  %v230_v44 = vld [vmem:[%s1947_s14 + $0x220] sm:$0xff] }
  0x1a   : > { %1755 = vmatpush1.bf16.msk.msra.mxu1 %vm1949_vm2, %v1753_v26  ;;  %1757 = vmatprep.subr.bf16.mxu0 %v1756_v31  ;;  %v1760_v41 = vpack.c.bf16 %v263_v39, %v231_v38  ;;  %v1770_v45 = vpack.c.bf16 %v265_v43, %v233_v42  ;;  %v262_v46 = vld [vmem:[%s1947_s14 + $0x320] sm:$0xf]  ;;  %v232_v47 = vld [vmem:[%s1947_s14 + $0x230] sm:$0xff]  ;;  %v171_v49 = vld [vmem:[%s1947_s14 + $0x48] sm:$0xff] }
  0x1b   : > { %1767 = vmatprep.subr.bf16.mxu1 %v1766_v32  ;;  %v264_v48 = vld [vmem:[%s1947_s14 + $0x330] sm:$0xf]  ;;  %v203_v50 = vld [vmem:[%s1947_s14 + $0x148] sm:$0xff]  ;;  %v173_v51 = vld [vmem:[%s1947_s14 + $0x58] sm:$0xff]  ;;  %v1763_v52 = vpack.c.bf16 %v262_v46, %v230_v44 }
  0x1c   : > { %1686 = vmatmul.mubr.msk.f32.vlgmr.msra.gmra.mrb[0].mxu0 %vm290_vm3, %v1978_v27  ;;  %v205_v53 = vld [vmem:[%s1947_s14 + $0x158] sm:$0xff]  ;;  %v1773_v54 = vpack.c.bf16 %v264_v48, %v232_v47  ;;  %v1776_v55 = vpack.c.bf16 %v203_v50, %v171_v49  ;;  %v170_v56 = vld [vmem:[%s1947_s14 + $0x40] sm:$0xff]  ;;  %v172_v58 = vld [vmem:[%s1947_s14 + $0x50] sm:$0xff] }
  0x1d   : > { %1689 = vmatmul.mubr.msk.f32.vlgmr.msra.gmra.mrb[0].mxu1 %vm290_vm3, %v1978_v27  ;;  %1759 = vmatpush1.bf16.msra.mxu0 %v1758_v36  ;;  %v202_v57 = vld [vmem:[%s1947_s14 + $0x140] sm:$0xff]  ;;  %v1786_v59 = vpack.c.bf16 %v205_v53, %v173_v51  ;;  %v204_v60 = vld [vmem:[%s1947_s14 + $0x150] sm:$0xff]  ;;  %v235_v61 = vld [vmem:[%s1947_s14 + $0x248] sm:$0xff] }
  0x1e   : > { %1769 = vmatpush1.bf16.msra.mxu1 %v1768_v40  ;;  %1762 = vmatprep.subr.msk.bf16.mxu0 %vm1949_vm2, %v1760_v41  ;;  %v267_v62 = vld [vmem:[%s1947_s14 + $0x348] sm:$0xf]  ;;  %v237_v63 = vld [vmem:[%s1947_s14 + $0x258] sm:$0xff]  ;;  %v1778_v3 = vpack.c.bf16 %v202_v57, %v170_v56  ;;  %v1788_v4 = vpack.c.bf16 %v204_v60, %v172_v58  ;;  %v234_v6 = vld [vmem:[%s1947_s14 + $0x240] sm:$0xff] }
  0x1f   : > { %1772 = vmatprep.subr.msk.bf16.mxu1 %vm1949_vm2, %v1770_v45  ;;  %597 = vmatprep.mubr.f32.mxu0 %v1914_v0  ;;  %v269_v2 = vld [vmem:[%s1947_s14 + $0x358] sm:$0xf]  ;;  %v1780_v5 = vpack.c.bf16 %v267_v62, %v235_v61  ;;  %v266_v7 = vld [vmem:[%s1947_s14 + $0x340] sm:$0xf]  ;;  %v236_v8 = vld [vmem:[%s1947_s14 + $0x250] sm:$0xff] }
  0x20   : > { %668 = vmatprep.mubr.f32.mxu1 %v1914_v0  ;;  %v1790_v9 = vpack.c.bf16 %v269_v2, %v237_v63  ;;  %v268_v10 = vld [vmem:[%s1947_s14 + $0x350] sm:$0xf]  ;;  %v175_v11 = vld [vmem:[%s1947_s14 + $0x68] sm:$0xff]  ;;  %v177_v13 = vld [vmem:[%s1947_s14 + $0x78] sm:$0xff]  ;;  %v1783_v15 = vpack.c.bf16 %v266_v7, %v234_v6 }
  0x21   : > { %1765 = vmatpush1.bf16.msk.msra.mxu0 %vm1949_vm2, %v1763_v52  ;;  %v207_v12 = vld [vmem:[%s1947_s14 + $0x168] sm:$0xff]  ;;  %v209_v14 = vld [vmem:[%s1947_s14 + $0x178] sm:$0xff]  ;;  %v1793_v16 = vpack.c.bf16 %v268_v10, %v236_v8  ;;  %v174_v18 = vld [vmem:[%s1947_s14 + $0x60] sm:$0xff] }
  0x22   : > { %1775 = vmatpush1.bf16.msk.msra.mxu1 %vm1949_vm2, %v1773_v54  ;;  %1777 = vmatprep.subr.bf16.mxu0 %v1776_v55  ;;  %v1796_v17 = vpack.c.bf16 %v207_v12, %v175_v11  ;;  %v206_v19 = vld [vmem:[%s1947_s14 + $0x160] sm:$0xff]  ;;  %v176_v20 = vld [vmem:[%s1947_s14 + $0x70] sm:$0xff]  ;;  %v1806_v21 = vpack.c.bf16 %v209_v14, %v177_v13  ;;  %v239_v23 = vld [vmem:[%s1947_s14 + $0x268] sm:$0xff] }
  0x23   : > { %1787 = vmatprep.subr.bf16.mxu1 %v1786_v59  ;;  %v208_v22 = vld [vmem:[%s1947_s14 + $0x170] sm:$0xff]  ;;  %v271_v24 = vld [vmem:[%s1947_s14 + $0x368] sm:$0xf]  ;;  %v241_v25 = vld [vmem:[%s1947_s14 + $0x278] sm:$0xff]  ;;  %v1798_v28 = vpack.c.bf16 %v206_v19, %v174_v18 }
  0x24   : > { %1692 = vmatmul.mubr.msk.f32.vlgmr.msra.gmra.mrb[2].mxu0 %vm290_vm3, %v1978_v27  ;;  %v273_v26 = vld [vmem:[%s1947_s14 + $0x378] sm:$0xf]  ;;  %v1808_v29 = vpack.c.bf16 %v208_v22, %v176_v20  ;;  %v1800_v30 = vpack.c.bf16 %v271_v24, %v239_v23  ;;  %v238_v31 = vld [vmem:[%s1947_s14 + $0x260] sm:$0xff]  ;;  %v240_v33 = vld [vmem:[%s1947_s14 + $0x270] sm:$0xff] }
  0x25   : > { %1695 = vmatmul.mubr.msk.f32.vlgmr.msra.gmra.mrb[2].mxu1 %vm290_vm3, %v1978_v27  ;;  %1779 = vmatpush1.bf16.msra.mxu0 %v1778_v3  ;;  %v270_v32 = vld [vmem:[%s1947_s14 + $0x360] sm:$0xf]  ;;  %v1810_v34 = vpack.c.bf16 %v273_v26, %v241_v25  ;;  %v272_v35 = vld [vmem:[%s1947_s14 + $0x370] sm:$0xf]  ;;  %v179_v36 = vld [vmem:[%s1947_s14 + $0x88] sm:$0xff] }
  0x26   : > { %1789 = vmatpush1.bf16.msra.mxu1 %v1788_v4  ;;  %1782 = vmatprep.subr.msk.bf16.mxu0 %vm1949_vm2, %v1780_v5  ;;  %v211_v37 = vld [vmem:[%s1947_s14 + $0x188] sm:$0xff]  ;;  %v181_v38 = vld [vmem:[%s1947_s14 + $0x98] sm:$0xff]  ;;  %v1803_v40 = vpack.c.bf16 %v270_v32, %v238_v31  ;;  %v1813_v41 = vpack.c.bf16 %v272_v35, %v240_v33  ;;  %v178_v43 = vld [vmem:[%s1947_s14 + $0x80] sm:$0xff] }
  0x27   : > { %1792 = vmatprep.subr.msk.bf16.mxu1 %vm1949_vm2, %v1790_v9  ;;  %739 = vmatprep.mubr.f32.mxu0 %v1914_v0  ;;  %v213_v39 = vld [vmem:[%s1947_s14 + $0x198] sm:$0xff]  ;;  %v1816_v42 = vpack.c.bf16 %v211_v37, %v179_v36  ;;  %v210_v44 = vld [vmem:[%s1947_s14 + $0x180] sm:$0xff]  ;;  %v180_v45 = vld [vmem:[%s1947_s14 + $0x90] sm:$0xff] }
  0x28   : > { %810 = vmatprep.mubr.f32.mxu1 %v1914_v0  ;;  %v1826_v46 = vpack.c.bf16 %v213_v39, %v181_v38  ;;  %v212_v47 = vld [vmem:[%s1947_s14 + $0x190] sm:$0xff]  ;;  %v243_v48 = vld [vmem:[%s1947_s14 + $0x288] sm:$0xff]  ;;  %v245_v50 = vld [vmem:[%s1947_s14 + $0x298] sm:$0xff]  ;;  %v1818_v52 = vpack.c.bf16 %v210_v44, %v178_v43 }
  0x29   : > { %1785 = vmatpush1.bf16.msk.msra.mxu0 %vm1949_vm2, %v1783_v15  ;;  %v275_v49 = vld [vmem:[%s1947_s14 + $0x388] sm:$0xf]  ;;  %v277_v51 = vld [vmem:[%s1947_s14 + $0x398] sm:$0xf]  ;;  %v1828_v53 = vpack.c.bf16 %v212_v47, %v180_v45  ;;  %v242_v55 = vld [vmem:[%s1947_s14 + $0x280] sm:$0xff] }
  0x2a   : > { %1795 = vmatpush1.bf16.msk.msra.mxu1 %vm1949_vm2, %v1793_v16  ;;  %1797 = vmatprep.subr.bf16.mxu0 %v1796_v17  ;;  %v1820_v54 = vpack.c.bf16 %v275_v49, %v243_v48  ;;  %v274_v56 = vld [vmem:[%s1947_s14 + $0x380] sm:$0xf]  ;;  %v244_v57 = vld [vmem:[%s1947_s14 + $0x290] sm:$0xff]  ;;  %v1830_v58 = vpack.c.bf16 %v277_v51, %v245_v50  ;;  %v183_v60 = vld [vmem:[%s1947_s14 + $0xa8] sm:$0xff] }
  0x2b   : > { %1807 = vmatprep.subr.bf16.mxu1 %v1806_v21  ;;  %v276_v59 = vld [vmem:[%s1947_s14 + $0x390] sm:$0xf]  ;;  %v215_v61 = vld [vmem:[%s1947_s14 + $0x1a8] sm:$0xff]  ;;  %v185_v62 = vld [vmem:[%s1947_s14 + $0xb8] sm:$0xff]  ;;  %v1823_v2 = vpack.c.bf16 %v274_v56, %v242_v55 }
  0x2c   : > { %1698 = vmatmul.mubr.msk.f32.vlgmr.msra.gmra.mrb[4].mxu0 %vm290_vm3, %v1978_v27  ;;  %v217_v63 = vld [vmem:[%s1947_s14 + $0x1b8] sm:$0xff]  ;;  %v1833_v3 = vpack.c.bf16 %v276_v59, %v244_v57  ;;  %v1836_v4 = vpack.c.bf16 %v215_v61, %v183_v60  ;;  %v182_v5 = vld [vmem:[%s1947_s14 + $0xa0] sm:$0xff]  ;;  %v184_v7 = vld [vmem:[%s1947_s14 + $0xb0] sm:$0xff] }
  0x2d   : > { %1701 = vmatmul.mubr.msk.f32.vlgmr.msra.gmra.mrb[4].mxu1 %vm290_vm3, %v1978_v27  ;;  %1799 = vmatpush1.bf16.msra.mxu0 %v1798_v28  ;;  %v214_v6 = vld [vmem:[%s1947_s14 + $0x1a0] sm:$0xff]  ;;  %v1846_v8 = vpack.c.bf16 %v217_v63, %v185_v62  ;;  %v216_v9 = vld [vmem:[%s1947_s14 + $0x1b0] sm:$0xff]  ;;  %v247_v10 = vld [vmem:[%s1947_s14 + $0x2a8] sm:$0xff] }
  0x2e   : > { %1809 = vmatpush1.bf16.msra.mxu1 %v1808_v29  ;;  %1802 = vmatprep.subr.msk.bf16.mxu0 %vm1949_vm2, %v1800_v30  ;;  %v279_v11 = vld [vmem:[%s1947_s14 + $0x3a8] sm:$0xf]  ;;  %v249_v12 = vld [vmem:[%s1947_s14 + $0x2b8] sm:$0xff]  ;;  %v1838_v14 = vpack.c.bf16 %v214_v6, %v182_v5  ;;  %v1848_v15 = vpack.c.bf16 %v216_v9, %v184_v7  ;;  %v246_v17 = vld [vmem:[%s1947_s14 + $0x2a0] sm:$0xff] }
  0x2f   : > { %1812 = vmatprep.subr.msk.bf16.mxu1 %vm1949_vm2, %v1810_v34  ;;  %881 = vmatprep.mubr.f32.mxu0 %v1914_v0  ;;  %v281_v13 = vld [vmem:[%s1947_s14 + $0x3b8] sm:$0xf]  ;;  %v1840_v16 = vpack.c.bf16 %v279_v11, %v247_v10  ;;  %v278_v18 = vld [vmem:[%s1947_s14 + $0x3a0] sm:$0xf]  ;;  %v248_v19 = vld [vmem:[%s1947_s14 + $0x2b0] sm:$0xff] }
  0x30   : > { %952 = vmatprep.mubr.f32.mxu1 %v1914_v0  ;;  %v1850_v20 = vpack.c.bf16 %v281_v13, %v249_v12  ;;  %v280_v21 = vld [vmem:[%s1947_s14 + $0x3b0] sm:$0xf]  ;;  %v187_v22 = vld [vmem:[%s1947_s14 + $0xc8] sm:$0xff]  ;;  %v189_v24 = vld [vmem:[%s1947_s14 + $0xd8] sm:$0xff]  ;;  %v1843_v26 = vpack.c.bf16 %v278_v18, %v246_v17 }
  0x31   : > { %1805 = vmatpush1.bf16.msk.msra.mxu0 %vm1949_vm2, %v1803_v40  ;;  %v219_v23 = vld [vmem:[%s1947_s14 + $0x1c8] sm:$0xff]  ;;  %v221_v25 = vld [vmem:[%s1947_s14 + $0x1d8] sm:$0xff]  ;;  %v1853_v28 = vpack.c.bf16 %v280_v21, %v248_v19  ;;  %v186_v30 = vld [vmem:[%s1947_s14 + $0xc0] sm:$0xff] }
  0x32   : > { %1815 = vmatpush1.bf16.msk.msra.mxu1 %vm1949_vm2, %v1813_v41  ;;  %1817 = vmatprep.subr.bf16.mxu0 %v1816_v42  ;;  %v1856_v29 = vpack.c.bf16 %v219_v23, %v187_v22  ;;  %v218_v31 = vld [vmem:[%s1947_s14 + $0x1c0] sm:$0xff]  ;;  %v188_v32 = vld [vmem:[%s1947_s14 + $0xd0] sm:$0xff]  ;;  %v1866_v33 = vpack.c.bf16 %v221_v25, %v189_v24  ;;  %v251_v35 = vld [vmem:[%s1947_s14 + $0x2c8] sm:$0xff] }
  0x33   : > { %1827 = vmatprep.subr.bf16.mxu1 %v1826_v46  ;;  %v220_v34 = vld [vmem:[%s1947_s14 + $0x1d0] sm:$0xff]  ;;  %v283_v36 = vld [vmem:[%s1947_s14 + $0x3c8] sm:$0xf]  ;;  %v253_v37 = vld [vmem:[%s1947_s14 + $0x2d8] sm:$0xff]  ;;  %v1858_v39 = vpack.c.bf16 %v218_v31, %v186_v30 }
  0x34   : > { %1704 = vmatmul.mubr.msk.f32.vlgmr.msra.gmra.mrb[6].mxu0 %vm290_vm3, %v1978_v27  ;;  %v285_v38 = vld [vmem:[%s1947_s14 + $0x3d8] sm:$0xf]  ;;  %v1868_v40 = vpack.c.bf16 %v220_v34, %v188_v32  ;;  %v1860_v41 = vpack.c.bf16 %v283_v36, %v251_v35  ;;  %v250_v42 = vld [vmem:[%s1947_s14 + $0x2c0] sm:$0xff]  ;;  %v252_v44 = vld [vmem:[%s1947_s14 + $0x2d0] sm:$0xff] }
  0x35   : > { %1707 = vmatmul.mubr.msk.f32.vlgmr.msra.gmra.mrb[6].mxu1 %vm290_vm3, %v1978_v27  ;;  %1819 = vmatpush1.bf16.msra.mxu0 %v1818_v52  ;;  %v282_v43 = vld [vmem:[%s1947_s14 + $0x3c0] sm:$0xf]  ;;  %v1870_v45 = vpack.c.bf16 %v285_v38, %v253_v37  ;;  %v284_v46 = vld [vmem:[%s1947_s14 + $0x3d0] sm:$0xf]  ;;  %v191_v47 = vld [vmem:[%s1947_s14 + $0xe8] sm:$0xff] }
  0x36   : > { %1829 = vmatpush1.bf16.msra.mxu1 %v1828_v53  ;;  %1822 = vmatprep.subr.msk.bf16.mxu0 %vm1949_vm2, %v1820_v54  ;;  %v223_v48 = vld [vmem:[%s1947_s14 + $0x1e8] sm:$0xff]  ;;  %v193_v49 = vld [vmem:[%s1947_s14 + $0xf8] sm:$0xff]  ;;  %v1863_v51 = vpack.c.bf16 %v282_v43, %v250_v42  ;;  %v1873_v52 = vpack.c.bf16 %v284_v46, %v252_v44  ;;  %v190_v54 = vld [vmem:[%s1947_s14 + $0xe0] sm:$0xff] }
  0x37   : > { %1832 = vmatprep.subr.msk.bf16.mxu1 %vm1949_vm2, %v1830_v58  ;;  %1023 = vmatprep.mubr.f32.mxu0 %v1914_v0  ;;  %v225_v50 = vld [vmem:[%s1947_s14 + $0x1f8] sm:$0xff]  ;;  %v1876_v53 = vpack.c.bf16 %v223_v48, %v191_v47  ;;  %v222_v55 = vld [vmem:[%s1947_s14 + $0x1e0] sm:$0xff]  ;;  %v192_v56 = vld [vmem:[%s1947_s14 + $0xf0] sm:$0xff] }
  0x38   : > { %1094 = vmatprep.mubr.f32.mxu1 %v1914_v0  ;;  %v1886_v57 = vpack.c.bf16 %v225_v50, %v193_v49  ;;  %v224_v58 = vld [vmem:[%s1947_s14 + $0x1f0] sm:$0xff]  ;;  %v255_v59 = vld [vmem:[%s1947_s14 + $0x2e8] sm:$0xff]  ;;  %v257_v61 = vld [vmem:[%s1947_s14 + $0x2f8] sm:$0xff]  ;;  %v1878_v63 = vpack.c.bf16 %v222_v55, %v190_v54 }
  0x39   : > { %1825 = vmatpush1.bf16.msk.msra.mxu0 %vm1949_vm2, %v1823_v2  ;;  %v287_v60 = vld [vmem:[%s1947_s14 + $0x3e8] sm:$0xf]  ;;  %v289_v62 = vld [vmem:[%s1947_s14 + $0x3f8] sm:$0xf]  ;;  %v1888_v2 = vpack.c.bf16 %v224_v58, %v192_v56  ;;  %v286_v5 = vld [vmem:[%s1947_s14 + $0x3e0] sm:$0xf] }
  0x3a   : > { %1835 = vmatpush1.bf16.msk.msra.mxu1 %vm1949_vm2, %v1833_v3  ;;  %1837 = vmatprep.subr.bf16.mxu0 %v1836_v4  ;;  %v1880_v3 = vpack.c.bf16 %v287_v60, %v255_v59  ;;  %v254_v4 = vld [vmem:[%s1947_s14 + $0x2e0] sm:$0xff]  ;;  %v1890_v6 = vpack.c.bf16 %v289_v62, %v257_v61  ;;  %v256_v7 = vld [vmem:[%s1947_s14 + $0x2f0] sm:$0xff] }
  0x3b   : > { %1847 = vmatprep.subr.bf16.mxu1 %v1846_v8  ;;  %v288_v8 = vld [vmem:[%s1947_s14 + $0x3f0] sm:$0xf]  ;;  %v1883_v9 = vpack.c.bf16 %v286_v5, %v254_v4 }
  0x3c   : > { %1710 = vmatmul.mubr.msk.f32.vlgmr.msra.gmra.mrb[8].mxu0 %vm290_vm3, %v1978_v27  ;;  %v1893_v10 = vpack.c.bf16 %v288_v8, %v256_v7 }
  0x3d   : > { %1713 = vmatmul.mubr.msk.f32.vlgmr.msra.gmra.mrb[8].mxu1 %vm290_vm3, %v1978_v27  ;;  %1839 = vmatpush1.bf16.msra.mxu0 %v1838_v14 }
  0x3e   : > { %1849 = vmatpush1.bf16.msra.mxu1 %v1848_v15  ;;  %1842 = vmatprep.subr.msk.bf16.mxu0 %vm1949_vm2, %v1840_v16 }
  0x3f   : > { %1852 = vmatprep.subr.msk.bf16.mxu1 %vm1949_vm2, %v1850_v20  ;;  %1165 = vmatprep.mubr.f32.mxu0 %v1914_v0 }
  0x40   : > { %1236 = vmatprep.mubr.f32.mxu1 %v1914_v0 }
  0x41   : > { %1845 = vmatpush1.bf16.msk.msra.mxu0 %vm1949_vm2, %v1843_v26 }
  0x42   : > { %1855 = vmatpush1.bf16.msk.msra.mxu1 %vm1949_vm2, %v1853_v28  ;;  %1857 = vmatprep.subr.bf16.mxu0 %v1856_v29 }
  0x43   : > { %1867 = vmatprep.subr.bf16.mxu1 %v1866_v33 }
  0x44   : > { %1716 = vmatmul.mubr.msk.f32.vlgmr.msra.gmra.mrb[10].mxu0 %vm290_vm3, %v1978_v27 }
  0x45   : > { %1719 = vmatmul.mubr.msk.f32.vlgmr.msra.gmra.mrb[10].mxu1 %vm290_vm3, %v1978_v27  ;;  %1859 = vmatpush1.bf16.msra.mxu0 %v1858_v39 }
  0x46   : > { %1869 = vmatpush1.bf16.msra.mxu1 %v1868_v40  ;;  %1862 = vmatprep.subr.msk.bf16.mxu0 %vm1949_vm2, %v1860_v41 }
  0x47   : > { %1872 = vmatprep.subr.msk.bf16.mxu1 %vm1949_vm2, %v1870_v45  ;;  %1307 = vmatprep.mubr.f32.mxu0 %v1914_v0 }
  0x48   : > { %1378 = vmatprep.mubr.f32.mxu1 %v1914_v0 }
  0x49   : > { %1865 = vmatpush1.bf16.msk.msra.mxu0 %vm1949_vm2, %v1863_v51 }
  0x4a   : > { %1875 = vmatpush1.bf16.msk.msra.mxu1 %vm1949_vm2, %v1873_v52  ;;  %1877 = vmatprep.subr.bf16.mxu0 %v1876_v53 }
  0x4b   : > { %1887 = vmatprep.subr.bf16.mxu1 %v1886_v57 }
  0x4c   : > { %1722 = vmatmul.mubr.msk.f32.vlgmr.msra.gmra.mrb[12].mxu0 %vm290_vm3, %v1978_v27 }
  0x4d   : > { %1725 = vmatmul.mubr.msk.f32.vlgmr.msra.gmra.mrb[12].mxu1 %vm290_vm3, %v1978_v27  ;;  %1879 = vmatpush1.bf16.msra.mxu0 %v1878_v63 }
  0x4e   : > { %1889 = vmatpush1.bf16.msra.mxu1 %v1888_v2  ;;  %1882 = vmatprep.subr.msk.bf16.mxu0 %vm1949_vm2, %v1880_v3 }
  0x4f   : > { %1892 = vmatprep.subr.msk.bf16.mxu1 %vm1949_vm2, %v1890_v6  ;;  %1449 = vmatprep.mubr.f32.mxu0 %v1914_v0 }
  0x50   : > { %1520 = vmatprep.mubr.f32.mxu1 %v1914_v0 }
  0x51   : > { %1885 = vmatpush1.bf16.msk.msra.mxu0 %vm1949_vm2, %v1883_v9 }
  0x52   : > { %1895 = vmatpush1.bf16.msk.msra.mxu1 %vm1949_vm2, %v1893_v10 }
  0x54   : > { %1728 = vmatmul.mubr.msk.f32.vlgmr.msra.gmra.mrb[14].mxu0 %vm290_vm3, %v1978_v27 }
  0x55   : > { %1731 = vmatmul.mubr.msk.f32.vlgmr.msra.gmra.mrb[14].mxu1 %vm290_vm3, %v1978_v27 }
  0xef   : > { %v457_v11 = vpop.f32.mrb[0].mxu0 }
  0xf0   : > { %v528_v12 = vpop.f32.mrb[0].mxu1  ;;  %v459_v0 = vpop.f32.mrb[1].mxu0 }
  0xf1   : > { %v1559_v1 = vcombine.low %v457_v11, %v459_v0  ;;  %v530_v13 = vpop.f32.mrb[1].mxu1 }
  0xf2   : > { %v1560_v14 = vcombine.low %v528_v12, %v530_v13 }
  0xf3   : > { %1591 = vst [vmem:[%s2201_s22] sm:$0x77] %v1559_v1 }
  0xf4   : > { %1592 = vst [vmem:[%s2201_s22 + $0x8] sm:$0x77] %v1560_v14 }
  0xf7   : > { %v599_v27 = vpop.f32.mrb[2].mxu0 }
  0xf8   : > { %v670_v15 = vpop.f32.mrb[2].mxu1  ;;  %v601_v16 = vpop.f32.mrb[3].mxu0 }
  0xf9   : > { %v1561_v17 = vcombine.low %v599_v27, %v601_v16  ;;  %v672_v18 = vpop.f32.mrb[3].mxu1 }
  0xfa   : > { %v1562_v19 = vcombine.low %v670_v15, %v672_v18 }
  0xfb   : > { %1593 = vst [vmem:[%s2201_s22 + $0x10] sm:$0x77] %v1561_v17 }
  0xfc   : > { %1594 = vst [vmem:[%s2201_s22 + $0x18] sm:$0x77] %v1562_v19 }
  0xff   : > { %v741_v20 = vpop.f32.mrb[4].mxu0 }
 0x100   : > { %v812_v21 = vpop.f32.mrb[4].mxu1  ;;  %v743_v22 = vpop.f32.mrb[5].mxu0 }
 0x101   : > { %v1563_v23 = vcombine.low %v741_v20, %v743_v22  ;;  %v814_v24 = vpop.f32.mrb[5].mxu1 }
 0x102   : > { %v1564_v25 = vcombine.low %v812_v21, %v814_v24 }
 0x103   : > { %1595 = vst [vmem:[%s2201_s22 + $0x20] sm:$0x77] %v1563_v23 }
 0x104   : > { %1596 = vst [vmem:[%s2201_s22 + $0x28] sm:$0x77] %v1564_v25 }
 0x107   : > { %v883_v26 = vpop.f32.mrb[6].mxu0 }
 0x108   : > { %v954_v28 = vpop.f32.mrb[6].mxu1  ;;  %v885_v29 = vpop.f32.mrb[7].mxu0 }
 0x109   : > { %v1565_v30 = vcombine.low %v883_v26, %v885_v29  ;;  %v956_v31 = vpop.f32.mrb[7].mxu1 }
 0x10a   : > { %v1566_v32 = vcombine.low %v954_v28, %v956_v31 }
 0x10b   : > { %1597 = vst [vmem:[%s2201_s22 + $0x30] sm:$0x77] %v1565_v30 }
 0x10c   : > { %1598 = vst [vmem:[%s2201_s22 + $0x38] sm:$0x77] %v1566_v32 }
 0x10f   : > { %v1025_v33 = vpop.f32.mrb[8].mxu0 }
 0x110   : > { %v1096_v34 = vpop.f32.mrb[8].mxu1  ;;  %v1027_v35 = vpop.f32.mrb[9].mxu0 }
 0x111   : > { %v1567_v36 = vcombine.low %v1025_v33, %v1027_v35  ;;  %v1098_v37 = vpop.f32.mrb[9].mxu1 }
 0x112   : > { %v1568_v38 = vcombine.low %v1096_v34, %v1098_v37 }
 0x113   : > { %1599 = vst [vmem:[%s2201_s22 + $0x40] sm:$0x77] %v1567_v36 }
 0x114   : > { %1600 = vst [vmem:[%s2201_s22 + $0x48] sm:$0x77] %v1568_v38 }
 0x117   : > { %v1167_v39 = vpop.f32.mrb[10].mxu0 }
 0x118   : > { %v1238_v40 = vpop.f32.mrb[10].mxu1  ;;  %v1169_v41 = vpop.f32.mrb[11].mxu0 }
 0x119   : > { %v1569_v42 = vcombine.low %v1167_v39, %v1169_v41  ;;  %v1240_v43 = vpop.f32.mrb[11].mxu1 }
 0x11a   : > { %v1570_v44 = vcombine.low %v1238_v40, %v1240_v43 }
 0x11b   : > { %1601 = vst [vmem:[%s2201_s22 + $0x50] sm:$0x77] %v1569_v42 }
 0x11c   : > { %1602 = vst [vmem:[%s2201_s22 + $0x58] sm:$0x77] %v1570_v44 }
 0x11f   : > { %v1309_v45 = vpop.f32.mrb[12].mxu0 }
 0x120   : > { %v1380_v46 = vpop.f32.mrb[12].mxu1  ;;  %v1311_v47 = vpop.f32.mrb[13].mxu0 }
 0x121   : > { %v1571_v48 = vcombine.low %v1309_v45, %v1311_v47  ;;  %v1382_v49 = vpop.f32.mrb[13].mxu1 }
 0x122   : > { %v1572_v50 = vcombine.low %v1380_v46, %v1382_v49 }
 0x123   : > { %1603 = vst [vmem:[%s2201_s22 + $0x60] sm:$0x77] %v1571_v48 }
 0x124   : > { %1604 = vst [vmem:[%s2201_s22 + $0x68] sm:$0x77] %v1572_v50 }
 0x127   : > { %v1451_v51 = vpop.f32.mrb[14].mxu0 }
 0x128   : > { %v1522_v52 = vpop.f32.mrb[14].mxu1  ;;  %v1453_v53 = vpop.f32.mrb[15].mxu0 }
 0x129   : > { %v1573_v54 = vcombine.low %v1451_v51, %v1453_v53  ;;  %v1524_v55 = vpop.f32.mrb[15].mxu1 }
 0x12a   : > { %v1574_v56 = vcombine.low %v1522_v52, %v1524_v55 }
 0x12b   : > { %1605 = vst [vmem:[%s2201_s22 + $0x70] sm:$0x77] %v1573_v54 }
 0x12c   : > { %1606 = vst [vmem:[%s2201_s22 + $0x78] sm:$0x77] %v1574_v56 }
 0x12d PF: > { %s12_s9 = sadd.s32 1, %s1912_s9  }
 0x12e   : > { %p9_p4 = scmp.ge.s32.totalorder %s12_s9, 4  }
 0x130   :  { %11 = sbr.rel (!%p9_p4) target bundleno = 1 (0x1), region = 61 }

// kernel: squeeze.5
= control target key start
LH: loop header
LB: loop body
LE: loop exit
PB: predicated region body
PF: predicated region fallthrough
CT: control target
= control target key end

     0   :  { %vm448_vm0 = vcmask 1047556   ;;  %s1031_s29 = smov 96   ;;  %s1033_s13 = smov 32   ;;  %vm161_vm1 = vcmask 261120   ;;  %s1764_s0 = inlined_call_operand.vmem [shape: f32[1,3,4096], index: 0, kind: input, shape index: {}]   ;;  %s1765_s1 = inlined_call_operand.vmem [shape: f32[3,4,32,32], index: 1, kind: output, shape index: {}]  }
   0x1   :  { %v890_v0 = vld [vmem:[%s1764_s0 + $0x1c] sm:$0xf]  ;;  %v891_v1 = vld [vmem:[%s1764_s0 + $0x18] sm:$0xf]  ;;  %v892_v2 = vld [vmem:[%s1764_s0 + $0x14] sm:$0xf] }
   0x2   :  { %128 = vst [vmem:[#allocation0 + $0x38] sm:$0xf] %v890_v0  ;;  %133 = vst [vmem:[#allocation0 + $0x30] sm:$0xf] %v891_v1  ;;  %v893_v3 = vld [vmem:[%s1764_s0 + $0x10] sm:$0xf] }
   0x3   :  { %138 = vst [vmem:[#allocation0 + $0x28] sm:$0xf] %v892_v2  ;;  %v894_v4 = vld [vmem:[%s1764_s0 + $0xc] sm:$0xf]  ;;  %v895_v5 = vld [vmem:[%s1764_s0 + $0x8] sm:$0xf] }
   0x4   :  { %143 = vst [vmem:[#allocation0 + $0x20] sm:$0xf] %v893_v3  ;;  %148 = vst [vmem:[#allocation0 + $0x18] sm:$0xf] %v894_v4  ;;  %v896_v6 = vld [vmem:[%s1764_s0 + $0x4] sm:$0xf] }
   0x5   :  { %153 = vst [vmem:[#allocation0 + $0x10] sm:$0xf] %v895_v5  ;;  %v158_v7 = vld [vmem:[%s1764_s0] sm:$0xf]  ;;  %157 = vst [vmem:[#allocation0 + $0x8] sm:$0xf] %v896_v6 }
   0x6   :  { %159 = vst [vmem:[#allocation0] sm:$0xf] %v158_v7  ;;  %v882_v8 = vld [vmem:[%s1764_s0 + $0x3c] sm:$0xf]  ;;  %v883_v9 = vld [vmem:[%s1764_s0 + $0x38] sm:$0xf] }
   0x7   :  { %v884_v10 = vld [vmem:[%s1764_s0 + $0x34] sm:$0xf]  ;;  %88 = vst [vmem:[#allocation0 + $0x78] sm:$0xf] %v882_v8  ;;  %93 = vst [vmem:[#allocation0 + $0x70] sm:$0xf] %v883_v9 }
   0x8   :  { %98 = vst [vmem:[#allocation0 + $0x68] sm:$0xf] %v884_v10  ;;  %v885_v11 = vld [vmem:[%s1764_s0 + $0x30] sm:$0xf]  ;;  %v886_v12 = vld [vmem:[%s1764_s0 + $0x2c] sm:$0xf] }
   0x9   :  { %v887_v13 = vld [vmem:[%s1764_s0 + $0x28] sm:$0xf]  ;;  %103 = vst [vmem:[#allocation0 + $0x60] sm:$0xf] %v885_v11  ;;  %108 = vst [vmem:[#allocation0 + $0x58] sm:$0xf] %v886_v12 }
   0xa   :  { %113 = vst [vmem:[#allocation0 + $0x50] sm:$0xf] %v887_v13  ;;  %v888_v14 = vld [vmem:[%s1764_s0 + $0x24] sm:$0xf]  ;;  %v889_v15 = vld [vmem:[%s1764_s0 + $0x20] sm:$0xf] }
   0xb   :  { %v874_v16 = vld [vmem:[%s1764_s0 + $0x5c] sm:$0xf]  ;;  %118 = vst [vmem:[#allocation0 + $0x48] sm:$0xf] %v888_v14  ;;  %123 = vst [vmem:[#allocation0 + $0x40] sm:$0xf] %v889_v15 }
   0xc   :  { %48 = vst [vmem:[#allocation0 + $0xb8] sm:$0xf] %v874_v16  ;;  %v875_v17 = vld [vmem:[%s1764_s0 + $0x58] sm:$0xf]  ;;  %v876_v18 = vld [vmem:[%s1764_s0 + $0x54] sm:$0xf] }
   0xd   :  { %v877_v19 = vld [vmem:[%s1764_s0 + $0x50] sm:$0xf]  ;;  %53 = vst [vmem:[#allocation0 + $0xb0] sm:$0xf] %v875_v17  ;;  %58 = vst [vmem:[#allocation0 + $0xa8] sm:$0xf] %v876_v18 }
   0xe   :  { %63 = vst [vmem:[#allocation0 + $0xa0] sm:$0xf] %v877_v19  ;;  %v878_v20 = vld [vmem:[%s1764_s0 + $0x4c] sm:$0xf]  ;;  %v879_v21 = vld [vmem:[%s1764_s0 + $0x48] sm:$0xf] }
   0xf   :  { %v880_v22 = vld [vmem:[%s1764_s0 + $0x44] sm:$0xf]  ;;  %68 = vst [vmem:[#allocation0 + $0x98] sm:$0xf] %v878_v20  ;;  %73 = vst [vmem:[#allocation0 + $0x90] sm:$0xf] %v879_v21 }
  0x10   :  { %78 = vst [vmem:[#allocation0 + $0x88] sm:$0xf] %v880_v22  ;;  %v881_v23 = vld [vmem:[%s1764_s0 + $0x40] sm:$0xf]  ;;  %v866_v24 = vld [vmem:[%s1764_s0 + $0x7c] sm:$0xf] }
  0x11   :  { %v867_v25 = vld [vmem:[%s1764_s0 + $0x78] sm:$0xf]  ;;  %83 = vst [vmem:[#allocation0 + $0x80] sm:$0xf] %v881_v23  ;;  %8 = vst [vmem:[#allocation0 + $0xf8] sm:$0xf] %v866_v24 }
  0x12   :  { %v469_v26 = vld [vmem:[#allocation0 + $0x2] ss:$8 sm:$0xf0]   ;;  %v447_v27 = vld [vmem:[#allocation0] ss:$8 sm:$0xf0]  }
  0x13   :  { %13 = vst [vmem:[#allocation0 + $0xf0] sm:$0xf] %v867_v25  ;;  %v467_v28 = vld [vmem:[#allocation0 + $0x2] ss:$8 sm:$0xf]  }
  0x14   :  { %v446_v29 = vld [vmem:[#allocation0] ss:$8 sm:$0xf]   ;;  %v471_v30 = vsel %vm448_vm0, %v469_v26, %v467_v28  ;;  %v456_v32 = vld [vmem:[#allocation0 + $0x1] ss:$8 sm:$0xf]  }
  0x15   :  { %v449_v31 = vsel %vm448_vm0, %v447_v27, %v446_v29  ;;  %v458_v33 = vld [vmem:[#allocation0 + $0x1] ss:$8 sm:$0xf0]   ;;  %472 = vrot.lane.b32.xlu1 %v471_v30, %s1031_s29  ;;  %v480_v34 = vld [vmem:[#allocation0 + $0x40] ss:$8 sm:$0xf0]  }
  0x16   :  { %450 = vrot.lane.b32.xlu0 %v449_v31, %s1031_s29  ;;  %v491_v35 = vld [vmem:[#allocation0 + $0x41] ss:$8 sm:$0xf0]   ;;  %v460_v36 = vsel %vm448_vm0, %v458_v33, %v456_v32  ;;  %v478_v37 = vld [vmem:[#allocation0 + $0x40] ss:$8 sm:$0xf]  }
  0x17   :  { %v489_v38 = vld [vmem:[#allocation0 + $0x41] ss:$8 sm:$0xf]   ;;  %v482_v39 = vsel %vm448_vm0, %v480_v34, %v478_v37  ;;  %v500_v40 = vld [vmem:[#allocation0 + $0x42] ss:$8 sm:$0xf]  }
  0x18   :  { %v502_v41 = vld [vmem:[#allocation0 + $0x42] ss:$8 sm:$0xf0]   ;;  %v524_v42 = vld [vmem:[#allocation0 + $0x81] ss:$8 sm:$0xf0]   ;;  %v493_v44 = vsel %vm448_vm0, %v491_v35, %v489_v38 }
  0x19   :  { %483 = vrot.lane.b32.xlu1 %v482_v39, %s1031_s29  ;;  %v513_v43 = vld [vmem:[#allocation0 + $0x80] ss:$8 sm:$0xf0]   ;;  %v504_v45 = vsel %vm448_vm0, %v502_v41, %v500_v40  ;;  %v522_v46 = vld [vmem:[#allocation0 + $0x81] ss:$8 sm:$0xf]  }
  0x1a   :  { %461 = vrot.lane.b32.xlu0 %v460_v36, %s1031_s29  ;;  %v511_v47 = vld [vmem:[#allocation0 + $0x80] ss:$8 sm:$0xf]   ;;  %v868_v48 = vld [vmem:[%s1764_s0 + $0x74] sm:$0xf]  ;;  %v526_v54 = vsel %vm448_vm0, %v524_v42, %v522_v46 }
  0x1b   :  { %v869_v49 = vld [vmem:[%s1764_s0 + $0x70] sm:$0xf]  ;;  %v870_v50 = vld [vmem:[%s1764_s0 + $0x6c] sm:$0xf]  ;;  %18 = vst [vmem:[#allocation0 + $0xe8] sm:$0xf] %v868_v48  ;;  %v515_v55 = vsel %vm448_vm0, %v513_v43, %v511_v47 }
  0x1c   :  { %23 = vst [vmem:[#allocation0 + $0xe0] sm:$0xf] %v869_v49  ;;  %28 = vst [vmem:[#allocation0 + $0xd8] sm:$0xf] %v870_v50  ;;  %v871_v51 = vld [vmem:[%s1764_s0 + $0x68] sm:$0xf] }
  0x1d   :  { %v872_v52 = vld [vmem:[%s1764_s0 + $0x64] sm:$0xf]  ;;  %v873_v53 = vld [vmem:[%s1764_s0 + $0x60] sm:$0xf]  ;;  %505 = vrot.lane.b32.xlu1 %v504_v45, %s1031_s29  ;;  %33 = vst [vmem:[#allocation0 + $0xd0] sm:$0xf] %v871_v51 }
  0x1e   :  { %494 = vrot.lane.b32.xlu0 %v493_v44, %s1031_s29  ;;  %38 = vst [vmem:[#allocation0 + $0xc8] sm:$0xf] %v872_v52  ;;  %43 = vst [vmem:[#allocation0 + $0xc0] sm:$0xf] %v873_v53  ;;  %s1032_s0 = smov 64  }
  0x1f   :  { %v533_v56 = vld [vmem:[#allocation0 + $0x82] ss:$8 sm:$0xf]   ;;  %v576_v4 = vld [vmem:[#allocation0] ss:$8 sm:$0xf]  }
  0x20   :  { %v535_v57 = vld [vmem:[#allocation0 + $0x82] ss:$8 sm:$0xf0]   ;;  %v577_v5 = vld [vmem:[#allocation0] ss:$8 sm:$0xf0]  }
  0x21   :  { %527 = vrot.lane.b32.xlu1 %v526_v54, %s1031_s29  ;;  %v537_v58 = vsel %vm448_vm0, %v535_v57, %v533_v56  ;;  %v586_v6 = vld [vmem:[#allocation0 + $0x1] ss:$8 sm:$0xf]   ;;  %v579_v8 = vsel %vm448_vm0, %v577_v5, %v576_v4  ;;  %v597_v10 = vld [vmem:[#allocation0 + $0x2] ss:$8 sm:$0xf]  }
  0x22   :  { %516 = vrot.lane.b32.xlu0 %v515_v55, %s1031_s29  ;;  %v588_v7 = vld [vmem:[#allocation0 + $0x1] ss:$8 sm:$0xf0]   ;;  %v599_v11 = vld [vmem:[#allocation0 + $0x2] ss:$8 sm:$0xf0]  }
  0x23   :  { %v546_v59 = vld [vmem:[#allocation0 + $0xc0] ss:$8 sm:$0xf0]   ;;  %v557_v60 = vld [vmem:[#allocation0 + $0xc1] ss:$8 sm:$0xf0]   ;;  %v590_v9 = vsel %vm448_vm0, %v588_v7, %v586_v6  ;;  %v601_v14 = vsel %vm448_vm0, %v599_v11, %v597_v10 }
  0x24   :  { %v568_v1 = vld [vmem:[#allocation0 + $0xc2] ss:$8 sm:$0xf0]   ;;  %v608_v12 = vld [vmem:[#allocation0 + $0x40] ss:$8 sm:$0xf]  }
  0x25   :  { %v544_v61 = vld [vmem:[#allocation0 + $0xc0] ss:$8 sm:$0xf]   ;;  %v555_v62 = vld [vmem:[#allocation0 + $0xc1] ss:$8 sm:$0xf]  }
  0x26   :  { %538 = vrot.lane.b32.xlu0 %v537_v58, %s1031_s29  ;;  %v548_v63 = vsel %vm448_vm0, %v546_v59, %v544_v61  ;;  %v566_v0 = vld [vmem:[#allocation0 + $0xc2] ss:$8 sm:$0xf]   ;;  %v559_v2 = vsel %vm448_vm0, %v557_v60, %v555_v62  ;;  %v610_v13 = vld [vmem:[#allocation0 + $0x40] ss:$8 sm:$0xf0]  }
  0x27   :  { %549 = vrot.lane.b32.xlu1 %v548_v63, %s1031_s29  ;;  %v570_v3 = vsel %vm448_vm0, %v568_v1, %v566_v0  ;;  %v612_v15 = vsel %vm448_vm0, %v610_v13, %v608_v12  ;;  %v619_v16 = vld [vmem:[#allocation0 + $0x41] ss:$8 sm:$0xf]   ;;  %v630_v18 = vld [vmem:[#allocation0 + $0x42] ss:$8 sm:$0xf]  }
  0x28   :  { %v621_v17 = vld [vmem:[#allocation0 + $0x41] ss:$8 sm:$0xf0]   ;;  %v632_v19 = vld [vmem:[#allocation0 + $0x42] ss:$8 sm:$0xf0]  }
  0x29   :  { %v623_v20 = vsel %vm448_vm0, %v621_v17, %v619_v16  ;;  %v634_v21 = vsel %vm448_vm0, %v632_v19, %v630_v18  ;;  %v641_v22 = vld [vmem:[#allocation0 + $0x80] ss:$8 sm:$0xf]   ;;  %v652_v24 = vld [vmem:[#allocation0 + $0x81] ss:$8 sm:$0xf]  }
  0x2a   :  { %560 = vrot.lane.b32.xlu0 %v559_v2, %s1031_s29  ;;  %v643_v23 = vld [vmem:[#allocation0 + $0x80] ss:$8 sm:$0xf0]   ;;  %v654_v25 = vld [vmem:[#allocation0 + $0x81] ss:$8 sm:$0xf0]  }
  0x2b   :  { %571 = vrot.lane.b32.xlu1 %v570_v3, %s1031_s29  ;;  %v645_v26 = vsel %vm448_vm0, %v643_v23, %v641_v22  ;;  %v656_v27 = vsel %vm448_vm0, %v654_v25, %v652_v24  ;;  %v663_v28 = vld [vmem:[#allocation0 + $0x82] ss:$8 sm:$0xf]   ;;  %v674_v30 = vld [vmem:[#allocation0 + $0xc0] ss:$8 sm:$0xf]  }
  0x2c   :  { %v665_v29 = vld [vmem:[#allocation0 + $0x82] ss:$8 sm:$0xf0]   ;;  %v676_v31 = vld [vmem:[#allocation0 + $0xc0] ss:$8 sm:$0xf0]  }
  0x2d   :  { %v667_v32 = vsel %vm448_vm0, %v665_v29, %v663_v28  ;;  %v678_v33 = vsel %vm448_vm0, %v676_v31, %v674_v30  ;;  %v685_v34 = vld [vmem:[#allocation0 + $0xc1] ss:$8 sm:$0xf]   ;;  %v696_v36 = vld [vmem:[#allocation0 + $0xc2] ss:$8 sm:$0xf]  }
  0x2e   :  { %580 = vrot.lane.b32.xlu0 %v579_v8, %s1032_s0  ;;  %v687_v35 = vld [vmem:[#allocation0 + $0xc1] ss:$8 sm:$0xf0]   ;;  %v698_v37 = vld [vmem:[#allocation0 + $0xc2] ss:$8 sm:$0xf0]  }
  0x2f   :  { %591 = vrot.lane.b32.xlu1 %v590_v9, %s1032_s0  ;;  %v689_v38 = vsel %vm448_vm0, %v687_v35, %v685_v34  ;;  %v700_v39 = vsel %vm448_vm0, %v698_v37, %v696_v36  ;;  %v706_v40 = vld [vmem:[#allocation0] ss:$8 sm:$0xf]   ;;  %v716_v42 = vld [vmem:[#allocation0 + $0x1] ss:$8 sm:$0xf]  }
  0x30   :  { %v707_v41 = vld [vmem:[#allocation0] ss:$8 sm:$0xf0]   ;;  %v718_v43 = vld [vmem:[#allocation0 + $0x1] ss:$8 sm:$0xf0]  }
  0x31   :  { %v709_v44 = vsel %vm448_vm0, %v707_v41, %v706_v40  ;;  %v720_v45 = vsel %vm448_vm0, %v718_v43, %v716_v42  ;;  %v727_v46 = vld [vmem:[#allocation0 + $0x2] ss:$8 sm:$0xf]   ;;  %v738_v48 = vld [vmem:[#allocation0 + $0x40] ss:$8 sm:$0xf]  }
  0x32   :  { %602 = vrot.lane.b32.xlu0 %v601_v14, %s1032_s0  ;;  %v729_v47 = vld [vmem:[#allocation0 + $0x2] ss:$8 sm:$0xf0]   ;;  %v740_v49 = vld [vmem:[#allocation0 + $0x40] ss:$8 sm:$0xf0]  }
  0x33   :  { %613 = vrot.lane.b32.xlu1 %v612_v15, %s1032_s0  ;;  %v731_v50 = vsel %vm448_vm0, %v729_v47, %v727_v46  ;;  %v742_v51 = vsel %vm448_vm0, %v740_v49, %v738_v48  ;;  %v749_v52 = vld [vmem:[#allocation0 + $0x41] ss:$8 sm:$0xf]   ;;  %v760_v54 = vld [vmem:[#allocation0 + $0x42] ss:$8 sm:$0xf]  }
  0x34   :  { %v751_v53 = vld [vmem:[#allocation0 + $0x41] ss:$8 sm:$0xf0]   ;;  %v762_v55 = vld [vmem:[#allocation0 + $0x42] ss:$8 sm:$0xf0]  }
  0x35   :  { %v753_v56 = vsel %vm448_vm0, %v751_v53, %v749_v52  ;;  %v771_v57 = vld [vmem:[#allocation0 + $0x80] ss:$8 sm:$0xf]   ;;  %v764_v59 = vsel %vm448_vm0, %v762_v55, %v760_v54  ;;  %v782_v60 = vld [vmem:[#allocation0 + $0x81] ss:$8 sm:$0xf]  }
  0x36   :  { %624 = vrot.lane.b32.xlu0 %v623_v20, %s1032_s0  ;;  %v773_v58 = vld [vmem:[#allocation0 + $0x80] ss:$8 sm:$0xf0]   ;;  %v784_v61 = vld [vmem:[#allocation0 + $0x81] ss:$8 sm:$0xf0]  }
  0x37   :  { %635 = vrot.lane.b32.xlu1 %v634_v21, %s1032_s0  ;;  %v160_v62 = vld [vmem:[#allocation0] sm:$0x7]   ;;  %v168_v63 = vld [vmem:[#allocation0 + $0x8] sm:$0x7]   ;;  %v177_v0 = vld [vmem:[#allocation0 + $0x10] sm:$0x7]   ;;  %v775_v6 = vsel %vm448_vm0, %v773_v58, %v771_v57  ;;  %v786_v12 = vsel %vm448_vm0, %v784_v61, %v782_v60 }
  0x38   :  { %v1199_v1 = vld [vmem:[#allocation0 + $0x82] ss:$8 sm:$0xf]   ;;  %162 = vst.msk [vmem:[%s1765_s1] sm:$0x1] %vm161_vm1, %v160_v62  }
  0x39   :  { %v1201_v2 = vld [vmem:[#allocation0 + $0x82] ss:$8 sm:$0xf0]   ;;  %897 = vst.msk [vmem:[%s1765_s1 + $0x7f] sm:$0x2] %vm161_vm1, %v160_v62  }
  0x3a   :  { %646 = vrot.lane.b32.xlu0 %v645_v26, %s1032_s0  ;;  %898 = vst.msk [vmem:[%s1765_s1 + $0xfe] sm:$0x4] %vm161_vm1, %v160_v62   ;;  %899 = vst.msk [vmem:[%s1765_s1 + $0x4] sm:$0x1] %vm161_vm1, %v168_v63   ;;  %v186_v3 = vld [vmem:[#allocation0 + $0x18] sm:$0x7]   ;;  %v797_v24 = vsel %vm448_vm0, %v1201_v2, %v1199_v1 }
  0x3b   :  { %657 = vrot.lane.b32.xlu1 %v656_v27, %s1032_s0  ;;  %900 = vst.msk [vmem:[%s1765_s1 + $0x83] sm:$0x2] %vm161_vm1, %v168_v63   ;;  %901 = vst.msk [vmem:[%s1765_s1 + $0x102] sm:$0x4] %vm161_vm1, %v168_v63   ;;  %v195_v4 = vld [vmem:[#allocation0 + $0x20] sm:$0x7]  }
  0x3c   :  { %902 = vst.msk [vmem:[%s1765_s1 + $0x8] sm:$0x1] %vm161_vm1, %v177_v0   ;;  %903 = vst.msk [vmem:[%s1765_s1 + $0x87] sm:$0x2] %vm161_vm1, %v177_v0   ;;  %v204_v5 = vld [vmem:[#allocation0 + $0x28] sm:$0x7]  }
  0x3d   :  { %904 = vst.msk [vmem:[%s1765_s1 + $0x106] sm:$0x4] %vm161_vm1, %v177_v0   ;;  %v1241_v7 = vld [vmem:[#allocation0 + $0xc0] ss:$8 sm:$0xf]  }
  0x3e   :  { %668 = vrot.lane.b32.xlu0 %v667_v32, %s1032_s0  ;;  %v1243_v8 = vld [vmem:[#allocation0 + $0xc0] ss:$8 sm:$0xf0]   ;;  %905 = vst.msk [vmem:[%s1765_s1 + $0xc] sm:$0x1] %vm161_vm1, %v186_v3  }
  0x3f   :  { %679 = vrot.lane.b32.xlu1 %v678_v33, %s1032_s0  ;;  %906 = vst.msk [vmem:[%s1765_s1 + $0x8b] sm:$0x2] %vm161_vm1, %v186_v3   ;;  %907 = vst.msk [vmem:[%s1765_s1 + $0x10a] sm:$0x4] %vm161_vm1, %v186_v3   ;;  %v213_v9 = vld [vmem:[#allocation0 + $0x30] sm:$0x7]   ;;  %v808_v30 = vsel %vm448_vm0, %v1243_v8, %v1241_v7 }
  0x40   :  { %908 = vst.msk [vmem:[%s1765_s1 + $0x10] sm:$0x1] %vm161_vm1, %v195_v4   ;;  %909 = vst.msk [vmem:[%s1765_s1 + $0x8f] sm:$0x2] %vm161_vm1, %v195_v4   ;;  %v222_v10 = vld [vmem:[#allocation0 + $0x38] sm:$0x7]  }
  0x41   :  { %910 = vst.msk [vmem:[%s1765_s1 + $0x10e] sm:$0x4] %vm161_vm1, %v195_v4   ;;  %911 = vst.msk [vmem:[%s1765_s1 + $0x14] sm:$0x1] %vm161_vm1, %v204_v5   ;;  %v231_v11 = vld [vmem:[#allocation0 + $0x40] sm:$0x7]  }
  0x42   :  { %690 = vrot.lane.b32.xlu0 %v689_v38, %s1032_s0  ;;  %912 = vst.msk [vmem:[%s1765_s1 + $0x93] sm:$0x2] %vm161_vm1, %v204_v5   ;;  %913 = vst.msk [vmem:[%s1765_s1 + $0x112] sm:$0x4] %vm161_vm1, %v204_v5   ;;  %v240_v13 = vld [vmem:[#allocation0 + $0x48] sm:$0x7]  }
  0x43   :  { %701 = vrot.lane.b32.xlu1 %v700_v39, %s1032_s0  ;;  %914 = vst.msk [vmem:[%s1765_s1 + $0x18] sm:$0x1] %vm161_vm1, %v213_v9   ;;  %915 = vst.msk [vmem:[%s1765_s1 + $0x97] sm:$0x2] %vm161_vm1, %v213_v9   ;;  %v249_v14 = vld [vmem:[#allocation0 + $0x50] sm:$0x7]  }
  0x44   :  { %916 = vst.msk [vmem:[%s1765_s1 + $0x116] sm:$0x4] %vm161_vm1, %v213_v9   ;;  %917 = vst.msk [vmem:[%s1765_s1 + $0x1c] sm:$0x1] %vm161_vm1, %v222_v10   ;;  %v258_v15 = vld [vmem:[#allocation0 + $0x58] sm:$0x7]  }
  0x45   :  { %918 = vst.msk [vmem:[%s1765_s1 + $0x9b] sm:$0x2] %vm161_vm1, %v222_v10   ;;  %919 = vst.msk [vmem:[%s1765_s1 + $0x11a] sm:$0x4] %vm161_vm1, %v222_v10   ;;  %v267_v16 = vld [vmem:[#allocation0 + $0x60] sm:$0x7]  }
  0x46   :  { %710 = vrot.lane.b32.xlu0 %v709_v44, %s1033_s13  ;;  %920 = vst.msk [vmem:[%s1765_s1 + $0x20] sm:$0x1] %vm161_vm1, %v231_v11   ;;  %921 = vst.msk [vmem:[%s1765_s1 + $0x9f] sm:$0x2] %vm161_vm1, %v231_v11   ;;  %v276_v17 = vld [vmem:[#allocation0 + $0x68] sm:$0x7]  }
  0x47   :  { %721 = vrot.lane.b32.xlu1 %v720_v45, %s1033_s13  ;;  %922 = vst.msk [vmem:[%s1765_s1 + $0x11e] sm:$0x4] %vm161_vm1, %v231_v11   ;;  %923 = vst.msk [vmem:[%s1765_s1 + $0x24] sm:$0x1] %vm161_vm1, %v240_v13   ;;  %v285_v18 = vld [vmem:[#allocation0 + $0x70] sm:$0x7]  }
  0x48   :  { %924 = vst.msk [vmem:[%s1765_s1 + $0xa3] sm:$0x2] %vm161_vm1, %v240_v13   ;;  %925 = vst.msk [vmem:[%s1765_s1 + $0x122] sm:$0x4] %vm161_vm1, %v240_v13   ;;  %v294_v21 = vld [vmem:[#allocation0 + $0x78] sm:$0x7]  }
  0x49   :  { %926 = vst.msk [vmem:[%s1765_s1 + $0x28] sm:$0x1] %vm161_vm1, %v249_v14   ;;  %927 = vst.msk [vmem:[%s1765_s1 + $0xa7] sm:$0x2] %vm161_vm1, %v249_v14   ;;  %v303_v22 = vld [vmem:[#allocation0 + $0x80] sm:$0x7]  }
  0x4a   :  { %732 = vrot.lane.b32.xlu0 %v731_v50, %s1033_s13  ;;  %928 = vst.msk [vmem:[%s1765_s1 + $0x126] sm:$0x4] %vm161_vm1, %v249_v14   ;;  %929 = vst.msk [vmem:[%s1765_s1 + $0x2c] sm:$0x1] %vm161_vm1, %v258_v15   ;;  %v312_v23 = vld [vmem:[#allocation0 + $0x88] sm:$0x7]  }
  0x4b   :  { %743 = vrot.lane.b32.xlu1 %v742_v51, %s1033_s13  ;;  %930 = vst.msk [vmem:[%s1765_s1 + $0xab] sm:$0x2] %vm161_vm1, %v258_v15   ;;  %931 = vst.msk [vmem:[%s1765_s1 + $0x12a] sm:$0x4] %vm161_vm1, %v258_v15   ;;  %v321_v27 = vld [vmem:[#allocation0 + $0x90] sm:$0x7]  }
  0x4c   :  { %v1355_v19 = vld [vmem:[#allocation0 + $0xc1] ss:$8 sm:$0xf]   ;;  %932 = vst.msk [vmem:[%s1765_s1 + $0x30] sm:$0x1] %vm161_vm1, %v267_v16  }
  0x4d   :  { %v1357_v20 = vld [vmem:[#allocation0 + $0xc1] ss:$8 sm:$0xf0]   ;;  %933 = vst.msk [vmem:[%s1765_s1 + $0xaf] sm:$0x2] %vm161_vm1, %v267_v16  }
  0x4e   :  { %754 = vrot.lane.b32.xlu0 %v753_v56, %s1033_s13  ;;  %934 = vst.msk [vmem:[%s1765_s1 + $0x12e] sm:$0x4] %vm161_vm1, %v267_v16   ;;  %935 = vst.msk [vmem:[%s1765_s1 + $0x34] sm:$0x1] %vm161_vm1, %v276_v17   ;;  %v330_v28 = vld [vmem:[#allocation0 + $0x98] sm:$0x7]   ;;  %v819_v40 = vsel %vm448_vm0, %v1357_v20, %v1355_v19 }
  0x4f   :  { %765 = vrot.lane.b32.xlu1 %v764_v59, %s1033_s13  ;;  %936 = vst.msk [vmem:[%s1765_s1 + $0xb3] sm:$0x2] %vm161_vm1, %v276_v17   ;;  %937 = vst.msk [vmem:[%s1765_s1 + $0x132] sm:$0x4] %vm161_vm1, %v276_v17   ;;  %v339_v29 = vld [vmem:[#allocation0 + $0xa0] sm:$0x7]  }
  0x50   :  { %938 = vst.msk [vmem:[%s1765_s1 + $0x38] sm:$0x1] %vm161_vm1, %v285_v18   ;;  %939 = vst.msk [vmem:[%s1765_s1 + $0xb7] sm:$0x2] %vm161_vm1, %v285_v18   ;;  %v348_v31 = vld [vmem:[#allocation0 + $0xa8] sm:$0x7]  }
  0x51   :  { %940 = vst.msk [vmem:[%s1765_s1 + $0x136] sm:$0x4] %vm161_vm1, %v285_v18   ;;  %v1399_v25 = vld [vmem:[#allocation0 + $0xc2] ss:$8 sm:$0xf]  }
  0x52   :  { %776 = vrot.lane.b32.xlu0 %v775_v6, %s1033_s13  ;;  %v1401_v26 = vld [vmem:[#allocation0 + $0xc2] ss:$8 sm:$0xf0]   ;;  %941 = vst.msk [vmem:[%s1765_s1 + $0x3c] sm:$0x1] %vm161_vm1, %v294_v21  }
  0x53   :  { %787 = vrot.lane.b32.xlu1 %v786_v12, %s1033_s13  ;;  %942 = vst.msk [vmem:[%s1765_s1 + $0xbb] sm:$0x2] %vm161_vm1, %v294_v21   ;;  %943 = vst.msk [vmem:[%s1765_s1 + $0x13a] sm:$0x4] %vm161_vm1, %v294_v21   ;;  %v357_v32 = vld [vmem:[#allocation0 + $0xb0] sm:$0x7]   ;;  %v830_v43 = vsel %vm448_vm0, %v1401_v26, %v1399_v25 }
  0x54   :  { %944 = vst.msk [vmem:[%s1765_s1 + $0x40] sm:$0x1] %vm161_vm1, %v303_v22   ;;  %945 = vst.msk [vmem:[%s1765_s1 + $0xbf] sm:$0x2] %vm161_vm1, %v303_v22   ;;  %v366_v33 = vld [vmem:[#allocation0 + $0xb8] sm:$0x7]  }
  0x55   :  { %946 = vst.msk [vmem:[%s1765_s1 + $0x13e] sm:$0x4] %vm161_vm1, %v303_v22   ;;  %947 = vst.msk [vmem:[%s1765_s1 + $0x44] sm:$0x1] %vm161_vm1, %v312_v23   ;;  %v375_v34 = vld [vmem:[#allocation0 + $0xc0] sm:$0x7]  }
  0x56   :  { %948 = vst.msk [vmem:[%s1765_s1 + $0xc3] sm:$0x2] %vm161_vm1, %v312_v23   ;;  %949 = vst.msk [vmem:[%s1765_s1 + $0x142] sm:$0x4] %vm161_vm1, %v312_v23   ;;  %v384_v35 = vld [vmem:[#allocation0 + $0xc8] sm:$0x7]   ;;  %798 = vrot.lane.b32.xlu0 %v797_v24, %s1033_s13 }
  0x57   :  { %950 = vst.msk [vmem:[%s1765_s1 + $0x48] sm:$0x1] %vm161_vm1, %v321_v27   ;;  %951 = vst.msk [vmem:[%s1765_s1 + $0xc7] sm:$0x2] %vm161_vm1, %v321_v27   ;;  %v393_v36 = vld [vmem:[#allocation0 + $0xd0] sm:$0x7]   ;;  %809 = vrot.lane.b32.xlu1 %v808_v30, %s1033_s13 }
  0x58   :  { %952 = vst.msk [vmem:[%s1765_s1 + $0x146] sm:$0x4] %vm161_vm1, %v321_v27   ;;  %953 = vst.msk [vmem:[%s1765_s1 + $0x4c] sm:$0x1] %vm161_vm1, %v330_v28   ;;  %v402_v37 = vld [vmem:[#allocation0 + $0xd8] sm:$0x7]  }
  0x59   :  { %954 = vst.msk [vmem:[%s1765_s1 + $0xcb] sm:$0x2] %vm161_vm1, %v330_v28   ;;  %955 = vst.msk [vmem:[%s1765_s1 + $0x14a] sm:$0x4] %vm161_vm1, %v330_v28   ;;  %v411_v38 = vld [vmem:[#allocation0 + $0xe0] sm:$0x7]  }
  0x5a   :  { %956 = vst.msk [vmem:[%s1765_s1 + $0x50] sm:$0x1] %vm161_vm1, %v339_v29   ;;  %957 = vst.msk [vmem:[%s1765_s1 + $0xcf] sm:$0x2] %vm161_vm1, %v339_v29   ;;  %v420_v39 = vld [vmem:[#allocation0 + $0xe8] sm:$0x7]   ;;  %820 = vrot.lane.b32.xlu0 %v819_v40, %s1033_s13 }
  0x5b   :  { %958 = vst.msk [vmem:[%s1765_s1 + $0x14e] sm:$0x4] %vm161_vm1, %v339_v29   ;;  %959 = vst.msk [vmem:[%s1765_s1 + $0x54] sm:$0x1] %vm161_vm1, %v348_v31   ;;  %v429_v41 = vld [vmem:[#allocation0 + $0xf0] sm:$0x7]   ;;  %831 = vrot.lane.b32.xlu1 %v830_v43, %s1033_s13 }
  0x5c   :  { %960 = vst.msk [vmem:[%s1765_s1 + $0xd3] sm:$0x2] %vm161_vm1, %v348_v31   ;;  %961 = vst.msk [vmem:[%s1765_s1 + $0x152] sm:$0x4] %vm161_vm1, %v348_v31   ;;  %v438_v42 = vld [vmem:[#allocation0 + $0xf8] sm:$0x7]  }
  0x5d   :  { %962 = vst.msk [vmem:[%s1765_s1 + $0x58] sm:$0x1] %vm161_vm1, %v357_v32   ;;  %963 = vst.msk [vmem:[%s1765_s1 + $0xd7] sm:$0x2] %vm161_vm1, %v357_v32  }
  0x5e   :  { %964 = vst.msk [vmem:[%s1765_s1 + $0x156] sm:$0x4] %vm161_vm1, %v357_v32   ;;  %965 = vst.msk [vmem:[%s1765_s1 + $0x5c] sm:$0x1] %vm161_vm1, %v366_v33  }
  0x5f   :  { %966 = vst.msk [vmem:[%s1765_s1 + $0xdb] sm:$0x2] %vm161_vm1, %v366_v33   ;;  %967 = vst.msk [vmem:[%s1765_s1 + $0x15a] sm:$0x4] %vm161_vm1, %v366_v33  }
  0x60   :  { %968 = vst.msk [vmem:[%s1765_s1 + $0x60] sm:$0x1] %vm161_vm1, %v375_v34   ;;  %969 = vst.msk [vmem:[%s1765_s1 + $0xdf] sm:$0x2] %vm161_vm1, %v375_v34  }
  0x61   :  { %970 = vst.msk [vmem:[%s1765_s1 + $0x15e] sm:$0x4] %vm161_vm1, %v375_v34   ;;  %971 = vst.msk [vmem:[%s1765_s1 + $0x64] sm:$0x1] %vm161_vm1, %v384_v35  }
  0x62   :  { %972 = vst.msk [vmem:[%s1765_s1 + $0xe3] sm:$0x2] %vm161_vm1, %v384_v35   ;;  %973 = vst.msk [vmem:[%s1765_s1 + $0x162] sm:$0x4] %vm161_vm1, %v384_v35  }
  0x63   :  { %974 = vst.msk [vmem:[%s1765_s1 + $0x68] sm:$0x1] %vm161_vm1, %v393_v36   ;;  %975 = vst.msk [vmem:[%s1765_s1 + $0xe7] sm:$0x2] %vm161_vm1, %v393_v36  }
  0x64   :  { %976 = vst.msk [vmem:[%s1765_s1 + $0x166] sm:$0x4] %vm161_vm1, %v393_v36   ;;  %977 = vst.msk [vmem:[%s1765_s1 + $0x6c] sm:$0x1] %vm161_vm1, %v402_v37  }
  0x65   :  { %978 = vst.msk [vmem:[%s1765_s1 + $0xeb] sm:$0x2] %vm161_vm1, %v402_v37   ;;  %979 = vst.msk [vmem:[%s1765_s1 + $0x16a] sm:$0x4] %vm161_vm1, %v402_v37  }
  0x66   :  { %980 = vst.msk [vmem:[%s1765_s1 + $0x70] sm:$0x1] %vm161_vm1, %v411_v38   ;;  %981 = vst.msk [vmem:[%s1765_s1 + $0xef] sm:$0x2] %vm161_vm1, %v411_v38  }
  0x67   :  { %982 = vst.msk [vmem:[%s1765_s1 + $0x16e] sm:$0x4] %vm161_vm1, %v411_v38   ;;  %983 = vst.msk [vmem:[%s1765_s1 + $0x74] sm:$0x1] %vm161_vm1, %v420_v39  }
  0x68   :  { %984 = vst.msk [vmem:[%s1765_s1 + $0xf3] sm:$0x2] %vm161_vm1, %v420_v39   ;;  %985 = vst.msk [vmem:[%s1765_s1 + $0x172] sm:$0x4] %vm161_vm1, %v420_v39  }
  0x69   :  { %986 = vst.msk [vmem:[%s1765_s1 + $0x78] sm:$0x1] %vm161_vm1, %v429_v41   ;;  %987 = vst.msk [vmem:[%s1765_s1 + $0xf7] sm:$0x2] %vm161_vm1, %v429_v41  }
  0x6a   :  { %988 = vst.msk [vmem:[%s1765_s1 + $0x176] sm:$0x4] %vm161_vm1, %v429_v41   ;;  %989 = vst.msk [vmem:[%s1765_s1 + $0x7c] sm:$0x1] %vm161_vm1, %v438_v42  }
  0x6b   :  { %990 = vst.msk [vmem:[%s1765_s1 + $0xfb] sm:$0x2] %vm161_vm1, %v438_v42   ;;  %991 = vst.msk [vmem:[%s1765_s1 + $0x17a] sm:$0x4] %vm161_vm1, %v438_v42  }
  0x87   :  { %v473_v44 = vpop.permute.xlu1 %472  }
  0x88   :  { %v451_v45 = vpop.permute.xlu0 %450   ;;  %994 = vst.msk [vmem:[%s1765_s1 + $0x101] ss:$4 sm:$0xff] %vm161_vm1, %v473_v44  }
  0x89   :  { %992 = vst.msk [vmem:[%s1765_s1 + $0x1] ss:$4 sm:$0xff] %vm161_vm1, %v451_v45  }
  0x8b   :  { %v484_v47 = vpop.permute.xlu1 %483  }
  0x8c   :  { %v462_v46 = vpop.permute.xlu0 %461   ;;  %995 = vst.msk [vmem:[%s1765_s1 + $0x21] ss:$4 sm:$0xff] %vm161_vm1, %v484_v47  }
  0x8d   :  { %993 = vst.msk [vmem:[%s1765_s1 + $0x81] ss:$4 sm:$0xff] %vm161_vm1, %v462_v46  }
  0x8f   :  { %v506_v49 = vpop.permute.xlu1 %505  }
  0x90   :  { %v495_v48 = vpop.permute.xlu0 %494   ;;  %997 = vst.msk [vmem:[%s1765_s1 + $0x121] ss:$4 sm:$0xff] %vm161_vm1, %v506_v49  }
  0x91   :  { %996 = vst.msk [vmem:[%s1765_s1 + $0xa1] ss:$4 sm:$0xff] %vm161_vm1, %v495_v48  }
  0x93   :  { %v528_v50 = vpop.permute.xlu1 %527  }
  0x94   :  { %v517_v51 = vpop.permute.xlu0 %516   ;;  %999 = vst.msk [vmem:[%s1765_s1 + $0xc1] ss:$4 sm:$0xff] %vm161_vm1, %v528_v50  }
  0x95   :  { %998 = vst.msk [vmem:[%s1765_s1 + $0x41] ss:$4 sm:$0xff] %vm161_vm1, %v517_v51  }
  0x98   :  { %v539_v52 = vpop.permute.xlu0 %538  }
  0x99   :  { %1000 = vst.msk [vmem:[%s1765_s1 + $0x141] ss:$4 sm:$0xff] %vm161_vm1, %v539_v52   ;;  %v550_v53 = vpop.permute.xlu1 %549  }
  0x9a   :  { %1001 = vst.msk [vmem:[%s1765_s1 + $0x61] ss:$4 sm:$0xff] %vm161_vm1, %v550_v53  }
  0x9c   :  { %v561_v54 = vpop.permute.xlu0 %560  }
  0x9d   :  { %1002 = vst.msk [vmem:[%s1765_s1 + $0xe1] ss:$4 sm:$0xff] %vm161_vm1, %v561_v54   ;;  %v572_v55 = vpop.permute.xlu1 %571  }
  0x9e   :  { %1003 = vst.msk [vmem:[%s1765_s1 + $0x161] ss:$4 sm:$0xff] %vm161_vm1, %v572_v55  }
  0xa0   :  { %v581_v56 = vpop.permute.xlu0 %580  }
  0xa1   :  { %1004 = vst.msk [vmem:[%s1765_s1 + $0x2] ss:$4 sm:$0xff] %vm161_vm1, %v581_v56   ;;  %v592_v57 = vpop.permute.xlu1 %591  }
  0xa2   :  { %1005 = vst.msk [vmem:[%s1765_s1 + $0x82] ss:$4 sm:$0xff] %vm161_vm1, %v592_v57  }
  0xa4   :  { %v603_v58 = vpop.permute.xlu0 %602  }
  0xa5   :  { %1006 = vst.msk [vmem:[%s1765_s1 + $0x102] ss:$4 sm:$0xff] %vm161_vm1, %v603_v58   ;;  %v614_v59 = vpop.permute.xlu1 %613  }
  0xa6   :  { %1007 = vst.msk [vmem:[%s1765_s1 + $0x22] ss:$4 sm:$0xff] %vm161_vm1, %v614_v59  }
  0xa8   :  { %v625_v60 = vpop.permute.xlu0 %624  }
  0xa9   :  { %1008 = vst.msk [vmem:[%s1765_s1 + $0xa2] ss:$4 sm:$0xff] %vm161_vm1, %v625_v60   ;;  %v636_v61 = vpop.permute.xlu1 %635  }
  0xaa   :  { %1009 = vst.msk [vmem:[%s1765_s1 + $0x122] ss:$4 sm:$0xff] %vm161_vm1, %v636_v61  }
  0xac   :  { %v647_v62 = vpop.permute.xlu0 %646  }
  0xad   :  { %1010 = vst.msk [vmem:[%s1765_s1 + $0x42] ss:$4 sm:$0xff] %vm161_vm1, %v647_v62   ;;  %v658_v63 = vpop.permute.xlu1 %657  }
  0xae   :  { %1011 = vst.msk [vmem:[%s1765_s1 + $0xc2] ss:$4 sm:$0xff] %vm161_vm1, %v658_v63  }
  0xb0   :  { %v669_v0 = vpop.permute.xlu0 %668  }
  0xb1   :  { %1012 = vst.msk [vmem:[%s1765_s1 + $0x142] ss:$4 sm:$0xff] %vm161_vm1, %v669_v0   ;;  %v680_v1 = vpop.permute.xlu1 %679  }
  0xb2   :  { %1013 = vst.msk [vmem:[%s1765_s1 + $0x62] ss:$4 sm:$0xff] %vm161_vm1, %v680_v1  }
  0xb4   :  { %v691_v2 = vpop.permute.xlu0 %690  }
  0xb5   :  { %1014 = vst.msk [vmem:[%s1765_s1 + $0xe2] ss:$4 sm:$0xff] %vm161_vm1, %v691_v2   ;;  %v702_v3 = vpop.permute.xlu1 %701  }
  0xb6   :  { %1015 = vst.msk [vmem:[%s1765_s1 + $0x162] ss:$4 sm:$0xff] %vm161_vm1, %v702_v3  }
  0xb8   :  { %v711_v4 = vpop.permute.xlu0 %710  }
  0xb9   :  { %1016 = vst.msk [vmem:[%s1765_s1 + $0x3] ss:$4 sm:$0xff] %vm161_vm1, %v711_v4   ;;  %v722_v5 = vpop.permute.xlu1 %721  }
  0xba   :  { %1017 = vst.msk [vmem:[%s1765_s1 + $0x83] ss:$4 sm:$0xff] %vm161_vm1, %v722_v5  }
  0xbc   :  { %v733_v6 = vpop.permute.xlu0 %732  }
  0xbd   :  { %1018 = vst.msk [vmem:[%s1765_s1 + $0x103] ss:$4 sm:$0xff] %vm161_vm1, %v733_v6   ;;  %v744_v7 = vpop.permute.xlu1 %743  }
  0xbe   :  { %1019 = vst.msk [vmem:[%s1765_s1 + $0x23] ss:$4 sm:$0xff] %vm161_vm1, %v744_v7  }
  0xc0   :  { %v755_v8 = vpop.permute.xlu0 %754  }
  0xc1   :  { %1020 = vst.msk [vmem:[%s1765_s1 + $0xa3] ss:$4 sm:$0xff] %vm161_vm1, %v755_v8   ;;  %v766_v9 = vpop.permute.xlu1 %765  }
  0xc2   :  { %1021 = vst.msk [vmem:[%s1765_s1 + $0x123] ss:$4 sm:$0xff] %vm161_vm1, %v766_v9  }
  0xc4   :  { %v777_v10 = vpop.permute.xlu0 %776  }
  0xc5   :  { %1022 = vst.msk [vmem:[%s1765_s1 + $0x43] ss:$4 sm:$0xff] %vm161_vm1, %v777_v10   ;;  %v788_v11 = vpop.permute.xlu1 %787  }
  0xc6   :  { %1023 = vst.msk [vmem:[%s1765_s1 + $0xc3] ss:$4 sm:$0xff] %vm161_vm1, %v788_v11  }
  0xc8   :  { %v799_v12 = vpop.permute.xlu0 %798  }
  0xc9   :  { %1024 = vst.msk [vmem:[%s1765_s1 + $0x143] ss:$4 sm:$0xff] %vm161_vm1, %v799_v12   ;;  %v810_v13 = vpop.permute.xlu1 %809  }
  0xca   :  { %1025 = vst.msk [vmem:[%s1765_s1 + $0x63] ss:$4 sm:$0xff] %vm161_vm1, %v810_v13  }
  0xcc   :  { %v821_v14 = vpop.permute.xlu0 %820  }
  0xcd   :  { %1026 = vst.msk [vmem:[%s1765_s1 + $0xe3] ss:$4 sm:$0xff] %vm161_vm1, %v821_v14   ;;  %v832_v15 = vpop.permute.xlu1 %831  }
  0xce   :  { %1027 = vst.msk [vmem:[%s1765_s1 + $0x163] ss:$4 sm:$0xff] %vm161_vm1, %v832_v15  }

// kernel: squeeze.6
= control target key start
LH: loop header
LB: loop body
LE: loop exit
PB: predicated region body
PF: predicated region fallthrough
CT: control target
= control target key end

     0   :  { %s2697_s20 = smov 192  ;;  %vm450_vm0 = vcmask 1047558   ;;  %vm484_vm1 = vcmask 1047555   ;;  %vm467_vm2 = vcmask 1047557   ;;  %s2663_s27 = smov 96   ;;  %vm161_vm3 = vcmask 261120   ;;  %s3701_s0 = inlined_call_operand.vmem [shape: f32[1,3,4096], index: 0, kind: input, shape index: {}]   ;;  %s3702_s1 = inlined_call_operand.vmem [shape: f32[3,64,2,32], index: 1, kind: output, shape index: {}]  }
   0x1   :  { %v2466_v0 = vld [vmem:[%s3701_s0 + $0xc] sm:$0xf]  ;;  %v2467_v1 = vld [vmem:[%s3701_s0 + $0x8] sm:$0xf]  ;;  %v2468_v2 = vld [vmem:[%s3701_s0 + $0x4] sm:$0xf] }
   0x2   :  { %148 = vst [vmem:[#allocation1 + $0x18] sm:$0xf] %v2466_v0  ;;  %153 = vst [vmem:[#allocation1 + $0x10] sm:$0xf] %v2467_v1  ;;  %v158_v3 = vld [vmem:[%s3701_s0] sm:$0xf] }
   0x3   :  { %157 = vst [vmem:[#allocation1 + $0x8] sm:$0xf] %v2468_v2  ;;  %159 = vst [vmem:[#allocation1] sm:$0xf] %v158_v3  ;;  %v2462_v4 = vld [vmem:[%s3701_s0 + $0x1c] sm:$0xf] }
   0x4   :  { %v2463_v5 = vld [vmem:[%s3701_s0 + $0x18] sm:$0xf]  ;;  %v2464_v6 = vld [vmem:[%s3701_s0 + $0x14] sm:$0xf]  ;;  %128 = vst [vmem:[#allocation1 + $0x38] sm:$0xf] %v2462_v4 }
   0x5   :  { %133 = vst [vmem:[#allocation1 + $0x30] sm:$0xf] %v2463_v5  ;;  %138 = vst [vmem:[#allocation1 + $0x28] sm:$0xf] %v2464_v6  ;;  %v2465_v7 = vld [vmem:[%s3701_s0 + $0x10] sm:$0xf] }
   0x6   :  { %v2458_v8 = vld [vmem:[%s3701_s0 + $0x2c] sm:$0xf]  ;;  %143 = vst [vmem:[#allocation1 + $0x20] sm:$0xf] %v2465_v7  ;;  %v2459_v9 = vld [vmem:[%s3701_s0 + $0x28] sm:$0xf] }
   0x7   :  { %108 = vst [vmem:[#allocation1 + $0x58] sm:$0xf] %v2458_v8  ;;  %v2460_v10 = vld [vmem:[%s3701_s0 + $0x24] sm:$0xf]  ;;  %v2461_v11 = vld [vmem:[%s3701_s0 + $0x20] sm:$0xf] }
   0x8   :  { %113 = vst [vmem:[#allocation1 + $0x50] sm:$0xf] %v2459_v9  ;;  %118 = vst [vmem:[#allocation1 + $0x48] sm:$0xf] %v2460_v10  ;;  %v2456_v12 = vld [vmem:[%s3701_s0 + $0x34] sm:$0xf] }
   0x9   :  { %123 = vst [vmem:[#allocation1 + $0x40] sm:$0xf] %v2461_v11  ;;  %v2457_v13 = vld [vmem:[%s3701_s0 + $0x30] sm:$0xf]  ;;  %v2454_v14 = vld [vmem:[%s3701_s0 + $0x3c] sm:$0xf] }
   0xa   :  { %98 = vst [vmem:[#allocation1 + $0x68] sm:$0xf] %v2456_v12  ;;  %103 = vst [vmem:[#allocation1 + $0x60] sm:$0xf] %v2457_v13  ;;  %v2455_v15 = vld [vmem:[%s3701_s0 + $0x38] sm:$0xf] }
   0xb   :  { %88 = vst [vmem:[#allocation1 + $0x78] sm:$0xf] %v2454_v14  ;;  %v2450_v16 = vld [vmem:[%s3701_s0 + $0x4c] sm:$0xf]  ;;  %v2451_v17 = vld [vmem:[%s3701_s0 + $0x48] sm:$0xf] }
   0xc   :  { %93 = vst [vmem:[#allocation1 + $0x70] sm:$0xf] %v2455_v15  ;;  %68 = vst [vmem:[#allocation1 + $0x98] sm:$0xf] %v2450_v16  ;;  %v2452_v18 = vld [vmem:[%s3701_s0 + $0x44] sm:$0xf] }
   0xd   :  { %73 = vst [vmem:[#allocation1 + $0x90] sm:$0xf] %v2451_v17  ;;  %v2453_v19 = vld [vmem:[%s3701_s0 + $0x40] sm:$0xf]  ;;  %78 = vst [vmem:[#allocation1 + $0x88] sm:$0xf] %v2452_v18 }
   0xe   :  { %83 = vst [vmem:[#allocation1 + $0x80] sm:$0xf] %v2453_v19  ;;  %v2448_v20 = vld [vmem:[%s3701_s0 + $0x54] sm:$0xf]  ;;  %v2449_v21 = vld [vmem:[%s3701_s0 + $0x50] sm:$0xf] }
   0xf   :  { %v2446_v22 = vld [vmem:[%s3701_s0 + $0x5c] sm:$0xf]  ;;  %v2747_v23 = vld.sshfl [vmem:[#allocation1] sm:$0xff pattern:$0xaaa29180]   ;;  %s552_s28 = smov 192 }
  0x10   :  { %v449_v24 = vld [vmem:[#allocation1 - $0x20] ss:$8 sm:%s2697_s20]   ;;  %58 = vst [vmem:[#allocation1 + $0xa8] sm:$0xf] %v2448_v20  ;;  %63 = vst [vmem:[#allocation1 + $0xa0] sm:$0xf] %v2449_v21 }
  0x11   :  { %48 = vst [vmem:[#allocation1 + $0xb8] sm:$0xf] %v2446_v22  ;;  %v451_v25 = vsel %vm450_vm0, %v449_v24, %v2747_v23  ;;  %v483_v26 = vld.sshfl [vmem:[#allocation1 + $0x31] sm:$0xff pattern:$0x91807777]   ;;  %s500_s20 = smov 192 }
  0x12   :  { %v2447_v27 = vld [vmem:[%s3701_s0 + $0x58] sm:$0xf]  ;;  %452 = vrot.lane.b32.xlu0 %v451_v25, %s2663_s27  ;;  %v481_v28 = vld.sshfl [vmem:[#allocation1 + $0x22] sm:$0xff pattern:$0xeeeeee80]   ;;  %s655_s16 = smov 192 }
  0x13   :  { %v464_v29 = vld.sshfl [vmem:[#allocation1 + $0x11] sm:$0xff pattern:$0xffff9180]   ;;  %53 = vst [vmem:[#allocation1 + $0xb0] sm:$0xf] %v2447_v27  ;;  %v2757_v30 = vsel %vm484_vm1, %v483_v26, %v481_v28  ;;  %s707_s17 = smov 192 }
  0x14   :  { %v466_v31 = vld.sshfl [vmem:[#allocation1 + $0x21] sm:$0xff pattern:$0x80777777]   ;;  %486 = vrot.lane.b32.xlu1 %v2757_v30, %s2663_s27  ;;  %v516_v35 = vld.sshfl [vmem:[#allocation1 + $0x51] sm:$0xff pattern:$0xffff9180]  }
  0x15   :  { %v2759_v32 = vld.sshfl [vmem:[#allocation1 + $0x40] sm:$0xff pattern:$0xaaa29180]   ;;  %v2764_v33 = vsel %vm467_vm2, %v466_v31, %v464_v29  ;;  %v535_v39 = vld.sshfl [vmem:[#allocation1 + $0x71] sm:$0xff pattern:$0x91807777]  }
  0x16   :  { %v501_v34 = vld [vmem:[#allocation1 + $0x20] ss:$8 sm:%s500_s20]   ;;  %469 = vrot.lane.b32.xlu0 %v2764_v33, %s2663_s27  ;;  %v2442_v43 = vld [vmem:[%s3701_s0 + $0x6c] sm:$0xf]  ;;  %v2444_v49 = vld [vmem:[%s3701_s0 + $0x64] sm:$0xf] }
  0x17   :  { %v503_v36 = vsel %vm450_vm0, %v501_v34, %v2759_v32  ;;  %v518_v37 = vld.sshfl [vmem:[#allocation1 + $0x61] sm:$0xff pattern:$0x80777777]   ;;  %v533_v38 = vld.sshfl [vmem:[#allocation1 + $0x62] sm:$0xff pattern:$0xeeeeee80]  }
  0x18   :  { %v2771_v40 = vsel %vm467_vm2, %v518_v37, %v516_v35  ;;  %v2773_v41 = vld.sshfl [vmem:[#allocation1 + $0x80] sm:$0xff pattern:$0xaaa29180]   ;;  %504 = vrot.lane.b32.xlu1 %v503_v36, %s2663_s27  ;;  %v2780_v44 = vsel %vm484_vm1, %v535_v39, %v533_v38  ;;  %28 = vst [vmem:[#allocation1 + $0xd8] sm:$0xf] %v2442_v43  ;;  %s2852_s18 = smov 192 }
  0x19   :  { %v553_v42 = vld [vmem:[#allocation1 + $0x60] ss:$8 sm:%s552_s28]   ;;  %38 = vst [vmem:[#allocation1 + $0xc8] sm:$0xf] %v2444_v49  ;;  %v2440_v52 = vld [vmem:[%s3701_s0 + $0x74] sm:$0xf] }
  0x1a   :  { %v568_v45 = vld.sshfl [vmem:[#allocation1 + $0x91] sm:$0xff pattern:$0xffff9180]   ;;  %v570_v46 = vld.sshfl [vmem:[#allocation1 + $0xa1] sm:$0xff pattern:$0x80777777]   ;;  %521 = vrot.lane.b32.xlu0 %v2771_v40, %s2663_s27  ;;  %v555_v51 = vsel %vm450_vm0, %v553_v42, %v2773_v41 }
  0x1b   :  { %v585_v47 = vld.sshfl [vmem:[#allocation1 + $0xa2] sm:$0xff pattern:$0xeeeeee80]   ;;  %v2438_v54 = vld [vmem:[%s3701_s0 + $0x7c] sm:$0xf]  ;;  %v2810_v57 = vsel %vm467_vm2, %v570_v46, %v568_v45  ;;  %s2664_s19 = smov 64  }
  0x1c   :  { %v2443_v48 = vld [vmem:[%s3701_s0 + $0x68] sm:$0xf]  ;;  %v2445_v50 = vld [vmem:[%s3701_s0 + $0x60] sm:$0xf]  ;;  %v2441_v53 = vld [vmem:[%s3701_s0 + $0x70] sm:$0xf]  ;;  %538 = vrot.lane.b32.xlu1 %v2780_v44, %s2663_s27 }
  0x1d   :  { %33 = vst [vmem:[#allocation1 + $0xd0] sm:$0xf] %v2443_v48  ;;  %43 = vst [vmem:[#allocation1 + $0xc0] sm:$0xf] %v2445_v50  ;;  %v2439_v56 = vld [vmem:[%s3701_s0 + $0x78] sm:$0xf] }
  0x1e   :  { %v587_v55 = vld.sshfl [vmem:[#allocation1 + $0xb1] sm:$0xff pattern:$0x91807777]   ;;  %18 = vst [vmem:[#allocation1 + $0xe8] sm:$0xf] %v2440_v52  ;;  %556 = vrot.lane.b32.xlu0 %v555_v51, %s2663_s27  ;;  %s604_s0 = smov 192 }
  0x1f   :  { %23 = vst [vmem:[#allocation1 + $0xe0] sm:$0xf] %v2441_v53  ;;  %8 = vst [vmem:[#allocation1 + $0xf8] sm:$0xf] %v2438_v54  ;;  %v160_v58 = vld [vmem:[#allocation1] sm:$0x7]   ;;  %v2814_v59 = vsel %vm484_vm1, %v587_v55, %v585_v47 }
  0x20   :  { %13 = vst [vmem:[#allocation1 + $0xf0] sm:$0xf] %v2439_v56  ;;  %162 = vst.msk [vmem:[#allocation0] sm:$0x1] %vm161_vm3, %v160_v58   ;;  %573 = vrot.lane.b32.xlu1 %v2810_v57, %s2663_s27  ;;  %v168_v60 = vld [vmem:[#allocation1 + $0x8] sm:$0x7]  }
  0x21   :  { %164 = vst.msk [vmem:[#allocation0 + $0x1ff] sm:$0x2] %vm161_vm3, %v160_v58   ;;  %166 = vst.msk [vmem:[#allocation0 + $0x3fe] sm:$0x4] %vm161_vm3, %v160_v58   ;;  %v177_v61 = vld [vmem:[#allocation1 + $0x10] sm:$0x7]  }
  0x22   :  { %v186_v62 = vld [vmem:[#allocation1 + $0x18] sm:$0x7]   ;;  %171 = vst.msk [vmem:[#allocation0 + $0x10] sm:$0x1] %vm161_vm3, %v168_v60   ;;  %173 = vst.msk [vmem:[#allocation0 + $0x20f] sm:$0x2] %vm161_vm3, %v168_v60   ;;  %590 = vrot.lane.b32.xlu0 %v2814_v59, %s2663_s27 }
  0x23   :  { %175 = vst.msk [vmem:[#allocation0 + $0x40e] sm:$0x4] %vm161_vm3, %v168_v60   ;;  %180 = vst.msk [vmem:[#allocation0 + $0x20] sm:$0x1] %vm161_vm3, %v177_v61   ;;  %v195_v63 = vld [vmem:[#allocation1 + $0x20] sm:$0x7]  }
  0x24   :  { %189 = vst.msk [vmem:[#allocation0 + $0x30] sm:$0x1] %vm161_vm3, %v186_v62   ;;  %182 = vst.msk [vmem:[#allocation0 + $0x21f] sm:$0x2] %vm161_vm3, %v177_v61   ;;  %v204_v0 = vld [vmem:[#allocation1 + $0x28] sm:$0x7]  }
  0x25   :  { %184 = vst.msk [vmem:[#allocation0 + $0x41e] sm:$0x4] %vm161_vm3, %v177_v61   ;;  %191 = vst.msk [vmem:[#allocation0 + $0x22f] sm:$0x2] %vm161_vm3, %v186_v62   ;;  %v213_v1 = vld [vmem:[#allocation1 + $0x30] sm:$0x7]  }
  0x26   :  { %193 = vst.msk [vmem:[#allocation0 + $0x42e] sm:$0x4] %vm161_vm3, %v186_v62   ;;  %v2832_v2 = vld.sshfl [vmem:[#allocation1 + $0xc0] sm:$0xff pattern:$0xaaa29180]   ;;  %s811_s21 = smov 192 }
  0x27   :  { %v605_v3 = vld [vmem:[#allocation1 + $0xa0] ss:$8 sm:%s604_s0]   ;;  %202 = vst.msk [vmem:[#allocation0 + $0x43e] sm:$0x4] %vm161_vm3, %v195_v63   ;;  %211 = vst.msk [vmem:[#allocation0 + $0x44e] sm:$0x4] %vm161_vm3, %v204_v0  }
  0x28   :  { %v656_v4 = vld [vmem:[#allocation1 - $0x20] ss:$8 sm:%s655_s16]   ;;  %216 = vst.msk [vmem:[#allocation0 + $0x60] sm:$0x1] %vm161_vm3, %v213_v1   ;;  %218 = vst.msk [vmem:[#allocation0 + $0x25f] sm:$0x2] %vm161_vm3, %v213_v1   ;;  %v607_v5 = vsel %vm450_vm0, %v605_v3, %v2832_v2 }
  0x29   :  { %220 = vst.msk [vmem:[#allocation0 + $0x45e] sm:$0x4] %vm161_vm3, %v213_v1   ;;  %198 = vst.msk [vmem:[#allocation0 + $0x40] sm:$0x1] %vm161_vm3, %v195_v63   ;;  %608 = vrot.lane.b32.xlu1 %v607_v5, %s2663_s27  ;;  %v222_v12 = vld [vmem:[#allocation1 + $0x38] sm:$0x7]   ;;  %v658_v16 = vsel %vm450_vm0, %v656_v4, %v2747_v23 }
  0x2a   :  { %200 = vst.msk [vmem:[#allocation0 + $0x23f] sm:$0x2] %vm161_vm3, %v195_v63   ;;  %207 = vst.msk [vmem:[#allocation0 + $0x50] sm:$0x1] %vm161_vm3, %v204_v0   ;;  %v231_v13 = vld [vmem:[#allocation1 + $0x40] sm:$0x7]  }
  0x2b   :  { %209 = vst.msk [vmem:[#allocation0 + $0x24f] sm:$0x2] %vm161_vm3, %v204_v0   ;;  %v620_v6 = vld.sshfl [vmem:[#allocation1 + $0xd1] sm:$0xff pattern:$0xffff9180]   ;;  %s862_s22 = smov 192 }
  0x2c   :  { %v622_v7 = vld.sshfl [vmem:[#allocation1 + $0xe1] sm:$0xff pattern:$0x80777777]   ;;  %v637_v9 = vld.sshfl [vmem:[#allocation1 + $0xe2] sm:$0xff pattern:$0xeeeeee80]  }
  0x2d   :  { %v2847_v8 = vsel %vm467_vm2, %v622_v7, %v620_v6  ;;  %v639_v10 = vld.sshfl [vmem:[#allocation1 + $0xf1] sm:$0xff pattern:$0x91807777]   ;;  %225 = vst.msk [vmem:[#allocation0 + $0x70] sm:$0x1] %vm161_vm3, %v222_v12   ;;  %s914_s23 = smov 192 }
  0x2e   :  { %v2850_v11 = vsel %vm484_vm1, %v639_v10, %v637_v9  ;;  %625 = vrot.lane.b32.xlu0 %v2847_v8, %s2663_s27  ;;  %227 = vst.msk [vmem:[#allocation0 + $0x26f] sm:$0x2] %vm161_vm3, %v222_v12   ;;  %229 = vst.msk [vmem:[#allocation0 + $0x46e] sm:$0x4] %vm161_vm3, %v222_v12   ;;  %v240_v14 = vld [vmem:[#allocation1 + $0x48] sm:$0x7]  }
  0x2f   :  { %v249_v15 = vld [vmem:[#allocation1 + $0x50] sm:$0x7]   ;;  %234 = vst.msk [vmem:[#allocation0 + $0x80] sm:$0x1] %vm161_vm3, %v231_v13   ;;  %236 = vst.msk [vmem:[#allocation0 + $0x27f] sm:$0x2] %vm161_vm3, %v231_v13   ;;  %642 = vrot.lane.b32.xlu1 %v2850_v11, %s2663_s27 }
  0x30   :  { %238 = vst.msk [vmem:[#allocation0 + $0x47e] sm:$0x4] %vm161_vm3, %v231_v13   ;;  %243 = vst.msk [vmem:[#allocation0 + $0x90] sm:$0x1] %vm161_vm3, %v240_v14   ;;  %v258_v17 = vld [vmem:[#allocation1 + $0x58] sm:$0x7]  }
  0x31   :  { %245 = vst.msk [vmem:[#allocation0 + $0x28f] sm:$0x2] %vm161_vm3, %v240_v14   ;;  %247 = vst.msk [vmem:[#allocation0 + $0x48e] sm:$0x4] %vm161_vm3, %v240_v14   ;;  %v267_v18 = vld [vmem:[#allocation1 + $0x60] sm:$0x7]  }
  0x32   :  { %252 = vst.msk [vmem:[#allocation0 + $0xa0] sm:$0x1] %vm161_vm3, %v249_v15   ;;  %254 = vst.msk [vmem:[#allocation0 + $0x29f] sm:$0x2] %vm161_vm3, %v249_v15   ;;  %v276_v19 = vld [vmem:[#allocation1 + $0x68] sm:$0x7]   ;;  %659 = vrot.lane.b32.xlu0 %v658_v16, %s2664_s19 }
  0x33   :  { %256 = vst.msk [vmem:[#allocation0 + $0x49e] sm:$0x4] %vm161_vm3, %v249_v15   ;;  %v2872_v20 = vld [vmem:[#allocation1 + $0x20] ss:$8 sm:%s707_s17]   ;;  %261 = vst.msk [vmem:[#allocation0 + $0xb0] sm:$0x1] %vm161_vm3, %v258_v17   ;;  %676 = vrot.lane.b32.xlu1 %v2764_v33, %s2664_s19 }
  0x34   :  { %263 = vst.msk [vmem:[#allocation0 + $0x2af] sm:$0x2] %vm161_vm3, %v258_v17   ;;  %265 = vst.msk [vmem:[#allocation0 + $0x4ae] sm:$0x4] %vm161_vm3, %v258_v17   ;;  %v285_v21 = vld [vmem:[#allocation1 + $0x70] sm:$0x7]   ;;  %v710_v42 = vsel %vm450_vm0, %v2872_v20, %v2759_v32 }
  0x35   :  { %270 = vst.msk [vmem:[#allocation0 + $0xc0] sm:$0x1] %vm161_vm3, %v267_v18   ;;  %272 = vst.msk [vmem:[#allocation0 + $0x2bf] sm:$0x2] %vm161_vm3, %v267_v18   ;;  %v294_v22 = vld [vmem:[#allocation1 + $0x78] sm:$0x7]  }
  0x36   :  { %279 = vst.msk [vmem:[#allocation0 + $0xd0] sm:$0x1] %vm161_vm3, %v276_v19   ;;  %281 = vst.msk [vmem:[#allocation0 + $0x2cf] sm:$0x2] %vm161_vm3, %v276_v19   ;;  %v303_v24 = vld [vmem:[#allocation1 + $0x80] sm:$0x7]   ;;  %693 = vrot.lane.b32.xlu0 %v2757_v30, %s2664_s19 }
  0x37   :  { %274 = vst.msk [vmem:[#allocation0 + $0x4be] sm:$0x4] %vm161_vm3, %v267_v18   ;;  %283 = vst.msk [vmem:[#allocation0 + $0x4ce] sm:$0x4] %vm161_vm3, %v276_v19   ;;  %v312_v25 = vld [vmem:[#allocation1 + $0x88] sm:$0x7]   ;;  %711 = vrot.lane.b32.xlu1 %v710_v42, %s2664_s19 }
  0x38   :  { %288 = vst.msk [vmem:[#allocation0 + $0xe0] sm:$0x1] %vm161_vm3, %v285_v21   ;;  %290 = vst.msk [vmem:[#allocation0 + $0x2df] sm:$0x2] %vm161_vm3, %v285_v21   ;;  %v321_v26 = vld [vmem:[#allocation1 + $0x90] sm:$0x7]  }
  0x39   :  { %292 = vst.msk [vmem:[#allocation0 + $0x4de] sm:$0x4] %vm161_vm3, %v285_v21   ;;  %297 = vst.msk [vmem:[#allocation0 + $0xf0] sm:$0x1] %vm161_vm3, %v294_v22   ;;  %v330_v27 = vld [vmem:[#allocation1 + $0x98] sm:$0x7]  }
  0x3a   :  { %299 = vst.msk [vmem:[#allocation0 + $0x2ef] sm:$0x2] %vm161_vm3, %v294_v22   ;;  %301 = vst.msk [vmem:[#allocation0 + $0x4ee] sm:$0x4] %vm161_vm3, %v294_v22   ;;  %v339_v28 = vld [vmem:[#allocation1 + $0xa0] sm:$0x7]   ;;  %728 = vrot.lane.b32.xlu0 %v2771_v40, %s2664_s19 }
  0x3b   :  { %306 = vst.msk [vmem:[#allocation0 + $0x100] sm:$0x1] %vm161_vm3, %v303_v24   ;;  %308 = vst.msk [vmem:[#allocation0 + $0x2ff] sm:$0x2] %vm161_vm3, %v303_v24   ;;  %v348_v29 = vld [vmem:[#allocation1 + $0xa8] sm:$0x7]   ;;  %745 = vrot.lane.b32.xlu1 %v2780_v44, %s2664_s19 }
  0x3c   :  { %310 = vst.msk [vmem:[#allocation0 + $0x4fe] sm:$0x4] %vm161_vm3, %v303_v24   ;;  %315 = vst.msk [vmem:[#allocation0 + $0x110] sm:$0x1] %vm161_vm3, %v312_v25   ;;  %v357_v31 = vld [vmem:[#allocation1 + $0xb0] sm:$0x7]  }
  0x3d   :  { %317 = vst.msk [vmem:[#allocation0 + $0x30f] sm:$0x2] %vm161_vm3, %v312_v25   ;;  %319 = vst.msk [vmem:[#allocation0 + $0x50e] sm:$0x4] %vm161_vm3, %v312_v25   ;;  %v366_v34 = vld [vmem:[#allocation1 + $0xb8] sm:$0x7]  }
  0x3e   :  { %324 = vst.msk [vmem:[#allocation0 + $0x120] sm:$0x1] %vm161_vm3, %v321_v26   ;;  %333 = vst.msk [vmem:[#allocation0 + $0x130] sm:$0x1] %vm161_vm3, %v330_v27   ;;  %v375_v35 = vld [vmem:[#allocation1 + $0xc0] sm:$0x7]  }
  0x3f   :  { %326 = vst.msk [vmem:[#allocation0 + $0x31f] sm:$0x2] %vm161_vm3, %v321_v26   ;;  %328 = vst.msk [vmem:[#allocation0 + $0x51e] sm:$0x4] %vm161_vm3, %v321_v26   ;;  %v384_v36 = vld [vmem:[#allocation1 + $0xc8] sm:$0x7]   ;;  %780 = vrot.lane.b32.xlu1 %v2810_v57, %s2664_s19 }
  0x40   :  { %335 = vst.msk [vmem:[#allocation0 + $0x32f] sm:$0x2] %vm161_vm3, %v330_v27   ;;  %337 = vst.msk [vmem:[#allocation0 + $0x52e] sm:$0x4] %vm161_vm3, %v330_v27   ;;  %v393_v37 = vld [vmem:[#allocation1 + $0xd0] sm:$0x7]  }
  0x41   :  { %342 = vst.msk [vmem:[#allocation0 + $0x140] sm:$0x1] %vm161_vm3, %v339_v28   ;;  %344 = vst.msk [vmem:[#allocation0 + $0x33f] sm:$0x2] %vm161_vm3, %v339_v28   ;;  %v402_v38 = vld [vmem:[#allocation1 + $0xd8] sm:$0x7]  }
  0x42   :  { %351 = vst.msk [vmem:[#allocation0 + $0x150] sm:$0x1] %vm161_vm3, %v348_v29   ;;  %353 = vst.msk [vmem:[#allocation0 + $0x34f] sm:$0x2] %vm161_vm3, %v348_v29   ;;  %v411_v39 = vld [vmem:[#allocation1 + $0xe0] sm:$0x7]  }
  0x43   :  { %346 = vst.msk [vmem:[#allocation0 + $0x53e] sm:$0x4] %vm161_vm3, %v339_v28   ;;  %355 = vst.msk [vmem:[#allocation0 + $0x54e] sm:$0x4] %vm161_vm3, %v348_v29   ;;  %v420_v43 = vld [vmem:[#allocation1 + $0xe8] sm:$0x7]  }
  0x44   :  { %360 = vst.msk [vmem:[#allocation0 + $0x160] sm:$0x1] %vm161_vm3, %v357_v31   ;;  %362 = vst.msk [vmem:[#allocation0 + $0x35f] sm:$0x2] %vm161_vm3, %v357_v31   ;;  %v429_v45 = vld [vmem:[#allocation1 + $0xf0] sm:$0x7]  }
  0x45   :  { %364 = vst.msk [vmem:[#allocation0 + $0x55e] sm:$0x4] %vm161_vm3, %v357_v31   ;;  %369 = vst.msk [vmem:[#allocation0 + $0x170] sm:$0x1] %vm161_vm3, %v366_v34   ;;  %v438_v46 = vld [vmem:[#allocation1 + $0xf8] sm:$0x7]  }
  0x46   :  { %371 = vst.msk [vmem:[#allocation0 + $0x36f] sm:$0x2] %vm161_vm3, %v366_v34   ;;  %373 = vst.msk [vmem:[#allocation0 + $0x56e] sm:$0x4] %vm161_vm3, %v366_v34   ;;  %v760_v47 = vld [vmem:[#allocation1 + $0x60] ss:$8 sm:%s2852_s18]  }
  0x47   :  { %378 = vst.msk [vmem:[#allocation0 + $0x180] sm:$0x1] %vm161_vm3, %v375_v35   ;;  %380 = vst.msk [vmem:[#allocation0 + $0x37f] sm:$0x2] %vm161_vm3, %v375_v35   ;;  %v762_v48 = vsel %vm450_vm0, %v760_v47, %v2773_v41  ;;  %v812_v49 = vld [vmem:[#allocation1 + $0xa0] ss:$8 sm:%s811_s21]  }
  0x48   :  { %382 = vst.msk [vmem:[#allocation0 + $0x57e] sm:$0x4] %vm161_vm3, %v375_v35   ;;  %387 = vst.msk [vmem:[#allocation0 + $0x190] sm:$0x1] %vm161_vm3, %v384_v36   ;;  %763 = vrot.lane.b32.xlu0 %v762_v48, %s2664_s19  ;;  %v814_v50 = vsel %vm450_vm0, %v812_v49, %v2832_v2  ;;  %v863_v51 = vld [vmem:[#allocation1 - $0x20] ss:$8 sm:%s862_s22]  }
  0x49   :  { %389 = vst.msk [vmem:[#allocation0 + $0x38f] sm:$0x2] %vm161_vm3, %v384_v36   ;;  %391 = vst.msk [vmem:[#allocation0 + $0x58e] sm:$0x4] %vm161_vm3, %v384_v36   ;;  %815 = vrot.lane.b32.xlu1 %v814_v50, %s2664_s19  ;;  %v865_v23 = vsel %vm450_vm0, %v863_v51, %v2747_v23  ;;  %s2665_s24 = smov 32   ;;  %s966_s20 = smov 192 }
  0x4a   :  { %396 = vst.msk [vmem:[#allocation0 + $0x1a0] sm:$0x1] %vm161_vm3, %v393_v37   ;;  %405 = vst.msk [vmem:[#allocation0 + $0x1b0] sm:$0x1] %vm161_vm3, %v402_v38   ;;  %v915_v52 = vld [vmem:[#allocation1 + $0x20] ss:$8 sm:%s914_s23]  }
  0x4b   :  { %398 = vst.msk [vmem:[#allocation0 + $0x39f] sm:$0x2] %vm161_vm3, %v393_v37   ;;  %400 = vst.msk [vmem:[#allocation0 + $0x59e] sm:$0x4] %vm161_vm3, %v393_v37   ;;  %v917_v32 = vsel %vm450_vm0, %v915_v52, %v2759_v32  ;;  %s1018_s25 = smov 192 }
  0x4c   :  { %407 = vst.msk [vmem:[#allocation0 + $0x3af] sm:$0x2] %vm161_vm3, %v402_v38   ;;  %409 = vst.msk [vmem:[#allocation0 + $0x5ae] sm:$0x4] %vm161_vm3, %v402_v38   ;;  %797 = vrot.lane.b32.xlu0 %v2814_v59, %s2664_s19 }
  0x4d   :  { %414 = vst.msk [vmem:[#allocation0 + $0x1c0] sm:$0x1] %vm161_vm3, %v411_v39   ;;  %416 = vst.msk [vmem:[#allocation0 + $0x3bf] sm:$0x2] %vm161_vm3, %v411_v39   ;;  %849 = vrot.lane.b32.xlu1 %v2850_v11, %s2664_s19 }
  0x4e   :  { %418 = vst.msk [vmem:[#allocation0 + $0x5be] sm:$0x4] %vm161_vm3, %v411_v39   ;;  %423 = vst.msk [vmem:[#allocation0 + $0x1d0] sm:$0x1] %vm161_vm3, %v420_v43  }
  0x4f   :  { %425 = vst.msk [vmem:[#allocation0 + $0x3cf] sm:$0x2] %vm161_vm3, %v420_v43   ;;  %427 = vst.msk [vmem:[#allocation0 + $0x5ce] sm:$0x4] %vm161_vm3, %v420_v43  }
  0x50   :  { %432 = vst.msk [vmem:[#allocation0 + $0x1e0] sm:$0x1] %vm161_vm3, %v429_v45   ;;  %434 = vst.msk [vmem:[#allocation0 + $0x3df] sm:$0x2] %vm161_vm3, %v429_v45   ;;  %832 = vrot.lane.b32.xlu0 %v2847_v8, %s2664_s19 }
  0x51   :  { %436 = vst.msk [vmem:[#allocation0 + $0x5de] sm:$0x4] %vm161_vm3, %v429_v45   ;;  %441 = vst.msk [vmem:[#allocation0 + $0x1f0] sm:$0x1] %vm161_vm3, %v438_v46   ;;  %883 = vrot.lane.b32.xlu1 %v2764_v33, %s2665_s24 }
  0x52   :  { %443 = vst.msk [vmem:[#allocation0 + $0x3ef] sm:$0x2] %vm161_vm3, %v438_v46   ;;  %445 = vst.msk [vmem:[#allocation0 + $0x5ee] sm:$0x4] %vm161_vm3, %v438_v46  }
  0x54   :  { %866 = vrot.lane.b32.xlu0 %v865_v23, %s2665_s24 }
  0x55   :  { %918 = vrot.lane.b32.xlu1 %v917_v32, %s2665_s24 }
  0x58   :  { %900 = vrot.lane.b32.xlu0 %v2757_v30, %s2665_s24  ;;  %v967_v30 = vld [vmem:[#allocation1 + $0x60] ss:$8 sm:%s966_s20]  }
  0x59   :  { %v969_v33 = vsel %vm450_vm0, %v967_v30, %v2773_v41  ;;  %952 = vrot.lane.b32.xlu1 %v2780_v44, %s2665_s24 }
  0x5c   :  { %935 = vrot.lane.b32.xlu0 %v2771_v40, %s2665_s24  ;;  %v1019_v40 = vld [vmem:[#allocation1 + $0xa0] ss:$8 sm:%s1018_s25]  }
  0x5d   :  { %987 = vrot.lane.b32.xlu1 %v2810_v57, %s2665_s24  ;;  %v1021_v41 = vsel %vm450_vm0, %v1019_v40, %v2832_v2 }
  0x60   :  { %970 = vrot.lane.b32.xlu0 %v969_v33, %s2665_s24 }
  0x61   :  { %1022 = vrot.lane.b32.xlu1 %v1021_v41, %s2665_s24 }
  0x64   :  { %1004 = vrot.lane.b32.xlu0 %v2814_v59, %s2665_s24 }
  0x65   :  { %1056 = vrot.lane.b32.xlu1 %v2850_v11, %s2665_s24 }
  0x68   :  { %1039 = vrot.lane.b32.xlu0 %v2847_v8, %s2665_s24 }
  0x84   :  { %v453_v44 = vpop.permute.xlu0 %452  }
  0x85   :  { %456 = vst.msk [vmem:[#allocation0 + $0x1] ss:$16 sm:$0x3] %vm161_vm3, %v453_v44   ;;  %458 = vst.msk [vmem:[#allocation0 + $0x1e1] ss:$16 sm:$0xc] %vm161_vm3, %v453_v44  }
  0x86   :  { %460 = vst.msk [vmem:[#allocation0 + $0x3c1] ss:$16 sm:$0x30] %vm161_vm3, %v453_v44   ;;  %462 = vst.msk [vmem:[#allocation0 - $0x3f] ss:$16 sm:$0xc0] %vm161_vm3, %v453_v44   ;;  %v487_v53 = vpop.permute.xlu1 %486  }
  0x87   :  { %490 = vst.msk [vmem:[#allocation0 + $0x441] ss:$16 sm:$0x3] %vm161_vm3, %v487_v53   ;;  %492 = vst.msk [vmem:[#allocation0 + $0x41] ss:$16 sm:$0xc] %vm161_vm3, %v487_v53  }
  0x88   :  { %494 = vst.msk [vmem:[#allocation0 + $0x221] ss:$16 sm:$0x30] %vm161_vm3, %v487_v53   ;;  %496 = vst.msk [vmem:[#allocation0 + $0x401] ss:$16 sm:$0xc0] %vm161_vm3, %v487_v53   ;;  %v470_v54 = vpop.permute.xlu0 %469  }
  0x89   :  { %473 = vst.msk [vmem:[#allocation0 + $0x221] ss:$16 sm:$0x3] %vm161_vm3, %v470_v54   ;;  %475 = vst.msk [vmem:[#allocation0 + $0x401] ss:$16 sm:$0xc] %vm161_vm3, %v470_v54  }
  0x8a   :  { %477 = vst.msk [vmem:[#allocation0 + $0x1] ss:$16 sm:$0x30] %vm161_vm3, %v470_v54   ;;  %479 = vst.msk [vmem:[#allocation0 + $0x1e1] ss:$16 sm:$0xc0] %vm161_vm3, %v470_v54   ;;  %v505_v55 = vpop.permute.xlu1 %504  }
  0x8b   :  { %508 = vst.msk [vmem:[#allocation0 + $0x81] ss:$16 sm:$0x3] %vm161_vm3, %v505_v55   ;;  %510 = vst.msk [vmem:[#allocation0 + $0x261] ss:$16 sm:$0xc] %vm161_vm3, %v505_v55  }
  0x8c   :  { %512 = vst.msk [vmem:[#allocation0 + $0x441] ss:$16 sm:$0x30] %vm161_vm3, %v505_v55   ;;  %514 = vst.msk [vmem:[#allocation0 + $0x41] ss:$16 sm:$0xc0] %vm161_vm3, %v505_v55   ;;  %v522_v59 = vpop.permute.xlu0 %521  }
  0x8d   :  { %v1070_v56 = vld [vmem:[#allocation0] sm:$0x3]  ;;  %v1079_v57 = vld [vmem:[#allocation0 + $0x10] sm:$0x3] }
  0x8e   :  { %v1091_v58 = vld [vmem:[#allocation0 + $0x20] sm:$0x3]  ;;  %1072 = vst [vmem:[%s3702_s1] sm:$0x3] %v1070_v56  ;;  %2470 = vst [vmem:[%s3702_s1 + $0x4] sm:$0x3] %v1079_v57  ;;  %v539_v2 = vpop.permute.xlu1 %538  }
  0x8f   :  { %2472 = vst [vmem:[%s3702_s1 + $0x8] sm:$0x3] %v1091_v58  ;;  %v1103_v60 = vld [vmem:[#allocation0 + $0x30] sm:$0x3]  ;;  %v1451_v61 = vld [vmem:[#allocation0 + $0x200] sm:$0x3] }
  0x90   :  { %v1463_v62 = vld [vmem:[#allocation0 + $0x210] sm:$0x3]  ;;  %525 = vst.msk [vmem:[#allocation0 + $0x2a1] ss:$16 sm:$0x3] %vm161_vm3, %v522_v59   ;;  %v557_v9 = vpop.permute.xlu0 %556  }
  0x91   :  { %527 = vst.msk [vmem:[#allocation0 + $0x481] ss:$16 sm:$0xc] %vm161_vm3, %v522_v59   ;;  %529 = vst.msk [vmem:[#allocation0 + $0x81] ss:$16 sm:$0x30] %vm161_vm3, %v522_v59  }
  0x92   :  { %531 = vst.msk [vmem:[#allocation0 + $0x261] ss:$16 sm:$0xc0] %vm161_vm3, %v522_v59   ;;  %2474 = vst [vmem:[%s3702_s1 + $0xc] sm:$0x3] %v1103_v60  ;;  %v574_v16 = vpop.permute.xlu1 %573  }
  0x93   :  { %2532 = vst [vmem:[%s3702_s1 + $0x80] sm:$0x3] %v1451_v61  ;;  %2534 = vst [vmem:[%s3702_s1 + $0x84] sm:$0x3] %v1463_v62  ;;  %v1835_v63 = vld [vmem:[#allocation0 + $0x400] sm:$0x3] }
  0x94   :  { %v1847_v0 = vld [vmem:[#allocation0 + $0x410] sm:$0x3]  ;;  %v1139_v1 = vld [vmem:[#allocation0 + $0x60] sm:$0x3]  ;;  %2596 = vst [vmem:[%s3702_s1 + $0x100] sm:$0x3] %v1835_v63  ;;  %v591_v24 = vpop.permute.xlu0 %590  }
  0x95   :  { %2598 = vst [vmem:[%s3702_s1 + $0x104] sm:$0x3] %v1847_v0  ;;  %2480 = vst [vmem:[%s3702_s1 + $0x18] sm:$0x3] %v1139_v1  ;;  %v1151_v3 = vld [vmem:[#allocation0 + $0x70] sm:$0x3] }
  0x96   :  { %v1523_v4 = vld [vmem:[#allocation0 + $0x260] sm:$0x3]  ;;  %v1535_v5 = vld [vmem:[#allocation0 + $0x270] sm:$0x3]  ;;  %2482 = vst [vmem:[%s3702_s1 + $0x1c] sm:$0x3] %v1151_v3 }
  0x97   :  { %542 = vst.msk [vmem:[#allocation0 + $0x4c1] ss:$16 sm:$0x3] %vm161_vm3, %v539_v2   ;;  %544 = vst.msk [vmem:[#allocation0 + $0xc1] ss:$16 sm:$0xc] %vm161_vm3, %v539_v2  }
  0x98   :  { %546 = vst.msk [vmem:[#allocation0 + $0x2a1] ss:$16 sm:$0x30] %vm161_vm3, %v539_v2   ;;  %548 = vst.msk [vmem:[#allocation0 + $0x481] ss:$16 sm:$0xc0] %vm161_vm3, %v539_v2  }
  0x99   :  { %2544 = vst [vmem:[%s3702_s1 + $0x98] sm:$0x3] %v1523_v4  ;;  %2546 = vst [vmem:[%s3702_s1 + $0x9c] sm:$0x3] %v1535_v5  ;;  %v1883_v6 = vld [vmem:[#allocation0 + $0x440] sm:$0x3] }
  0x9a   :  { %v1895_v7 = vld [vmem:[#allocation0 + $0x450] sm:$0x3]  ;;  %v1907_v8 = vld [vmem:[#allocation0 + $0x460] sm:$0x3]  ;;  %2604 = vst [vmem:[%s3702_s1 + $0x110] sm:$0x3] %v1883_v6 }
  0x9b   :  { %2606 = vst [vmem:[%s3702_s1 + $0x114] sm:$0x3] %v1895_v7  ;;  %2608 = vst [vmem:[%s3702_s1 + $0x118] sm:$0x3] %v1907_v8  ;;  %v1919_v10 = vld [vmem:[#allocation0 + $0x470] sm:$0x3]  ;;  %v609_v34 = vpop.permute.xlu1 %608  }
  0x9c   :  { %v1115_v11 = vld [vmem:[#allocation0 + $0x40] sm:$0x3]  ;;  %v1127_v12 = vld [vmem:[#allocation0 + $0x50] sm:$0x3]  ;;  %2610 = vst [vmem:[%s3702_s1 + $0x11c] sm:$0x3] %v1919_v10 }
  0x9d   :  { %560 = vst.msk [vmem:[#allocation0 + $0x101] ss:$16 sm:$0x3] %vm161_vm3, %v557_v9   ;;  %562 = vst.msk [vmem:[#allocation0 + $0x2e1] ss:$16 sm:$0xc] %vm161_vm3, %v557_v9  }
  0x9e   :  { %564 = vst.msk [vmem:[#allocation0 + $0x4c1] ss:$16 sm:$0x30] %vm161_vm3, %v557_v9   ;;  %566 = vst.msk [vmem:[#allocation0 + $0xc1] ss:$16 sm:$0xc0] %vm161_vm3, %v557_v9  }
  0x9f   :  { %2476 = vst [vmem:[%s3702_s1 + $0x10] sm:$0x3] %v1115_v11  ;;  %2478 = vst [vmem:[%s3702_s1 + $0x14] sm:$0x3] %v1127_v12  ;;  %v1475_v13 = vld [vmem:[#allocation0 + $0x220] sm:$0x3] }
  0xa0   :  { %v1487_v14 = vld [vmem:[#allocation0 + $0x230] sm:$0x3]  ;;  %v1499_v15 = vld [vmem:[#allocation0 + $0x240] sm:$0x3]  ;;  %2536 = vst [vmem:[%s3702_s1 + $0x88] sm:$0x3] %v1475_v13  ;;  %v626_v43 = vpop.permute.xlu0 %625  }
  0xa1   :  { %2538 = vst [vmem:[%s3702_s1 + $0x8c] sm:$0x3] %v1487_v14  ;;  %2540 = vst [vmem:[%s3702_s1 + $0x90] sm:$0x3] %v1499_v15  ;;  %v1511_v17 = vld [vmem:[#allocation0 + $0x250] sm:$0x3]  ;;  %v643_v51 = vpop.permute.xlu1 %642  }
  0xa2   :  { %v1859_v18 = vld [vmem:[#allocation0 + $0x420] sm:$0x3]  ;;  %v1871_v19 = vld [vmem:[#allocation0 + $0x430] sm:$0x3]  ;;  %2542 = vst [vmem:[%s3702_s1 + $0x94] sm:$0x3] %v1511_v17 }
  0xa3   :  { %577 = vst.msk [vmem:[#allocation0 + $0x321] ss:$16 sm:$0x3] %vm161_vm3, %v574_v16   ;;  %579 = vst.msk [vmem:[#allocation0 + $0x501] ss:$16 sm:$0xc] %vm161_vm3, %v574_v16  }
  0xa4   :  { %581 = vst.msk [vmem:[#allocation0 + $0x101] ss:$16 sm:$0x30] %vm161_vm3, %v574_v16   ;;  %583 = vst.msk [vmem:[#allocation0 + $0x2e1] ss:$16 sm:$0xc0] %vm161_vm3, %v574_v16   ;;  %v660_v41 = vpop.permute.xlu0 %659  }
  0xa5   :  { %2600 = vst [vmem:[%s3702_s1 + $0x108] sm:$0x3] %v1859_v18  ;;  %2602 = vst [vmem:[%s3702_s1 + $0x10c] sm:$0x3] %v1871_v19  ;;  %v1163_v20 = vld [vmem:[#allocation0 + $0x80] sm:$0x3]  ;;  %v677_v58 = vpop.permute.xlu1 %676  }
  0xa6   :  { %v1175_v21 = vld [vmem:[#allocation0 + $0x90] sm:$0x3]  ;;  %v1187_v22 = vld [vmem:[#allocation0 + $0xa0] sm:$0x3]  ;;  %2484 = vst [vmem:[%s3702_s1 + $0x20] sm:$0x3] %v1163_v20 }
  0xa7   :  { %2486 = vst [vmem:[%s3702_s1 + $0x24] sm:$0x3] %v1175_v21  ;;  %2488 = vst [vmem:[%s3702_s1 + $0x28] sm:$0x3] %v1187_v22  ;;  %v1199_v25 = vld [vmem:[#allocation0 + $0xb0] sm:$0x3] }
  0xa8   :  { %v1547_v26 = vld [vmem:[#allocation0 + $0x280] sm:$0x3]  ;;  %v1559_v27 = vld [vmem:[#allocation0 + $0x290] sm:$0x3]  ;;  %2490 = vst [vmem:[%s3702_s1 + $0x2c] sm:$0x3] %v1199_v25  ;;  %v694_v1 = vpop.permute.xlu0 %693  }
  0xa9   :  { %594 = vst.msk [vmem:[#allocation0 + $0x541] ss:$16 sm:$0x3] %vm161_vm3, %v591_v24   ;;  %596 = vst.msk [vmem:[#allocation0 + $0x141] ss:$16 sm:$0xc] %vm161_vm3, %v591_v24   ;;  %v712_v8 = vpop.permute.xlu1 %711  }
  0xaa   :  { %598 = vst.msk [vmem:[#allocation0 + $0x321] ss:$16 sm:$0x30] %vm161_vm3, %v591_v24   ;;  %600 = vst.msk [vmem:[#allocation0 + $0x501] ss:$16 sm:$0xc0] %vm161_vm3, %v591_v24  }
  0xab   :  { %2548 = vst [vmem:[%s3702_s1 + $0xa0] sm:$0x3] %v1547_v26  ;;  %2550 = vst [vmem:[%s3702_s1 + $0xa4] sm:$0x3] %v1559_v27  ;;  %v1931_v28 = vld [vmem:[#allocation0 + $0x480] sm:$0x3] }
  0xac   :  { %v1943_v29 = vld [vmem:[#allocation0 + $0x490] sm:$0x3]  ;;  %v1211_v31 = vld [vmem:[#allocation0 + $0xc0] sm:$0x3]  ;;  %2612 = vst [vmem:[%s3702_s1 + $0x120] sm:$0x3] %v1931_v28  ;;  %v729_v15 = vpop.permute.xlu0 %728  }
  0xad   :  { %2614 = vst [vmem:[%s3702_s1 + $0x124] sm:$0x3] %v1943_v29  ;;  %2492 = vst [vmem:[%s3702_s1 + $0x30] sm:$0x3] %v1211_v31  ;;  %v1223_v35 = vld [vmem:[#allocation0 + $0xd0] sm:$0x3]  ;;  %v746_v22 = vpop.permute.xlu1 %745  }
  0xae   :  { %v1571_v36 = vld [vmem:[#allocation0 + $0x2a0] sm:$0x3]  ;;  %v1583_v37 = vld [vmem:[#allocation0 + $0x2b0] sm:$0x3]  ;;  %2494 = vst [vmem:[%s3702_s1 + $0x34] sm:$0x3] %v1223_v35 }
  0xaf   :  { %612 = vst.msk [vmem:[#allocation0 + $0x181] ss:$16 sm:$0x3] %vm161_vm3, %v609_v34   ;;  %614 = vst.msk [vmem:[#allocation0 + $0x361] ss:$16 sm:$0xc] %vm161_vm3, %v609_v34  }
  0xb0   :  { %616 = vst.msk [vmem:[#allocation0 + $0x541] ss:$16 sm:$0x30] %vm161_vm3, %v609_v34   ;;  %618 = vst.msk [vmem:[#allocation0 + $0x141] ss:$16 sm:$0xc0] %vm161_vm3, %v609_v34  }
  0xb1   :  { %2552 = vst [vmem:[%s3702_s1 + $0xa8] sm:$0x3] %v1571_v36  ;;  %2554 = vst [vmem:[%s3702_s1 + $0xac] sm:$0x3] %v1583_v37  ;;  %v1595_v38 = vld [vmem:[#allocation0 + $0x2c0] sm:$0x3] }
  0xb2   :  { %v1607_v39 = vld [vmem:[#allocation0 + $0x2d0] sm:$0x3]  ;;  %v1955_v42 = vld [vmem:[#allocation0 + $0x4a0] sm:$0x3]  ;;  %2556 = vst [vmem:[%s3702_s1 + $0xb0] sm:$0x3] %v1595_v38 }
  0xb3   :  { %2558 = vst [vmem:[%s3702_s1 + $0xb4] sm:$0x3] %v1607_v39  ;;  %2616 = vst [vmem:[%s3702_s1 + $0x128] sm:$0x3] %v1955_v42  ;;  %v1967_v45 = vld [vmem:[#allocation0 + $0x4b0] sm:$0x3]  ;;  %v781_v42 = vpop.permute.xlu1 %780  }
  0xb4   :  { %v1235_v46 = vld [vmem:[#allocation0 + $0xe0] sm:$0x3]  ;;  %v1247_v47 = vld [vmem:[#allocation0 + $0xf0] sm:$0x3]  ;;  %2618 = vst [vmem:[%s3702_s1 + $0x12c] sm:$0x3] %v1967_v45 }
  0xb5   :  { %629 = vst.msk [vmem:[#allocation0 + $0x3a1] ss:$16 sm:$0x3] %vm161_vm3, %v626_v43   ;;  %631 = vst.msk [vmem:[#allocation0 + $0x581] ss:$16 sm:$0xc] %vm161_vm3, %v626_v43  }
  0xb6   :  { %633 = vst.msk [vmem:[#allocation0 + $0x181] ss:$16 sm:$0x30] %vm161_vm3, %v626_v43   ;;  %635 = vst.msk [vmem:[#allocation0 + $0x361] ss:$16 sm:$0xc0] %vm161_vm3, %v626_v43  }
  0xb7   :  { %2496 = vst [vmem:[%s3702_s1 + $0x38] sm:$0x3] %v1235_v46  ;;  %2498 = vst [vmem:[%s3702_s1 + $0x3c] sm:$0x3] %v1247_v47  ;;  %v1619_v48 = vld [vmem:[#allocation0 + $0x2e0] sm:$0x3] }
  0xb8   :  { %v1631_v49 = vld [vmem:[#allocation0 + $0x2f0] sm:$0x3]  ;;  %v1979_v50 = vld [vmem:[#allocation0 + $0x4c0] sm:$0x3]  ;;  %2560 = vst [vmem:[%s3702_s1 + $0xb8] sm:$0x3] %v1619_v48 }
  0xb9   :  { %2562 = vst [vmem:[%s3702_s1 + $0xbc] sm:$0x3] %v1631_v49  ;;  %2620 = vst [vmem:[%s3702_s1 + $0x130] sm:$0x3] %v1979_v50  ;;  %v1991_v23 = vld [vmem:[#allocation0 + $0x4d0] sm:$0x3] }
  0xba   :  { %v2003_v52 = vld [vmem:[#allocation0 + $0x4e0] sm:$0x3]  ;;  %v2015_v32 = vld [vmem:[#allocation0 + $0x4f0] sm:$0x3]  ;;  %2622 = vst [vmem:[%s3702_s1 + $0x134] sm:$0x3] %v1991_v23  ;;  %v764_v31 = vpop.permute.xlu0 %763  }
  0xbb   :  { %646 = vst.msk [vmem:[#allocation0 + $0x5c1] ss:$16 sm:$0x3] %vm161_vm3, %v643_v51   ;;  %648 = vst.msk [vmem:[#allocation0 + $0x1c1] ss:$16 sm:$0xc] %vm161_vm3, %v643_v51   ;;  %v816_v48 = vpop.permute.xlu1 %815  }
  0xbc   :  { %650 = vst.msk [vmem:[#allocation0 + $0x3a1] ss:$16 sm:$0x30] %vm161_vm3, %v643_v51   ;;  %652 = vst.msk [vmem:[#allocation0 + $0x581] ss:$16 sm:$0xc0] %vm161_vm3, %v643_v51  }
  0xbd   :  { %2624 = vst [vmem:[%s3702_s1 + $0x138] sm:$0x3] %v2003_v52  ;;  %2626 = vst [vmem:[%s3702_s1 + $0x13c] sm:$0x3] %v2015_v32  ;;  %v1259_v30 = vld [vmem:[#allocation0 + $0x100] sm:$0x3] }
  0xbe   :  { %v1271_v33 = vld [vmem:[#allocation0 + $0x110] sm:$0x3]  ;;  %v1283_v40 = vld [vmem:[#allocation0 + $0x120] sm:$0x3]  ;;  %2500 = vst [vmem:[%s3702_s1 + $0x40] sm:$0x3] %v1259_v30  ;;  %v798_v47 = vpop.permute.xlu0 %797  }
  0xbf   :  { %2502 = vst [vmem:[%s3702_s1 + $0x44] sm:$0x3] %v1271_v33  ;;  %2504 = vst [vmem:[%s3702_s1 + $0x48] sm:$0x3] %v1283_v40  ;;  %v1295_v44 = vld [vmem:[#allocation0 + $0x130] sm:$0x3]  ;;  %v850_v50 = vpop.permute.xlu1 %849  }
  0xc0   :  { %v1643_v53 = vld [vmem:[#allocation0 + $0x300] sm:$0x3]  ;;  %v1655_v54 = vld [vmem:[#allocation0 + $0x310] sm:$0x3]  ;;  %2506 = vst [vmem:[%s3702_s1 + $0x4c] sm:$0x3] %v1295_v44 }
  0xc1   :  { %663 = vst.msk [vmem:[#allocation0 + $0x8] ss:$16 sm:$0x3] %vm161_vm3, %v660_v41   ;;  %665 = vst.msk [vmem:[#allocation0 + $0x1e8] ss:$16 sm:$0xc] %vm161_vm3, %v660_v41  }
  0xc2   :  { %667 = vst.msk [vmem:[#allocation0 + $0x3c8] ss:$16 sm:$0x30] %vm161_vm3, %v660_v41   ;;  %669 = vst.msk [vmem:[#allocation0 - $0x38] ss:$16 sm:$0xc0] %vm161_vm3, %v660_v41   ;;  %v833_v49 = vpop.permute.xlu0 %832  }
  0xc3   :  { %2564 = vst [vmem:[%s3702_s1 + $0xc0] sm:$0x3] %v1643_v53  ;;  %2566 = vst [vmem:[%s3702_s1 + $0xc4] sm:$0x3] %v1655_v54  ;;  %v2027_v55 = vld [vmem:[#allocation0 + $0x500] sm:$0x3]  ;;  %v884_v23 = vpop.permute.xlu1 %883  }
  0xc4   :  { %v2039_v56 = vld [vmem:[#allocation0 + $0x510] sm:$0x3]  ;;  %v1307_v57 = vld [vmem:[#allocation0 + $0x140] sm:$0x3]  ;;  %2628 = vst [vmem:[%s3702_s1 + $0x140] sm:$0x3] %v2027_v55 }
  0xc5   :  { %2630 = vst [vmem:[%s3702_s1 + $0x144] sm:$0x3] %v2039_v56  ;;  %2508 = vst [vmem:[%s3702_s1 + $0x50] sm:$0x3] %v1307_v57  ;;  %v1319_v59 = vld [vmem:[#allocation0 + $0x150] sm:$0x3] }
  0xc6   :  { %v1667_v60 = vld [vmem:[#allocation0 + $0x320] sm:$0x3]  ;;  %v1679_v61 = vld [vmem:[#allocation0 + $0x330] sm:$0x3]  ;;  %2510 = vst [vmem:[%s3702_s1 + $0x54] sm:$0x3] %v1319_v59  ;;  %v867_v51 = vpop.permute.xlu0 %866  }
  0xc7   :  { %680 = vst.msk [vmem:[#allocation0 + $0x228] ss:$16 sm:$0x3] %vm161_vm3, %v677_v58   ;;  %682 = vst.msk [vmem:[#allocation0 + $0x408] ss:$16 sm:$0xc] %vm161_vm3, %v677_v58   ;;  %v919_v32 = vpop.permute.xlu1 %918  }
  0xc8   :  { %684 = vst.msk [vmem:[#allocation0 + $0x8] ss:$16 sm:$0x30] %vm161_vm3, %v677_v58   ;;  %686 = vst.msk [vmem:[#allocation0 + $0x1e8] ss:$16 sm:$0xc0] %vm161_vm3, %v677_v58  }
  0xc9   :  { %2568 = vst [vmem:[%s3702_s1 + $0xc8] sm:$0x3] %v1667_v60  ;;  %2570 = vst [vmem:[%s3702_s1 + $0xcc] sm:$0x3] %v1679_v61  ;;  %v1691_v62 = vld [vmem:[#allocation0 + $0x340] sm:$0x3] }
  0xca   :  { %v1703_v63 = vld [vmem:[#allocation0 + $0x350] sm:$0x3]  ;;  %v2051_v0 = vld [vmem:[#allocation0 + $0x520] sm:$0x3]  ;;  %2572 = vst [vmem:[%s3702_s1 + $0xd0] sm:$0x3] %v1691_v62  ;;  %v901_v52 = vpop.permute.xlu0 %900  }
  0xcb   :  { %2574 = vst [vmem:[%s3702_s1 + $0xd4] sm:$0x3] %v1703_v63  ;;  %2632 = vst [vmem:[%s3702_s1 + $0x148] sm:$0x3] %v2051_v0  ;;  %v2063_v2 = vld [vmem:[#allocation0 + $0x530] sm:$0x3]  ;;  %v953_v58 = vpop.permute.xlu1 %952  }
  0xcc   :  { %v1331_v3 = vld [vmem:[#allocation0 + $0x160] sm:$0x3]  ;;  %v1343_v4 = vld [vmem:[#allocation0 + $0x170] sm:$0x3]  ;;  %2634 = vst [vmem:[%s3702_s1 + $0x14c] sm:$0x3] %v2063_v2 }
  0xcd   :  { %697 = vst.msk [vmem:[#allocation0 + $0x448] ss:$16 sm:$0x3] %vm161_vm3, %v694_v1   ;;  %699 = vst.msk [vmem:[#allocation0 + $0x48] ss:$16 sm:$0xc] %vm161_vm3, %v694_v1  }
  0xce   :  { %701 = vst.msk [vmem:[#allocation0 + $0x228] ss:$16 sm:$0x30] %vm161_vm3, %v694_v1   ;;  %703 = vst.msk [vmem:[#allocation0 + $0x408] ss:$16 sm:$0xc0] %vm161_vm3, %v694_v1   ;;  %v936_v41 = vpop.permute.xlu0 %935  }
  0xcf   :  { %2512 = vst [vmem:[%s3702_s1 + $0x58] sm:$0x3] %v1331_v3  ;;  %2514 = vst [vmem:[%s3702_s1 + $0x5c] sm:$0x3] %v1343_v4  ;;  %v1715_v5 = vld [vmem:[#allocation0 + $0x360] sm:$0x3] }
  0xd0   :  { %v1727_v6 = vld [vmem:[#allocation0 + $0x370] sm:$0x3]  ;;  %v2075_v7 = vld [vmem:[#allocation0 + $0x540] sm:$0x3]  ;;  %2576 = vst [vmem:[%s3702_s1 + $0xd8] sm:$0x3] %v1715_v5 }
  0xd1   :  { %2578 = vst [vmem:[%s3702_s1 + $0xdc] sm:$0x3] %v1727_v6  ;;  %2636 = vst [vmem:[%s3702_s1 + $0x150] sm:$0x3] %v2075_v7  ;;  %v2087_v9 = vld [vmem:[#allocation0 + $0x550] sm:$0x3] }
  0xd2   :  { %v2099_v10 = vld [vmem:[#allocation0 + $0x560] sm:$0x3]  ;;  %v2111_v11 = vld [vmem:[#allocation0 + $0x570] sm:$0x3]  ;;  %2638 = vst [vmem:[%s3702_s1 + $0x154] sm:$0x3] %v2087_v9  ;;  %v971_v1 = vpop.permute.xlu0 %970  }
  0xd3   :  { %715 = vst.msk [vmem:[#allocation0 + $0x88] ss:$16 sm:$0x3] %vm161_vm3, %v712_v8   ;;  %717 = vst.msk [vmem:[#allocation0 + $0x268] ss:$16 sm:$0xc] %vm161_vm3, %v712_v8  }
  0xd4   :  { %719 = vst.msk [vmem:[#allocation0 + $0x448] ss:$16 sm:$0x30] %vm161_vm3, %v712_v8   ;;  %721 = vst.msk [vmem:[#allocation0 + $0x48] ss:$16 sm:$0xc0] %vm161_vm3, %v712_v8   ;;  %v988_v8 = vpop.permute.xlu1 %987  }
  0xd5   :  { %2640 = vst [vmem:[%s3702_s1 + $0x158] sm:$0x3] %v2099_v10  ;;  %2642 = vst [vmem:[%s3702_s1 + $0x15c] sm:$0x3] %v2111_v11  ;;  %v1355_v12 = vld [vmem:[#allocation0 + $0x180] sm:$0x3] }
  0xd6   :  { %v1367_v13 = vld [vmem:[#allocation0 + $0x190] sm:$0x3]  ;;  %v1379_v14 = vld [vmem:[#allocation0 + $0x1a0] sm:$0x3]  ;;  %2516 = vst [vmem:[%s3702_s1 + $0x60] sm:$0x3] %v1355_v12 }
  0xd7   :  { %2518 = vst [vmem:[%s3702_s1 + $0x64] sm:$0x3] %v1367_v13  ;;  %2520 = vst [vmem:[%s3702_s1 + $0x68] sm:$0x3] %v1379_v14  ;;  %v1391_v16 = vld [vmem:[#allocation0 + $0x1b0] sm:$0x3] }
  0xd8   :  { %v1739_v17 = vld [vmem:[#allocation0 + $0x380] sm:$0x3]  ;;  %v1751_v18 = vld [vmem:[#allocation0 + $0x390] sm:$0x3]  ;;  %2522 = vst [vmem:[%s3702_s1 + $0x6c] sm:$0x3] %v1391_v16 }
  0xd9   :  { %732 = vst.msk [vmem:[#allocation0 + $0x2a8] ss:$16 sm:$0x3] %vm161_vm3, %v729_v15   ;;  %734 = vst.msk [vmem:[#allocation0 + $0x488] ss:$16 sm:$0xc] %vm161_vm3, %v729_v15  }
  0xda   :  { %736 = vst.msk [vmem:[#allocation0 + $0x88] ss:$16 sm:$0x30] %vm161_vm3, %v729_v15   ;;  %738 = vst.msk [vmem:[#allocation0 + $0x268] ss:$16 sm:$0xc0] %vm161_vm3, %v729_v15   ;;  %v1005_v15 = vpop.permute.xlu0 %1004  }
  0xdb   :  { %2580 = vst [vmem:[%s3702_s1 + $0xe0] sm:$0x3] %v1739_v17  ;;  %2582 = vst [vmem:[%s3702_s1 + $0xe4] sm:$0x3] %v1751_v18  ;;  %v2123_v19 = vld [vmem:[#allocation0 + $0x580] sm:$0x3] }
  0xdc   :  { %v2135_v20 = vld [vmem:[#allocation0 + $0x590] sm:$0x3]  ;;  %v1403_v21 = vld [vmem:[#allocation0 + $0x1c0] sm:$0x3]  ;;  %2644 = vst [vmem:[%s3702_s1 + $0x160] sm:$0x3] %v2123_v19 }
  0xdd   :  { %2646 = vst [vmem:[%s3702_s1 + $0x164] sm:$0x3] %v2135_v20  ;;  %2524 = vst [vmem:[%s3702_s1 + $0x70] sm:$0x3] %v1403_v21  ;;  %v1415_v24 = vld [vmem:[#allocation0 + $0x1d0] sm:$0x3] }
  0xde   :  { %v1763_v25 = vld [vmem:[#allocation0 + $0x3a0] sm:$0x3]  ;;  %v1775_v26 = vld [vmem:[#allocation0 + $0x3b0] sm:$0x3]  ;;  %2526 = vst [vmem:[%s3702_s1 + $0x74] sm:$0x3] %v1415_v24 }
  0xdf   :  { %749 = vst.msk [vmem:[#allocation0 + $0x4c8] ss:$16 sm:$0x3] %vm161_vm3, %v746_v22   ;;  %751 = vst.msk [vmem:[#allocation0 + $0xc8] ss:$16 sm:$0xc] %vm161_vm3, %v746_v22  }
  0xe0   :  { %753 = vst.msk [vmem:[#allocation0 + $0x2a8] ss:$16 sm:$0x30] %vm161_vm3, %v746_v22   ;;  %755 = vst.msk [vmem:[#allocation0 + $0x488] ss:$16 sm:$0xc0] %vm161_vm3, %v746_v22   ;;  %v1023_v22 = vpop.permute.xlu1 %1022  }
  0xe1   :  { %2584 = vst [vmem:[%s3702_s1 + $0xe8] sm:$0x3] %v1763_v25  ;;  %2586 = vst [vmem:[%s3702_s1 + $0xec] sm:$0x3] %v1775_v26  ;;  %v1787_v27 = vld [vmem:[#allocation0 + $0x3c0] sm:$0x3] }
  0xe2   :  { %v1799_v28 = vld [vmem:[#allocation0 + $0x3d0] sm:$0x3]  ;;  %v2147_v29 = vld [vmem:[#allocation0 + $0x5a0] sm:$0x3]  ;;  %2588 = vst [vmem:[%s3702_s1 + $0xf0] sm:$0x3] %v1787_v27 }
  0xe3   :  { %2590 = vst [vmem:[%s3702_s1 + $0xf4] sm:$0x3] %v1799_v28  ;;  %2648 = vst [vmem:[%s3702_s1 + $0x168] sm:$0x3] %v2147_v29  ;;  %v2159_v34 = vld [vmem:[#allocation0 + $0x5b0] sm:$0x3] }
  0xe4   :  { %v1427_v35 = vld [vmem:[#allocation0 + $0x1e0] sm:$0x3]  ;;  %v1439_v36 = vld [vmem:[#allocation0 + $0x1f0] sm:$0x3]  ;;  %2650 = vst [vmem:[%s3702_s1 + $0x16c] sm:$0x3] %v2159_v34 }
  0xe5   :  { %767 = vst.msk [vmem:[#allocation0 + $0x108] ss:$16 sm:$0x3] %vm161_vm3, %v764_v31   ;;  %769 = vst.msk [vmem:[#allocation0 + $0x2e8] ss:$16 sm:$0xc] %vm161_vm3, %v764_v31  }
  0xe6   :  { %771 = vst.msk [vmem:[#allocation0 + $0x4c8] ss:$16 sm:$0x30] %vm161_vm3, %v764_v31   ;;  %773 = vst.msk [vmem:[#allocation0 + $0xc8] ss:$16 sm:$0xc0] %vm161_vm3, %v764_v31   ;;  %v1040_v31 = vpop.permute.xlu0 %1039  }
  0xe7   :  { %2528 = vst [vmem:[%s3702_s1 + $0x78] sm:$0x3] %v1427_v35  ;;  %2530 = vst [vmem:[%s3702_s1 + $0x7c] sm:$0x3] %v1439_v36  ;;  %v1811_v37 = vld [vmem:[#allocation0 + $0x3e0] sm:$0x3] }
  0xe8   :  { %v1823_v38 = vld [vmem:[#allocation0 + $0x3f0] sm:$0x3]  ;;  %v2171_v39 = vld [vmem:[#allocation0 + $0x5c0] sm:$0x3]  ;;  %2592 = vst [vmem:[%s3702_s1 + $0xf8] sm:$0x3] %v1811_v37 }
  0xe9   :  { %2594 = vst [vmem:[%s3702_s1 + $0xfc] sm:$0x3] %v1823_v38  ;;  %2652 = vst [vmem:[%s3702_s1 + $0x170] sm:$0x3] %v2171_v39  ;;  %v2183_v43 = vld [vmem:[#allocation0 + $0x5d0] sm:$0x3] }
  0xea   :  { %v2195_v45 = vld [vmem:[#allocation0 + $0x5e0] sm:$0x3]  ;;  %v2207_v46 = vld [vmem:[#allocation0 + $0x5f0] sm:$0x3]  ;;  %2654 = vst [vmem:[%s3702_s1 + $0x174] sm:$0x3] %v2183_v43 }
  0xeb   :  { %784 = vst.msk [vmem:[#allocation0 + $0x328] ss:$16 sm:$0x3] %vm161_vm3, %v781_v42   ;;  %786 = vst.msk [vmem:[#allocation0 + $0x508] ss:$16 sm:$0xc] %vm161_vm3, %v781_v42  }
  0xec   :  { %788 = vst.msk [vmem:[#allocation0 + $0x108] ss:$16 sm:$0x30] %vm161_vm3, %v781_v42   ;;  %790 = vst.msk [vmem:[#allocation0 + $0x2e8] ss:$16 sm:$0xc0] %vm161_vm3, %v781_v42   ;;  %v1057_v42 = vpop.permute.xlu1 %1056  }
  0xed   :  { %2656 = vst [vmem:[%s3702_s1 + $0x178] sm:$0x3] %v2195_v45  ;;  %2658 = vst [vmem:[%s3702_s1 + $0x17c] sm:$0x3] %v2207_v46 }
  0xee   :  { %801 = vst.msk [vmem:[#allocation0 + $0x548] ss:$16 sm:$0x3] %vm161_vm3, %v798_v47   ;;  %803 = vst.msk [vmem:[#allocation0 + $0x148] ss:$16 sm:$0xc] %vm161_vm3, %v798_v47  }
  0xef   :  { %805 = vst.msk [vmem:[#allocation0 + $0x328] ss:$16 sm:$0x30] %vm161_vm3, %v798_v47   ;;  %807 = vst.msk [vmem:[#allocation0 + $0x508] ss:$16 sm:$0xc0] %vm161_vm3, %v798_v47  }
  0xf0   :  { %819 = vst.msk [vmem:[#allocation0 + $0x188] ss:$16 sm:$0x3] %vm161_vm3, %v816_v48   ;;  %821 = vst.msk [vmem:[#allocation0 + $0x368] ss:$16 sm:$0xc] %vm161_vm3, %v816_v48  }
  0xf1   :  { %823 = vst.msk [vmem:[#allocation0 + $0x548] ss:$16 sm:$0x30] %vm161_vm3, %v816_v48   ;;  %825 = vst.msk [vmem:[#allocation0 + $0x148] ss:$16 sm:$0xc0] %vm161_vm3, %v816_v48  }
  0xf2   :  { %836 = vst.msk [vmem:[#allocation0 + $0x3a8] ss:$16 sm:$0x3] %vm161_vm3, %v833_v49   ;;  %838 = vst.msk [vmem:[#allocation0 + $0x588] ss:$16 sm:$0xc] %vm161_vm3, %v833_v49  }
  0xf3   :  { %840 = vst.msk [vmem:[#allocation0 + $0x188] ss:$16 sm:$0x30] %vm161_vm3, %v833_v49   ;;  %842 = vst.msk [vmem:[#allocation0 + $0x368] ss:$16 sm:$0xc0] %vm161_vm3, %v833_v49  }
  0xf4   :  { %853 = vst.msk [vmem:[#allocation0 + $0x5c8] ss:$16 sm:$0x3] %vm161_vm3, %v850_v50   ;;  %855 = vst.msk [vmem:[#allocation0 + $0x1c8] ss:$16 sm:$0xc] %vm161_vm3, %v850_v50  }
  0xf5   :  { %857 = vst.msk [vmem:[#allocation0 + $0x3a8] ss:$16 sm:$0x30] %vm161_vm3, %v850_v50   ;;  %859 = vst.msk [vmem:[#allocation0 + $0x588] ss:$16 sm:$0xc0] %vm161_vm3, %v850_v50  }
  0xf6   :  { %870 = vst.msk [vmem:[#allocation0 + $0x9] ss:$16 sm:$0x3] %vm161_vm3, %v867_v51   ;;  %872 = vst.msk [vmem:[#allocation0 + $0x1e9] ss:$16 sm:$0xc] %vm161_vm3, %v867_v51  }
  0xf7   :  { %874 = vst.msk [vmem:[#allocation0 + $0x3c9] ss:$16 sm:$0x30] %vm161_vm3, %v867_v51   ;;  %876 = vst.msk [vmem:[#allocation0 - $0x37] ss:$16 sm:$0xc0] %vm161_vm3, %v867_v51  }
  0xf8   :  { %887 = vst.msk [vmem:[#allocation0 + $0x229] ss:$16 sm:$0x3] %vm161_vm3, %v884_v23   ;;  %889 = vst.msk [vmem:[#allocation0 + $0x409] ss:$16 sm:$0xc] %vm161_vm3, %v884_v23  }
  0xf9   :  { %891 = vst.msk [vmem:[#allocation0 + $0x9] ss:$16 sm:$0x30] %vm161_vm3, %v884_v23   ;;  %893 = vst.msk [vmem:[#allocation0 + $0x1e9] ss:$16 sm:$0xc0] %vm161_vm3, %v884_v23  }
  0xfa   :  { %904 = vst.msk [vmem:[#allocation0 + $0x449] ss:$16 sm:$0x3] %vm161_vm3, %v901_v52   ;;  %906 = vst.msk [vmem:[#allocation0 + $0x49] ss:$16 sm:$0xc] %vm161_vm3, %v901_v52  }
  0xfb   :  { %908 = vst.msk [vmem:[#allocation0 + $0x229] ss:$16 sm:$0x30] %vm161_vm3, %v901_v52   ;;  %910 = vst.msk [vmem:[#allocation0 + $0x409] ss:$16 sm:$0xc0] %vm161_vm3, %v901_v52  }
  0xfc   :  { %922 = vst.msk [vmem:[#allocation0 + $0x89] ss:$16 sm:$0x3] %vm161_vm3, %v919_v32   ;;  %924 = vst.msk [vmem:[#allocation0 + $0x269] ss:$16 sm:$0xc] %vm161_vm3, %v919_v32  }
  0xfd   :  { %926 = vst.msk [vmem:[#allocation0 + $0x449] ss:$16 sm:$0x30] %vm161_vm3, %v919_v32   ;;  %928 = vst.msk [vmem:[#allocation0 + $0x49] ss:$16 sm:$0xc0] %vm161_vm3, %v919_v32  }
  0xfe   :  { %v1074_v30 = vld [vmem:[#allocation0 + $0x8] sm:$0x3]  ;;  %v1085_v33 = vld [vmem:[#allocation0 + $0x18] sm:$0x3] }
  0xff   :  { %v1097_v40 = vld [vmem:[#allocation0 + $0x28] sm:$0x3]  ;;  %v1109_v44 = vld [vmem:[#allocation0 + $0x38] sm:$0x3]  ;;  %2469 = vst [vmem:[%s3702_s1 + $0x2] sm:$0x3] %v1074_v30 }
 0x100   :  { %v1457_v53 = vld [vmem:[#allocation0 + $0x208] sm:$0x3]  ;;  %v1469_v54 = vld [vmem:[#allocation0 + $0x218] sm:$0x3]  ;;  %2471 = vst [vmem:[%s3702_s1 + $0x6] sm:$0x3] %v1085_v33 }
 0x101   :  { %2473 = vst [vmem:[%s3702_s1 + $0xa] sm:$0x3] %v1097_v40  ;;  %939 = vst.msk [vmem:[#allocation0 + $0x2a9] ss:$16 sm:$0x3] %vm161_vm3, %v936_v41  }
 0x102   :  { %941 = vst.msk [vmem:[#allocation0 + $0x489] ss:$16 sm:$0xc] %vm161_vm3, %v936_v41   ;;  %943 = vst.msk [vmem:[#allocation0 + $0x89] ss:$16 sm:$0x30] %vm161_vm3, %v936_v41  }
 0x103   :  { %945 = vst.msk [vmem:[#allocation0 + $0x269] ss:$16 sm:$0xc0] %vm161_vm3, %v936_v41   ;;  %v1841_v55 = vld [vmem:[#allocation0 + $0x408] sm:$0x3] }
 0x104   :  { %v1853_v56 = vld [vmem:[#allocation0 + $0x418] sm:$0x3]  ;;  %v1505_v57 = vld [vmem:[#allocation0 + $0x248] sm:$0x3]  ;;  %2475 = vst [vmem:[%s3702_s1 + $0xe] sm:$0x3] %v1109_v44 }
 0x105   :  { %2533 = vst [vmem:[%s3702_s1 + $0x82] sm:$0x3] %v1457_v53  ;;  %2535 = vst [vmem:[%s3702_s1 + $0x86] sm:$0x3] %v1469_v54  ;;  %v1517_v59 = vld [vmem:[#allocation0 + $0x258] sm:$0x3] }
 0x106   :  { %2541 = vst [vmem:[%s3702_s1 + $0x92] sm:$0x3] %v1505_v57  ;;  %v1121_v60 = vld [vmem:[#allocation0 + $0x48] sm:$0x3]  ;;  %v1133_v61 = vld [vmem:[#allocation0 + $0x58] sm:$0x3] }
 0x107   :  { %2597 = vst [vmem:[%s3702_s1 + $0x102] sm:$0x3] %v1841_v55  ;;  %2599 = vst [vmem:[%s3702_s1 + $0x106] sm:$0x3] %v1853_v56  ;;  %v1481_v62 = vld [vmem:[#allocation0 + $0x228] sm:$0x3] }
 0x108   :  { %956 = vst.msk [vmem:[#allocation0 + $0x4c9] ss:$16 sm:$0x3] %vm161_vm3, %v953_v58   ;;  %958 = vst.msk [vmem:[#allocation0 + $0xc9] ss:$16 sm:$0xc] %vm161_vm3, %v953_v58  }
 0x109   :  { %960 = vst.msk [vmem:[#allocation0 + $0x2a9] ss:$16 sm:$0x30] %vm161_vm3, %v953_v58   ;;  %962 = vst.msk [vmem:[#allocation0 + $0x489] ss:$16 sm:$0xc0] %vm161_vm3, %v953_v58  }
 0x10a   :  { %2543 = vst [vmem:[%s3702_s1 + $0x96] sm:$0x3] %v1517_v59  ;;  %v1493_v63 = vld [vmem:[#allocation0 + $0x238] sm:$0x3]  ;;  %v1865_v0 = vld [vmem:[#allocation0 + $0x428] sm:$0x3] }
 0x10b   :  { %2477 = vst [vmem:[%s3702_s1 + $0x12] sm:$0x3] %v1121_v60  ;;  %2479 = vst [vmem:[%s3702_s1 + $0x16] sm:$0x3] %v1133_v61  ;;  %v1877_v2 = vld [vmem:[#allocation0 + $0x438] sm:$0x3] }
 0x10c   :  { %v1913_v3 = vld [vmem:[#allocation0 + $0x468] sm:$0x3]  ;;  %v1925_v4 = vld [vmem:[#allocation0 + $0x478] sm:$0x3]  ;;  %2537 = vst [vmem:[%s3702_s1 + $0x8a] sm:$0x3] %v1481_v62 }
 0x10d   :  { %2539 = vst [vmem:[%s3702_s1 + $0x8e] sm:$0x3] %v1493_v63  ;;  %2601 = vst [vmem:[%s3702_s1 + $0x10a] sm:$0x3] %v1865_v0  ;;  %v1145_v5 = vld [vmem:[#allocation0 + $0x68] sm:$0x3] }
 0x10e   :  { %974 = vst.msk [vmem:[#allocation0 + $0x109] ss:$16 sm:$0x3] %vm161_vm3, %v971_v1   ;;  %976 = vst.msk [vmem:[#allocation0 + $0x2e9] ss:$16 sm:$0xc] %vm161_vm3, %v971_v1  }
 0x10f   :  { %978 = vst.msk [vmem:[#allocation0 + $0x4c9] ss:$16 sm:$0x30] %vm161_vm3, %v971_v1   ;;  %980 = vst.msk [vmem:[#allocation0 + $0xc9] ss:$16 sm:$0xc0] %vm161_vm3, %v971_v1  }
 0x110   :  { %2609 = vst [vmem:[%s3702_s1 + $0x11a] sm:$0x3] %v1913_v3  ;;  %2611 = vst [vmem:[%s3702_s1 + $0x11e] sm:$0x3] %v1925_v4  ;;  %v1157_v6 = vld [vmem:[#allocation0 + $0x78] sm:$0x3] }
 0x111   :  { %v1529_v7 = vld [vmem:[#allocation0 + $0x268] sm:$0x3]  ;;  %2603 = vst [vmem:[%s3702_s1 + $0x10e] sm:$0x3] %v1877_v2  ;;  %v1541_v9 = vld [vmem:[#allocation0 + $0x278] sm:$0x3] }
 0x112   :  { %v1889_v10 = vld [vmem:[#allocation0 + $0x448] sm:$0x3]  ;;  %v1901_v11 = vld [vmem:[#allocation0 + $0x458] sm:$0x3]  ;;  %2481 = vst [vmem:[%s3702_s1 + $0x1a] sm:$0x3] %v1145_v5 }
 0x113   :  { %2483 = vst [vmem:[%s3702_s1 + $0x1e] sm:$0x3] %v1157_v6  ;;  %2545 = vst [vmem:[%s3702_s1 + $0x9a] sm:$0x3] %v1529_v7  ;;  %v1169_v12 = vld [vmem:[#allocation0 + $0x88] sm:$0x3] }
 0x114   :  { %991 = vst.msk [vmem:[#allocation0 + $0x329] ss:$16 sm:$0x3] %vm161_vm3, %v988_v8   ;;  %993 = vst.msk [vmem:[#allocation0 + $0x509] ss:$16 sm:$0xc] %vm161_vm3, %v988_v8  }
 0x115   :  { %995 = vst.msk [vmem:[#allocation0 + $0x109] ss:$16 sm:$0x30] %vm161_vm3, %v988_v8   ;;  %997 = vst.msk [vmem:[#allocation0 + $0x2e9] ss:$16 sm:$0xc0] %vm161_vm3, %v988_v8  }
 0x116   :  { %v1181_v13 = vld [vmem:[#allocation0 + $0x98] sm:$0x3]  ;;  %v1193_v14 = vld [vmem:[#allocation0 + $0xa8] sm:$0x3]  ;;  %2547 = vst [vmem:[%s3702_s1 + $0x9e] sm:$0x3] %v1541_v9 }
 0x117   :  { %2605 = vst [vmem:[%s3702_s1 + $0x112] sm:$0x3] %v1889_v10  ;;  %2607 = vst [vmem:[%s3702_s1 + $0x116] sm:$0x3] %v1901_v11  ;;  %v1205_v16 = vld [vmem:[#allocation0 + $0xb8] sm:$0x3] }
 0x118   :  { %2485 = vst [vmem:[%s3702_s1 + $0x22] sm:$0x3] %v1169_v12  ;;  %2487 = vst [vmem:[%s3702_s1 + $0x26] sm:$0x3] %v1181_v13  ;;  %v1553_v17 = vld [vmem:[#allocation0 + $0x288] sm:$0x3] }
 0x119   :  { %2489 = vst [vmem:[%s3702_s1 + $0x2a] sm:$0x3] %v1193_v14  ;;  %v1565_v18 = vld [vmem:[#allocation0 + $0x298] sm:$0x3]  ;;  %2491 = vst [vmem:[%s3702_s1 + $0x2e] sm:$0x3] %v1205_v16 }
 0x11a   :  { %1008 = vst.msk [vmem:[#allocation0 + $0x549] ss:$16 sm:$0x3] %vm161_vm3, %v1005_v15   ;;  %1010 = vst.msk [vmem:[#allocation0 + $0x149] ss:$16 sm:$0xc] %vm161_vm3, %v1005_v15  }
 0x11b   :  { %1012 = vst.msk [vmem:[#allocation0 + $0x329] ss:$16 sm:$0x30] %vm161_vm3, %v1005_v15   ;;  %1014 = vst.msk [vmem:[#allocation0 + $0x509] ss:$16 sm:$0xc0] %vm161_vm3, %v1005_v15  }
 0x11c   :  { %2549 = vst [vmem:[%s3702_s1 + $0xa2] sm:$0x3] %v1553_v17  ;;  %2551 = vst [vmem:[%s3702_s1 + $0xa6] sm:$0x3] %v1565_v18  ;;  %v1937_v19 = vld [vmem:[#allocation0 + $0x488] sm:$0x3] }
 0x11d   :  { %v1949_v20 = vld [vmem:[#allocation0 + $0x498] sm:$0x3]  ;;  %v1217_v21 = vld [vmem:[#allocation0 + $0xc8] sm:$0x3]  ;;  %2613 = vst [vmem:[%s3702_s1 + $0x122] sm:$0x3] %v1937_v19 }
 0x11e   :  { %2615 = vst [vmem:[%s3702_s1 + $0x126] sm:$0x3] %v1949_v20  ;;  %2493 = vst [vmem:[%s3702_s1 + $0x32] sm:$0x3] %v1217_v21  ;;  %v1229_v24 = vld [vmem:[#allocation0 + $0xd8] sm:$0x3] }
 0x11f   :  { %v1601_v25 = vld [vmem:[#allocation0 + $0x2c8] sm:$0x3]  ;;  %v1613_v26 = vld [vmem:[#allocation0 + $0x2d8] sm:$0x3]  ;;  %2495 = vst [vmem:[%s3702_s1 + $0x36] sm:$0x3] %v1229_v24 }
 0x120   :  { %1026 = vst.msk [vmem:[#allocation0 + $0x189] ss:$16 sm:$0x3] %vm161_vm3, %v1023_v22   ;;  %1028 = vst.msk [vmem:[#allocation0 + $0x369] ss:$16 sm:$0xc] %vm161_vm3, %v1023_v22  }
 0x121   :  { %1030 = vst.msk [vmem:[#allocation0 + $0x549] ss:$16 sm:$0x30] %vm161_vm3, %v1023_v22   ;;  %1032 = vst.msk [vmem:[#allocation0 + $0x149] ss:$16 sm:$0xc0] %vm161_vm3, %v1023_v22  }
 0x122   :  { %2557 = vst [vmem:[%s3702_s1 + $0xb2] sm:$0x3] %v1601_v25  ;;  %2559 = vst [vmem:[%s3702_s1 + $0xb6] sm:$0x3] %v1613_v26  ;;  %v1577_v27 = vld [vmem:[#allocation0 + $0x2a8] sm:$0x3] }
 0x123   :  { %v1589_v28 = vld [vmem:[#allocation0 + $0x2b8] sm:$0x3]  ;;  %v1961_v29 = vld [vmem:[#allocation0 + $0x4a8] sm:$0x3]  ;;  %2553 = vst [vmem:[%s3702_s1 + $0xaa] sm:$0x3] %v1577_v27 }
 0x124   :  { %v1973_v34 = vld [vmem:[#allocation0 + $0x4b8] sm:$0x3]  ;;  %v2009_v35 = vld [vmem:[#allocation0 + $0x4e8] sm:$0x3]  ;;  %2555 = vst [vmem:[%s3702_s1 + $0xae] sm:$0x3] %v1589_v28 }
 0x125   :  { %v2021_v36 = vld [vmem:[#allocation0 + $0x4f8] sm:$0x3]  ;;  %2617 = vst [vmem:[%s3702_s1 + $0x12a] sm:$0x3] %v1961_v29  ;;  %2625 = vst [vmem:[%s3702_s1 + $0x13a] sm:$0x3] %v2009_v35 }
 0x126   :  { %1043 = vst.msk [vmem:[#allocation0 + $0x3a9] ss:$16 sm:$0x3] %vm161_vm3, %v1040_v31   ;;  %1045 = vst.msk [vmem:[#allocation0 + $0x589] ss:$16 sm:$0xc] %vm161_vm3, %v1040_v31  }
 0x127   :  { %1047 = vst.msk [vmem:[#allocation0 + $0x189] ss:$16 sm:$0x30] %vm161_vm3, %v1040_v31   ;;  %1049 = vst.msk [vmem:[#allocation0 + $0x369] ss:$16 sm:$0xc0] %vm161_vm3, %v1040_v31  }
 0x128   :  { %2627 = vst [vmem:[%s3702_s1 + $0x13e] sm:$0x3] %v2021_v36  ;;  %v1241_v37 = vld [vmem:[#allocation0 + $0xe8] sm:$0x3]  ;;  %v1253_v38 = vld [vmem:[#allocation0 + $0xf8] sm:$0x3] }
 0x129   :  { %v1625_v39 = vld [vmem:[#allocation0 + $0x2e8] sm:$0x3]  ;;  %2619 = vst [vmem:[%s3702_s1 + $0x12e] sm:$0x3] %v1973_v34  ;;  %v1637_v43 = vld [vmem:[#allocation0 + $0x2f8] sm:$0x3] }
 0x12a   :  { %v1985_v45 = vld [vmem:[#allocation0 + $0x4c8] sm:$0x3]  ;;  %v1997_v46 = vld [vmem:[#allocation0 + $0x4d8] sm:$0x3]  ;;  %2497 = vst [vmem:[%s3702_s1 + $0x3a] sm:$0x3] %v1241_v37 }
 0x12b   :  { %2499 = vst [vmem:[%s3702_s1 + $0x3e] sm:$0x3] %v1253_v38  ;;  %2561 = vst [vmem:[%s3702_s1 + $0xba] sm:$0x3] %v1625_v39  ;;  %v1289_v47 = vld [vmem:[#allocation0 + $0x128] sm:$0x3] }
 0x12c   :  { %1060 = vst.msk [vmem:[#allocation0 + $0x5c9] ss:$16 sm:$0x3] %vm161_vm3, %v1057_v42   ;;  %1062 = vst.msk [vmem:[#allocation0 + $0x1c9] ss:$16 sm:$0xc] %vm161_vm3, %v1057_v42  }
 0x12d   :  { %1064 = vst.msk [vmem:[#allocation0 + $0x3a9] ss:$16 sm:$0x30] %vm161_vm3, %v1057_v42   ;;  %1066 = vst.msk [vmem:[#allocation0 + $0x589] ss:$16 sm:$0xc0] %vm161_vm3, %v1057_v42  }
 0x12e   :  { %v1301_v48 = vld [vmem:[#allocation0 + $0x138] sm:$0x3]  ;;  %v1265_v49 = vld [vmem:[#allocation0 + $0x108] sm:$0x3]  ;;  %2563 = vst [vmem:[%s3702_s1 + $0xbe] sm:$0x3] %v1637_v43 }
 0x12f   :  { %2621 = vst [vmem:[%s3702_s1 + $0x132] sm:$0x3] %v1985_v45  ;;  %2623 = vst [vmem:[%s3702_s1 + $0x136] sm:$0x3] %v1997_v46  ;;  %v1277_v50 = vld [vmem:[#allocation0 + $0x118] sm:$0x3] }
 0x130   :  { %2505 = vst [vmem:[%s3702_s1 + $0x4a] sm:$0x3] %v1289_v47  ;;  %2507 = vst [vmem:[%s3702_s1 + $0x4e] sm:$0x3] %v1301_v48  ;;  %v1649_v51 = vld [vmem:[#allocation0 + $0x308] sm:$0x3] }
 0x131   :  { %v1661_v23 = vld [vmem:[#allocation0 + $0x318] sm:$0x3]  ;;  %2501 = vst [vmem:[%s3702_s1 + $0x42] sm:$0x3] %v1265_v49  ;;  %v2033_v52 = vld [vmem:[#allocation0 + $0x508] sm:$0x3] }
 0x132   :  { %v2045_v32 = vld [vmem:[#allocation0 + $0x518] sm:$0x3]  ;;  %v1697_v30 = vld [vmem:[#allocation0 + $0x348] sm:$0x3]  ;;  %2503 = vst [vmem:[%s3702_s1 + $0x46] sm:$0x3] %v1277_v50 }
 0x133   :  { %2565 = vst [vmem:[%s3702_s1 + $0xc2] sm:$0x3] %v1649_v51  ;;  %2567 = vst [vmem:[%s3702_s1 + $0xc6] sm:$0x3] %v1661_v23  ;;  %v1709_v33 = vld [vmem:[#allocation0 + $0x358] sm:$0x3] }
 0x134   :  { %2573 = vst [vmem:[%s3702_s1 + $0xd2] sm:$0x3] %v1697_v30  ;;  %v1313_v40 = vld [vmem:[#allocation0 + $0x148] sm:$0x3]  ;;  %v1325_v41 = vld [vmem:[#allocation0 + $0x158] sm:$0x3] }
 0x135   :  { %2629 = vst [vmem:[%s3702_s1 + $0x142] sm:$0x3] %v2033_v52  ;;  %2631 = vst [vmem:[%s3702_s1 + $0x146] sm:$0x3] %v2045_v32  ;;  %v1673_v44 = vld [vmem:[#allocation0 + $0x328] sm:$0x3] }
 0x136   :  { %2575 = vst [vmem:[%s3702_s1 + $0xd6] sm:$0x3] %v1709_v33  ;;  %v1685_v53 = vld [vmem:[#allocation0 + $0x338] sm:$0x3]  ;;  %v2057_v54 = vld [vmem:[#allocation0 + $0x528] sm:$0x3] }
 0x137   :  { %2509 = vst [vmem:[%s3702_s1 + $0x52] sm:$0x3] %v1313_v40  ;;  %2511 = vst [vmem:[%s3702_s1 + $0x56] sm:$0x3] %v1325_v41  ;;  %v2069_v55 = vld [vmem:[#allocation0 + $0x538] sm:$0x3] }
 0x138   :  { %v1721_v56 = vld [vmem:[#allocation0 + $0x368] sm:$0x3]  ;;  %v1733_v57 = vld [vmem:[#allocation0 + $0x378] sm:$0x3]  ;;  %2569 = vst [vmem:[%s3702_s1 + $0xca] sm:$0x3] %v1673_v44 }
 0x139   :  { %2571 = vst [vmem:[%s3702_s1 + $0xce] sm:$0x3] %v1685_v53  ;;  %2633 = vst [vmem:[%s3702_s1 + $0x14a] sm:$0x3] %v2057_v54  ;;  %v2105_v58 = vld [vmem:[#allocation0 + $0x568] sm:$0x3] }
 0x13a   :  { %2577 = vst [vmem:[%s3702_s1 + $0xda] sm:$0x3] %v1721_v56  ;;  %2579 = vst [vmem:[%s3702_s1 + $0xde] sm:$0x3] %v1733_v57  ;;  %v2117_v59 = vld [vmem:[#allocation0 + $0x578] sm:$0x3] }
 0x13b   :  { %v1337_v60 = vld [vmem:[#allocation0 + $0x168] sm:$0x3]  ;;  %2635 = vst [vmem:[%s3702_s1 + $0x14e] sm:$0x3] %v2069_v55  ;;  %2641 = vst [vmem:[%s3702_s1 + $0x15a] sm:$0x3] %v2105_v58 }
 0x13c   :  { %2643 = vst [vmem:[%s3702_s1 + $0x15e] sm:$0x3] %v2117_v59  ;;  %v1349_v61 = vld [vmem:[#allocation0 + $0x178] sm:$0x3]  ;;  %v2081_v62 = vld [vmem:[#allocation0 + $0x548] sm:$0x3] }
 0x13d   :  { %v2093_v63 = vld [vmem:[#allocation0 + $0x558] sm:$0x3]  ;;  %2513 = vst [vmem:[%s3702_s1 + $0x5a] sm:$0x3] %v1337_v60  ;;  %v1385_v0 = vld [vmem:[#allocation0 + $0x1a8] sm:$0x3] }
 0x13e   :  { %v1397_v1 = vld [vmem:[#allocation0 + $0x1b8] sm:$0x3]  ;;  %v2129_v2 = vld [vmem:[#allocation0 + $0x588] sm:$0x3]  ;;  %2515 = vst [vmem:[%s3702_s1 + $0x5e] sm:$0x3] %v1349_v61 }
 0x13f   :  { %2637 = vst [vmem:[%s3702_s1 + $0x152] sm:$0x3] %v2081_v62  ;;  %2639 = vst [vmem:[%s3702_s1 + $0x156] sm:$0x3] %v2093_v63  ;;  %v2141_v3 = vld [vmem:[#allocation0 + $0x598] sm:$0x3] }
 0x140   :  { %2521 = vst [vmem:[%s3702_s1 + $0x6a] sm:$0x3] %v1385_v0  ;;  %2523 = vst [vmem:[%s3702_s1 + $0x6e] sm:$0x3] %v1397_v1  ;;  %v1361_v4 = vld [vmem:[#allocation0 + $0x188] sm:$0x3] }
 0x141   :  { %2645 = vst [vmem:[%s3702_s1 + $0x162] sm:$0x3] %v2129_v2  ;;  %v1373_v5 = vld [vmem:[#allocation0 + $0x198] sm:$0x3]  ;;  %2647 = vst [vmem:[%s3702_s1 + $0x166] sm:$0x3] %v2141_v3 }
 0x142   :  { %v1745_v6 = vld [vmem:[#allocation0 + $0x388] sm:$0x3]  ;;  %v1757_v7 = vld [vmem:[#allocation0 + $0x398] sm:$0x3]  ;;  %2517 = vst [vmem:[%s3702_s1 + $0x62] sm:$0x3] %v1361_v4 }
 0x143   :  { %v1409_v8 = vld [vmem:[#allocation0 + $0x1c8] sm:$0x3]  ;;  %2519 = vst [vmem:[%s3702_s1 + $0x66] sm:$0x3] %v1373_v5  ;;  %v1421_v9 = vld [vmem:[#allocation0 + $0x1d8] sm:$0x3] }
 0x144   :  { %2525 = vst [vmem:[%s3702_s1 + $0x72] sm:$0x3] %v1409_v8  ;;  %v1769_v10 = vld [vmem:[#allocation0 + $0x3a8] sm:$0x3]  ;;  %v1781_v11 = vld [vmem:[#allocation0 + $0x3b8] sm:$0x3] }
 0x145   :  { %2581 = vst [vmem:[%s3702_s1 + $0xe2] sm:$0x3] %v1745_v6  ;;  %2583 = vst [vmem:[%s3702_s1 + $0xe6] sm:$0x3] %v1757_v7  ;;  %v1793_v12 = vld [vmem:[#allocation0 + $0x3c8] sm:$0x3] }
 0x146   :  { %2527 = vst [vmem:[%s3702_s1 + $0x76] sm:$0x3] %v1421_v9  ;;  %2585 = vst [vmem:[%s3702_s1 + $0xea] sm:$0x3] %v1769_v10  ;;  %v1805_v13 = vld [vmem:[#allocation0 + $0x3d8] sm:$0x3] }
 0x147   :  { %2587 = vst [vmem:[%s3702_s1 + $0xee] sm:$0x3] %v1781_v11  ;;  %v2153_v14 = vld [vmem:[#allocation0 + $0x5a8] sm:$0x3]  ;;  %2589 = vst [vmem:[%s3702_s1 + $0xf2] sm:$0x3] %v1793_v12 }
 0x148   :  { %2591 = vst [vmem:[%s3702_s1 + $0xf6] sm:$0x3] %v1805_v13  ;;  %2649 = vst [vmem:[%s3702_s1 + $0x16a] sm:$0x3] %v2153_v14  ;;  %v2165_v15 = vld [vmem:[#allocation0 + $0x5b8] sm:$0x3] }
 0x149   :  { %v1433_v16 = vld [vmem:[#allocation0 + $0x1e8] sm:$0x3]  ;;  %v1445_v17 = vld [vmem:[#allocation0 + $0x1f8] sm:$0x3]  ;;  %2651 = vst [vmem:[%s3702_s1 + $0x16e] sm:$0x3] %v2165_v15 }
 0x14a   :  { %2529 = vst [vmem:[%s3702_s1 + $0x7a] sm:$0x3] %v1433_v16  ;;  %2531 = vst [vmem:[%s3702_s1 + $0x7e] sm:$0x3] %v1445_v17  ;;  %v1817_v18 = vld [vmem:[#allocation0 + $0x3e8] sm:$0x3] }
 0x14b   :  { %v1829_v19 = vld [vmem:[#allocation0 + $0x3f8] sm:$0x3]  ;;  %v2177_v20 = vld [vmem:[#allocation0 + $0x5c8] sm:$0x3]  ;;  %2593 = vst [vmem:[%s3702_s1 + $0xfa] sm:$0x3] %v1817_v18 }
 0x14c   :  { %2595 = vst [vmem:[%s3702_s1 + $0xfe] sm:$0x3] %v1829_v19  ;;  %2653 = vst [vmem:[%s3702_s1 + $0x172] sm:$0x3] %v2177_v20  ;;  %v2189_v21 = vld [vmem:[#allocation0 + $0x5d8] sm:$0x3] }
 0x14d   :  { %v2201_v22 = vld [vmem:[#allocation0 + $0x5e8] sm:$0x3]  ;;  %v2213_v24 = vld [vmem:[#allocation0 + $0x5f8] sm:$0x3]  ;;  %2655 = vst [vmem:[%s3702_s1 + $0x176] sm:$0x3] %v2189_v21 }
 0x14e   :  { %2657 = vst [vmem:[%s3702_s1 + $0x17a] sm:$0x3] %v2201_v22  ;;  %2659 = vst [vmem:[%s3702_s1 + $0x17e] sm:$0x3] %v2213_v24 }

// kernel: test_forward.3
= control target key start
LH: loop header
LB: loop body
LE: loop exit
PB: predicated region body
PF: predicated region fallthrough
CT: control target
= control target key end

     0   :  { %s6557_s0 = inlined_call_operand.vmem [shape: f32[2,28,1024], index: 0, kind: input, shape index: {}]   ;;  %s6558_s1 = inlined_call_operand.vmem [shape: f32[2,32,28], index: 1, kind: input, shape index: {}]   ;;  %s6559_s2 = inlined_call_operand.vmem [shape: f32[2,32,32], index: 2, kind: input, shape index: {}]   ;;  %s6560_s3 = inlined_call_operand.vmem [shape: f32[2,32,1], index: 3, kind: input, shape index: {}]   ;;  %s6561_s4 = inlined_call_operand.vmem [shape: f32[1024,64], index: 4, kind: input, shape index: {}]   ;;  %s6562_s5 = inlined_call_operand.vmem [shape: f32[1024,64], index: 5, kind: input, shape index: {}]   ;;  %s6563_s6 = inlined_call_operand.vmem [shape: f32[64,32], index: 6, kind: input, shape index: {}]   ;;  %s6564_s7 = inlined_call_operand.vmem [shape: f32[32,32], index: 7, kind: input, shape index: {}]   ;;  %s6565_s8 = inlined_call_operand.vmem [shape: f32[32,1], index: 8, kind: input, shape index: {}]   ;;  %s6566_s9 = inlined_call_operand.vmem [shape: f32[5,32,32], index: 9, kind: input, shape index: {}]   ;;  %s6567_s10 = inlined_call_operand.vmem [shape: f32[32,1], index: 10, kind: input, shape index: {}]   ;;  %s6568_s11 = inlined_call_operand.vmem [shape: f32[1,32], index: 11, kind: input, shape index: {}]   ;;  %s6569_s12 = inlined_call_operand.<no memory space> [shape: f32[1,1], index: 12, kind: input, shape index: {}]   ;;  %s6570_s13 = inlined_call_operand.hbm [shape: f32[1,32], index: 13, kind: output, shape index: {}]  }
   0x1   :  { %v18_v0 = vstv %s6569_s12 }
   0x2   :  { %19 = vst [vmem:[#allocation3] sm:$0x1] %v18_v0 }
   0x3   :  { %v52_v1 = vld [vmem:[%s6557_s0 + $0x8] sm:$0xff]  ;;  %v51_v3 = vld [vmem:[%s6557_s0] sm:$0xff]  ;;  %vm96_vm0 = vcmask 1043456   ;;  %v6571_v8 = vmov 0.0   ;;  %vm4674_vm1 = vmmov 1   ;;  %v54_v14 = vld [vmem:[%s6557_s0 + $0x18] sm:$0xff] }
   0x4   :  { %v60_v2 = vld [vmem:[%s6557_s0 + $0x48] sm:$0xff]  ;;  %v59_v5 = vld [vmem:[%s6557_s0 + $0x40] sm:$0xff]  ;;  %185 = vmatprep.mubr.f32.mxu0 %v6571_v8  ;;  %452 = vmatprep.mubr.f32.mxu1 %v6571_v8  ;;  %vm4777_vm2 = vmpackc.low %vm96_vm0, %vm4674_vm1  ;;  %vm83_vm3 = vcmask 228352  }
   0x5   :  { %v4106_v4 = vpack.c.bf16 %v60_v2, %v52_v1  ;;  %v68_v6 = vld [vmem:[%s6557_s0 + $0x88] sm:$0xff]  ;;  %v4108_v9 = vpack.c.bf16 %v59_v5, %v51_v3  ;;  %v67_v12 = vld [vmem:[%s6557_s0 + $0x80] sm:$0xff]  ;;  %v62_v16 = vld [vmem:[%s6557_s0 + $0x58] sm:$0xff] }
   0x6   :  { %v76_v7 = vld [vmem:[%s6557_s0 + $0xc8] sm:$0xf]  ;;  %v75_v13 = vld [vmem:[%s6557_s0 + $0xc0] sm:$0xf]  ;;  %v4116_v17 = vpack.c.bf16 %v62_v16, %v54_v14  ;;  %v53_v18 = vld [vmem:[%s6557_s0 + $0x10] sm:$0xff] }
   0x7   :  { %v4110_v10 = vpack.c.bf16 %v76_v7, %v68_v6  ;;  %4107 = vmatprep.subr.bf16.mxu0 %v4106_v4  ;;  %v4113_v15 = vpack.c.bf16 %v75_v13, %v67_v12  ;;  %v61_v19 = vld [vmem:[%s6557_s0 + $0x50] sm:$0xff]  ;;  %v70_v20 = vld [vmem:[%s6557_s0 + $0x98] sm:$0xff]  ;;  %v4812_v22 = vld [vmem:[%s6558_s1] sm:$0xff] }
   0x8   :  { %4109 = vmatpush1.bf16.msra.mxu0 %v4108_v9  ;;  %v78_v21 = vld [vmem:[%s6557_s0 + $0xd8] sm:$0xf]  ;;  %v4118_v23 = vpack.c.bf16 %v61_v19, %v53_v18  ;;  %v69_v27 = vld [vmem:[%s6557_s0 + $0x90] sm:$0xff]  ;;  %v56_v31 = vld [vmem:[%s6557_s0 + $0x28] sm:$0xff] }
   0x9   :  { %4112 = vmatprep.subr.msk.bf16.mxu0 %vm4777_vm2, %v4110_v10  ;;  %v58_v24 = vld [vmem:[%s6557_s0 + $0x38] sm:$0xff]  ;;  %v4120_v26 = vpack.c.bf16 %v78_v21, %v70_v20  ;;  %v77_v28 = vld [vmem:[%s6557_s0 + $0xd0] sm:$0xf]  ;;  %v64_v32 = vld [vmem:[%s6557_s0 + $0x68] sm:$0xff] }
   0xa   :  { %v66_v25 = vld [vmem:[%s6557_s0 + $0x78] sm:$0xff]  ;;  %v57_v30 = vld [vmem:[%s6557_s0 + $0x30] sm:$0xff]  ;;  %v48_v38 = vld [vmem:[%s6558_s1 + $0x8] sm:$0xff]  ;;  %v4123_v39 = vpack.c.bf16 %v77_v28, %v69_v27 }
   0xb   :  { %v4136_v29 = vpack.c.bf16 %v66_v25, %v58_v24  ;;  %v65_v33 = vld [vmem:[%s6557_s0 + $0x70] sm:$0xff]  ;;  %v74_v35 = vld [vmem:[%s6557_s0 + $0xb8] sm:$0xff] }
   0xc   :  { %4115 = vmatpush1.bf16.msk.msra.mxu0 %vm4777_vm2, %v4113_v15  ;;  %v4138_v34 = vpack.c.bf16 %v65_v33, %v57_v30  ;;  %v82_v36 = vld [vmem:[%s6557_s0 + $0xf8] sm:$0xf]  ;;  %v73_v37 = vld [vmem:[%s6557_s0 + $0xb0] sm:$0xff] }
   0xd   :  { %4117 = vmatprep.subr.bf16.mxu0 %v4116_v17  ;;  %4137 = vmatprep.subr.bf16.mxu1 %v4136_v29  ;;  %v4140_v40 = vpack.c.bf16 %v82_v36, %v74_v35  ;;  %v81_v41 = vld [vmem:[%s6557_s0 + $0xf0] sm:$0xf] }
   0xf   :  { %3373 = vmatmul.mubr.msk.f32.vlgmr.msra.gmra.mrb[0].mxu0 %vm83_vm3, %v4812_v22 }
  0x10   :  { %191 = vmatprep.mubr.f32.mxu0 %v6571_v8  ;;  %4119 = vmatpush1.bf16.msra.mxu0 %v4118_v23 }
  0x11   :  { %20 = vsyncpa [#allocation5], 0  ;;  %4122 = vmatprep.subr.msk.bf16.mxu0 %vm4777_vm2, %v4120_v26  ;;  %v4126_v42 = vpack.c.bf16 %v64_v32, %v56_v31  ;;  %4139 = vmatpush1.bf16.msra.mxu1 %v4138_v34  ;;  %v4143_v43 = vpack.c.bf16 %v81_v41, %v73_v37  ;;  %v49_v44 = vld [vmem:[%s6558_s1 + $0x10] sm:$0xff]  ;;  %v50_v45 = vld [vmem:[%s6558_s1 + $0x18] sm:$0xff]  ;;  %vm566_vm4 = vcmask 261120   ;;  %vm2381_vm5 = vcmask 523264  }
  0x12   :  { %4142 = vmatprep.subr.msk.bf16.mxu1 %vm4777_vm2, %v4140_v40  ;;  %v55_v46 = vld [vmem:[%s6557_s0 + $0x20] sm:$0xff]  ;;  %v72_v48 = vld [vmem:[%s6557_s0 + $0xa8] sm:$0xff]  ;;  %vm2604_vm6 = vcmask 293888   ;;  %vm2625_vm7 = vcmask 277520   ;;  %s4679_s18 = smov 125   ;;  %s4680_s21 = smov 124  }
  0x13   :  { %3374 = vmatmul.mubr.msk.f32.gmra.mrb[2].mxu0 %vm83_vm3, %v48_v38  ;;  %v63_v47 = vld [vmem:[%s6557_s0 + $0x60] sm:$0xff]  ;;  %v80_v49 = vld [vmem:[%s6557_s0 + $0xe8] sm:$0xf]  ;;  %vm4682_vm8 = vmmov 0   ;;  %s4683_s14 = smov [#allocation4]   ;;  %vm3355_vm9 = vcmask 253952  }
  0x14   :  { %197 = vmatprep.mubr.f32.mxu0 %v6571_v8  ;;  %4125 = vmatpush1.bf16.msk.msra.mxu0 %vm4777_vm2, %v4123_v39  ;;  %v4128_v50 = vpack.c.bf16 %v63_v47, %v55_v46  ;;  %v4130_v51 = vpack.c.bf16 %v80_v49, %v72_v48  ;;  %v71_v52 = vld [vmem:[%s6557_s0 + $0xa0] sm:$0xff]  ;;  %s3363_s15 = sshll.u32 %s4683_s14, 4  ;;  %s3364_s15 = int_to_ptr.vmem [resolvable:$true] %s3363_s15 }
  0x15   :  { %4127 = vmatprep.subr.bf16.mxu0 %v4126_v42  ;;  %4145 = vmatpush1.bf16.msk.msra.mxu1 %vm4777_vm2, %v4143_v43  ;;  %v79_v53 = vld [vmem:[%s6557_s0 + $0xe0] sm:$0xf]  ;;  %p4654_p1 = scmp.lt.s32.totalorder %s3364_s15, %s3364_s15 }
  0x16   :  { %v4133_v54 = vpack.c.bf16 %v79_v53, %v71_v52 }
  0x17   :  { %3375 = vmatmul.mubr.msk.f32.gmra.mrb[4].mxu0 %vm83_vm3, %v49_v44 }
  0x18   :  { %203 = vmatprep.mubr.f32.mxu0 %v6571_v8  ;;  %3391 = vmatmul.mubr.msk.f32.vlgmr.msra.gmra.mrb[0].mxu1 %vm83_vm3, %v4812_v22 }
  0x19   :  { %458 = vmatprep.mubr.f32.mxu1 %v6571_v8 }
  0x1b   :  { %3376 = vmatmul.mubr.msk.f32.gmra.mrb[6].mxu0 %vm83_vm3, %v50_v45 }
  0x1c   :  { %274 = vmatprep.mubr.f32.mxu0 %v6571_v8  ;;  %3392 = vmatmul.mubr.msk.f32.gmra.mrb[2].mxu1 %vm83_vm3, %v48_v38 }
  0x1d   :  { %464 = vmatprep.mubr.f32.mxu1 %v6571_v8 }
  0x1f   :  { %3379 = vmatmul.mubr.msk.f32.vlgmr.msra.gmra.mrb[8].mxu0 %vm83_vm3, %v4812_v22 }
  0x20   :  { %280 = vmatprep.mubr.f32.mxu0 %v6571_v8  ;;  %4129 = vmatpush1.bf16.msra.mxu0 %v4128_v50 }
  0x21   :  { %4132 = vmatprep.subr.msk.bf16.mxu0 %vm4777_vm2, %v4130_v51  ;;  %3393 = vmatmul.mubr.msk.f32.gmra.mrb[4].mxu1 %vm83_vm3, %v49_v44 }
  0x22   :  { %470 = vmatprep.mubr.f32.mxu1 %v6571_v8 }
  0x23   :  { %3380 = vmatmul.mubr.msk.f32.gmra.mrb[10].mxu0 %vm83_vm3, %v48_v38 }
  0x24   :  { %286 = vmatprep.mubr.f32.mxu0 %v6571_v8  ;;  %4135 = vmatpush1.bf16.msk.msra.mxu0 %vm4777_vm2, %v4133_v54 }
  0x25   :  { %3394 = vmatmul.mubr.msk.f32.gmra.mrb[6].mxu1 %vm83_vm3, %v50_v45 }
  0x26   :  { %878 = vmatprep.mubr.f32.mxu1 %v6571_v8 }
  0x27   :  { %3381 = vmatmul.mubr.msk.f32.gmra.mrb[12].mxu0 %vm83_vm3, %v49_v44 }
  0x28   :  { %292 = vmatprep.mubr.f32.mxu0 %v6571_v8 }
  0x2b   :  { %3382 = vmatmul.mubr.msk.f32.gmra.mrb[14].mxu0 %vm83_vm3, %v50_v45 }
  0x2c   :  { %363 = vmatprep.mubr.f32.mxu0 %v6571_v8 }
  0x2f   :  { %3385 = vmatmul.mubr.msk.f32.vlgmr.msra.gmra.mrb[16].mxu0 %vm83_vm3, %v4812_v22 }
  0x30   :  { %369 = vmatprep.mubr.f32.mxu0 %v6571_v8 }
  0x33   :  { %3386 = vmatmul.mubr.msk.f32.gmra.mrb[18].mxu0 %vm83_vm3, %v48_v38 }
  0x34   :  { %375 = vmatprep.mubr.f32.mxu0 %v6571_v8 }
  0x37   :  { %3387 = vmatmul.mubr.msk.f32.gmra.mrb[20].mxu0 %vm83_vm3, %v49_v44 }
  0x38   :  { %381 = vmatprep.mubr.f32.mxu0 %v6571_v8 }
  0x3b   :  { %3388 = vmatmul.mubr.msk.f32.gmra.mrb[22].mxu0 %vm83_vm3, %v50_v45 }
  0xe2   :  { %v4924_v55 = vpop.f32.mrb[0].mxu0 }
  0xe3   :  { %v4926_v56 = vpop.f32.mrb[1].mxu0 }
  0xe4   :  { %v477_v57 = vadd.f32 %v4926_v56, %v4924_v55  ;;  %v518_v58 = vmax.f32 %v4924_v55, %v4926_v56 }
  0xe6   :  { %v4932_v59 = vpop.f32.mrb[2].mxu0 }
  0xe7   :  { %v4934_v60 = vpop.f32.mrb[3].mxu0 }
  0xe8   :  { %v486_v61 = vadd.f32 %v4934_v60, %v4932_v59  ;;  %v527_v62 = vmax.f32 %v4932_v59, %v4934_v60 }
  0xea   :  { %v4940_v63 = vpop.f32.mrb[4].mxu0 }
  0xeb   :  { %v4942_v0 = vpop.f32.mrb[5].mxu0  ;;  %v4944_v1 = vpop.f32.mrb[0].mxu1 }
  0xec   :  { %v495_v2 = vadd.f32 %v4942_v0, %v4940_v63  ;;  %v536_v3 = vmax.f32 %v4940_v63, %v4942_v0  ;;  %v4950_v4 = vpop.f32.mrb[1].mxu1 }
  0xee   :  { %v4952_v5 = vpop.f32.mrb[6].mxu0 }
  0xef   :  { %v4954_v6 = vpop.f32.mrb[7].mxu0  ;;  %v4956_v7 = vpop.f32.mrb[2].mxu1 }
  0xf0   :  { %v504_v9 = vadd.f32 %v4954_v6, %v4952_v5  ;;  %v545_v10 = vmax.f32 %v4952_v5, %v4954_v6  ;;  %v4962_v12 = vpop.f32.mrb[3].mxu1 }
  0xf2   :  { %v4964_v13 = vpop.f32.mrb[8].mxu0 }
  0xf3   :  { %v478_v14 = vadd.f32 %v477_v57, %v4964_v13  ;;  %v519_v15 = vmax.f32 %v518_v58, %v4964_v13  ;;  %v4968_v16 = vpop.f32.mrb[9].mxu0 }
  0xf4   :  { %v4970_v17 = vpop.f32.mrb[4].mxu1 }
  0xf5   :  { %v479_v18 = vadd.f32 %v478_v14, %v4968_v16  ;;  %v520_v19 = vmax.f32 %v519_v15, %v4968_v16  ;;  %v4974_v20 = vpop.f32.mrb[5].mxu1 }
  0xf6   :  { %v4976_v21 = vpop.f32.mrb[10].mxu0 }
  0xf7   :  { %v487_v22 = vadd.f32 %v486_v61, %v4976_v21  ;;  %v528_v23 = vmax.f32 %v527_v62, %v4976_v21  ;;  %v4980_v24 = vpop.f32.mrb[11].mxu0 }
  0xf8   :  { %v4982_v25 = vpop.f32.mrb[6].mxu1 }
  0xf9   :  { %6594 = vst [vmem:[#allocation7_spill] sm:$0xff] %v4982_v25  ;;  %v488_v26 = vadd.f32 %v487_v22, %v4980_v24  ;;  %v529_v27 = vmax.f32 %v528_v23, %v4980_v24  ;;  %v4986_v28 = vpop.f32.mrb[7].mxu1 }
  0xfa   :  { %v4988_v29 = vpop.f32.mrb[12].mxu0 }
  0xfb   :  { %v496_v30 = vadd.f32 %v495_v2, %v4988_v29  ;;  %v537_v31 = vmax.f32 %v536_v3, %v4988_v29  ;;  %v4992_v32 = vpop.f32.mrb[13].mxu0 }
  0xfd   :  { %v497_v33 = vadd.f32 %v496_v30, %v4992_v32  ;;  %v538_v34 = vmax.f32 %v537_v31, %v4992_v32 }
  0xfe   :  { %v4996_v35 = vpop.f32.mrb[14].mxu0 }
  0xff   :  { %v505_v36 = vadd.f32 %v504_v9, %v4996_v35  ;;  %v546_v37 = vmax.f32 %v545_v10, %v4996_v35  ;;  %v5000_v38 = vpop.f32.mrb[15].mxu0 }
 0x101   :  { %v506_v39 = vadd.f32 %v505_v36, %v5000_v38  ;;  %v547_v40 = vmax.f32 %v546_v37, %v5000_v38 }
 0x102   :  { %v5004_v41 = vpop.f32.mrb[16].mxu0 }
 0x103   :  { %v480_v42 = vadd.f32 %v479_v18, %v5004_v41  ;;  %v521_v43 = vmax.f32 %v520_v19, %v5004_v41  ;;  %v5008_v44 = vpop.f32.mrb[17].mxu0 }
 0x105   :  { %v481_v45 = vadd.f32 %v480_v42, %v5008_v44  ;;  %v522_v46 = vmax.f32 %v521_v43, %v5008_v44 }
 0x106   :  { %v5012_v47 = vpop.f32.mrb[18].mxu0 }
 0x107   :  { %v489_v48 = vadd.f32 %v488_v26, %v5012_v47  ;;  %v530_v49 = vmax.f32 %v529_v27, %v5012_v47  ;;  %v5016_v50 = vpop.f32.mrb[19].mxu0  ;;  %v523_v51 = vmax.f32 %v522_v46, %v4944_v1  ;;  %v482_v52 = vadd.f32 %v481_v45, %v4944_v1  ;;  %v3408_v45 = vld [vmem:[%s6557_s0 + $0x108] sm:$0xff] }
 0x108   :  { %v3416_v46 = vld [vmem:[%s6557_s0 + $0x148] sm:$0xff] }
 0x109   :  { %v490_v53 = vadd.f32 %v489_v48, %v5016_v50  ;;  %v531_v54 = vmax.f32 %v530_v49, %v5016_v50  ;;  %v524_v57 = vmax.f32 %v523_v51, %v4950_v4  ;;  %v483_v58 = vadd.f32 %v482_v52, %v4950_v4  ;;  %v3407_v49 = vld [vmem:[%s6557_s0 + $0x100] sm:$0xff] }
 0x10a   :  { %v5024_v61 = vpop.f32.mrb[20].mxu0  ;;  %v4154_v48 = vpack.c.bf16 %v3416_v46, %v3408_v45  ;;  %v3415_v51 = vld [vmem:[%s6557_s0 + $0x140] sm:$0xff] }
 0x10b   :  { %v498_v62 = vadd.f32 %v497_v33, %v5024_v61  ;;  %v539_v2 = vmax.f32 %v538_v34, %v5024_v61  ;;  %525 = vmax.xlane.f32.xlu1 %v524_v57  ;;  %484 = vadd.xlane.f32.xlu0 %v483_v58  ;;  %v5028_v3 = vpop.f32.mrb[21].mxu0  ;;  %v532_v9 = vmax.f32 %v531_v54, %v4956_v7  ;;  %v3432_v54 = vld [vmem:[%s6557_s0 + $0x1c8] sm:$0xf]  ;;  %v3423_v58 = vld [vmem:[%s6557_s0 + $0x180] sm:$0xff] }
 0x10c   :  { %v491_v10 = vadd.f32 %v490_v53, %v4956_v7  ;;  %v4156_v52 = vpack.c.bf16 %v3415_v51, %v3407_v49  ;;  %4155 = vmatprep.subr.bf16.mxu1 %v4154_v48  ;;  %v3424_v53 = vld [vmem:[%s6557_s0 + $0x188] sm:$0xff] }
 0x10d   :  { %v499_v14 = vadd.f32 %v498_v62, %v5028_v3  ;;  %v540_v15 = vmax.f32 %v539_v2, %v5028_v3  ;;  %v533_v18 = vmax.f32 %v532_v9, %v4962_v12  ;;  %v4158_v57 = vpack.c.bf16 %v3432_v54, %v3424_v53  ;;  %v3431_v62 = vld [vmem:[%s6557_s0 + $0x1c0] sm:$0xf] }
 0x10e   :  { %v5035_v19 = vpop.f32.mrb[22].mxu0  ;;  %v492_v22 = vadd.f32 %v491_v10, %v4962_v12  ;;  %4157 = vmatpush1.bf16.msra.mxu1 %v4156_v52  ;;  %v4161_v2 = vpack.c.bf16 %v3431_v62, %v3423_v58  ;;  %v5083_v9 = vld [vmem:[%s6558_s1 + $0x20] sm:$0xff] }
 0x10f   :  { %v507_v23 = vadd.f32 %v506_v39, %v5035_v19  ;;  %v548_v26 = vmax.f32 %v547_v40, %v5035_v19  ;;  %534 = vmax.xlane.f32.xlu1 %v533_v18  ;;  %v5040_v27 = vpop.f32.mrb[23].mxu0  ;;  %v500_v30 = vadd.f32 %v499_v14, %v4970_v17  ;;  %v541_v31 = vmax.f32 %v540_v15, %v4970_v17  ;;  %v558_v10 = vld [vmem:[%s6559_s2] sm:$0xff]  ;;  %v5095_v14 = vld [vmem:[%s6558_s1 + $0x28] sm:$0xff] }
 0x110   :  { %493 = vadd.xlane.f32.xlu0 %v492_v22  ;;  %4160 = vmatprep.subr.msk.bf16.mxu1 %vm4777_vm2, %v4158_v57  ;;  %v3412_v15 = vld [vmem:[%s6557_s0 + $0x128] sm:$0xff]  ;;  %v5109_v22 = vld [vmem:[%s6558_s1 + $0x30] sm:$0xff] }
 0x111   :  { %v508_v33 = vadd.f32 %v507_v23, %v5040_v27  ;;  %v549_v34 = vmax.f32 %v548_v26, %v5040_v27  ;;  %v501_v36 = vadd.f32 %v500_v30, %v4974_v20  ;;  %v542_v37 = vmax.f32 %v541_v31, %v4974_v20  ;;  %3969 = vmatprep.mubr.msk.f32.mxu0 %vm566_vm4, %v558_v10  ;;  %v3420_v18 = vld [vmem:[%s6557_s0 + $0x168] sm:$0xff]  ;;  %v3411_v26 = vld [vmem:[%s6557_s0 + $0x120] sm:$0xff] }
 0x112   :  { %4163 = vmatpush1.bf16.msk.msra.mxu1 %vm4777_vm2, %v4161_v2  ;;  %v4174_v23 = vpack.c.bf16 %v3420_v18, %v3412_v15  ;;  %v3419_v30 = vld [vmem:[%s6557_s0 + $0x160] sm:$0xff]  ;;  %v3410_v18 = vld [vmem:[%s6557_s0 + $0x118] sm:$0xff] }
 0x113   :  { %v509_v39 = vadd.f32 %v508_v33, %v4982_v25  ;;  %v550_v40 = vmax.f32 %v549_v34, %v4982_v25  ;;  %v4176_v31 = vpack.c.bf16 %v3419_v30, %v3411_v26  ;;  %v5123_v33 = vld [vmem:[%s6558_s1 + $0x38] sm:$0xff]  ;;  %v3428_v34 = vld [vmem:[%s6557_s0 + $0x1a8] sm:$0xff] }
 0x114   :  { %502 = vadd.xlane.f32.xlu0 %v501_v36  ;;  %4175 = vmatprep.subr.bf16.mxu1 %v4174_v23  ;;  %v3436_v36 = vld [vmem:[%s6557_s0 + $0x1e8] sm:$0xf]  ;;  %v3418_v23 = vld [vmem:[%s6557_s0 + $0x158] sm:$0xff] }
 0x115   :  { %v510_v42 = vadd.f32 %v509_v39, %v4986_v28  ;;  %v551_v43 = vmax.f32 %v550_v40, %v4986_v28  ;;  %3441 = vmatmul.mubr.msk.f32.vlgmr.msra.gmra.mrb[8].mxu1 %vm83_vm3, %v5083_v9  ;;  %v3427_v39 = vld [vmem:[%s6557_s0 + $0x1a0] sm:$0xff] }
 0x116   :  { %884 = vmatprep.mubr.f32.mxu1 %v6571_v8  ;;  %4177 = vmatpush1.bf16.msra.mxu1 %v4176_v31  ;;  %v3435_v40 = vld [vmem:[%s6557_s0 + $0x1e0] sm:$0xf] }
 0x117   :  { %511 = vadd.xlane.f32.xlu1 %v510_v42  ;;  %v4181_v42 = vpack.c.bf16 %v3435_v40, %v3427_v39  ;;  %v3426_v39 = vld [vmem:[%s6557_s0 + $0x198] sm:$0xff] }
 0x118   :  { %543 = vmax.xlane.f32.xlu0 %v542_v37  ;;  %v4178_v37 = vpack.c.bf16 %v3436_v36, %v3428_v34  ;;  %v4164_v34 = vpack.c.bf16 %v3418_v23, %v3410_v18  ;;  %v3409_v36 = vld [vmem:[%s6557_s0 + $0x110] sm:$0xff]  ;;  %v3434_v40 = vld [vmem:[%s6557_s0 + $0x1d8] sm:$0xf] }
 0x119   :  { %3442 = vmatmul.mubr.msk.f32.gmra.mrb[10].mxu1 %vm83_vm3, %v5095_v14  ;;  %v3429_v23 = vld [vmem:[%s6557_s0 + $0x1b0] sm:$0xff] }
 0x11a   :  { %890 = vmatprep.mubr.f32.mxu1 %v6571_v8  ;;  %4180 = vmatprep.subr.msk.bf16.mxu1 %vm4777_vm2, %v4178_v37  ;;  %v3417_v37 = vld [vmem:[%s6557_s0 + $0x150] sm:$0xff] }
 0x11b   :  { %552 = vmax.xlane.f32.xlu1 %v551_v43  ;;  %4183 = vmatpush1.bf16.msk.msra.mxu1 %vm4777_vm2, %v4181_v42  ;;  %v559_v42 = vld [vmem:[%s6559_s2 + $0x8] sm:$0xff] }
 0x11d   :  { %3443 = vmatmul.mubr.msk.f32.gmra.mrb[12].mxu1 %vm83_vm3, %v5109_v22 }
 0x11e   :  { %896 = vmatprep.mubr.f32.mxu1 %v6571_v8 }
 0x121   :  { %3444 = vmatmul.mubr.msk.f32.gmra.mrb[14].mxu1 %vm83_vm3, %v5123_v33 }
 0x122   :  { %1056 = vmatprep.mubr.f32.mxu1 %v6571_v8 }
 0x125   :  { %3453 = vmatmul.mubr.msk.f32.vlgmr.msra.gmra.mrb[16].mxu1 %vm83_vm3, %v5083_v9 }
 0x126   :  { %1062 = vmatprep.mubr.f32.mxu1 %v6571_v8 }
 0x129   :  { %3454 = vmatmul.mubr.msk.f32.gmra.mrb[18].mxu1 %vm83_vm3, %v5095_v14 }
 0x12a   :  { %1068 = vmatprep.mubr.f32.mxu1 %v6571_v8 }
 0x12d   :  { %3455 = vmatmul.mubr.msk.f32.gmra.mrb[20].mxu1 %vm83_vm3, %v5109_v22 }
 0x12e   :  { %1074 = vmatprep.mubr.f32.mxu1 %v6571_v8 }
 0x131   :  { %3456 = vmatmul.mubr.msk.f32.gmra.mrb[22].mxu1 %vm83_vm3, %v5123_v33 }
 0x198   :  { %v485_v43 = vpop.xlane.xlu0 %484  ;;  %v526_v45 = vpop.xlane.xlu1 %525 }
 0x199   :  { %v514_v46 = vmul.f32 0.0009765625, %v485_v43  ;;  %v4166_v43 = vpack.c.bf16 %v3417_v37, %v3409_v36 }
 0x19b   :  { %v554_v52 = vadd.f32 %v526_v45, %v514_v46  ;;  %v560_v45 = vld [vmem:[%s6559_s2 + $0x10] sm:$0xff]  ;;  %v4168_v46 = vpack.c.bf16 %v3434_v40, %v3426_v39 }
 0x19c   :  { %v535_v51 = vpop.xlane.xlu1 %534 }
 0x19d   :  { %v494_v48 = vpop.xlane.xlu0 %493 }
 0x19e   :  { %v515_v49 = vmul.f32 0.0009765625, %v494_v48  ;;  %v3425_v48 = vld [vmem:[%s6557_s0 + $0x190] sm:$0xff] }
 0x1a0   :  { %v555_v53 = vadd.f32 %v535_v51, %v515_v49  ;;  %v3433_v49 = vld [vmem:[%s6557_s0 + $0x1d0] sm:$0xf]  ;;  %v3414_v51 = vld [vmem:[%s6557_s0 + $0x138] sm:$0xff] }
 0x1a1   :  { %v503_v54 = vpop.xlane.xlu0 %502 }
 0x1a2   :  { %v4146_v57 = vpack.c.bf16 %v555_v53, %v554_v52  ;;  %v516_v2 = vmul.f32 0.0009765625, %v503_v54  ;;  %v3422_v52 = vld [vmem:[%s6557_s0 + $0x178] sm:$0xff]  ;;  %v4171_v54 = vpack.c.bf16 %v3433_v49, %v3425_v48 }
 0x1a3   :  { %v561_v53 = vld [vmem:[%s6559_s2 + $0x18] sm:$0xff] }
 0x1a4   :  { %4147 = vmatprep.subr.bf16.mxu0 %v4146_v57  ;;  %v512_v58 = vpop.xlane.xlu1 %511 }
 0x1a5   :  { %4149 = vmatpush3.bf16.msra.mxu0 %v4146_v57  ;;  %v544_v62 = vpop.xlane.xlu0 %543  ;;  %v517_v10 = vmul.f32 0.0009765625, %v512_v58  ;;  %v4184_v57 = vpack.c.bf16 %v3422_v52, %v3414_v51  ;;  %v3413_v58 = vld [vmem:[%s6557_s0 + $0x130] sm:$0xff] }
 0x1a6   :  { %v556_v26 = vadd.f32 %v544_v62, %v516_v2  ;;  %v3421_v62 = vld [vmem:[%s6557_s0 + $0x170] sm:$0xff]  ;;  %v3430_v2 = vld [vmem:[%s6557_s0 + $0x1b8] sm:$0xff] }
 0x1a8   :  { %v553_v15 = vpop.xlane.xlu1 %552 }
 0x1a9   :  { %v557_v30 = vadd.f32 %v553_v15, %v517_v10  ;;  %v3438_v10 = vld [vmem:[%s6557_s0 + $0x1f8] sm:$0xf]  ;;  %v4186_v15 = vpack.c.bf16 %v3421_v62, %v3413_v58 }
 0x1aa   :  { %v4188_v18 = vpack.c.bf16 %v3438_v10, %v3430_v2  ;;  %v4675_v2 = vmov 0   ;;  %v1449_v10 = vld [vmem:[%s6561_s4 + $0x80] sm:$0xff] }
 0x1ab   :  { %v4150_v31 = vpack.c.bf16 %v557_v30, %v556_v26  ;;  %v3437_v26 = vld [vmem:[%s6557_s0 + $0x1f0] sm:$0xf]  ;;  %4560 = vset.pattern.permute.xlu1 %v4675_v2  ;;  %4559 = vset.pattern.permute.xlu0 %v4675_v2  ;;  %v1452_v2 = vld [vmem:[%s6561_s4 + $0x98] sm:$0xff]  ;;  %s4653_s0 = scalar_lea.vmem %s3364_s15, 32 }
 0x1ac   :  { %v4191_v30 = vpack.c.bf16 %v3437_v26, %v3429_v23  ;;  %v1434_v26 = vld [vmem:[%s6561_s4 + $0x8] sm:$0xff] }
 0x1ad   :  { %4151 = vmatprep.subr.bf16.mxu0 %v4150_v31 }
 0x1ae   :  { %4153 = vmatpush3.bf16.msra.mxu0 %v4150_v31 }
 0x1af   :  { %4165 = vmatprep.subr.bf16.mxu0 %v4164_v34 }
 0x1b1   :  { %3970 = vmatmul.mubr.msk.f32.vlgmr.msra.gmra.mrb[24].mxu0 %vm566_vm4, %v559_v42 }
 0x1b2   :  { %4167 = vmatpush1.bf16.msra.mxu0 %v4166_v43  ;;  %3972 = vmatprep.mubr.msk.f32.mxu0 %vm566_vm4, %v560_v45 }
 0x1b3   :  { %4170 = vmatprep.subr.msk.bf16.mxu0 %vm4777_vm2, %v4168_v46 }
 0x1b5   :  { %3973 = vmatmul.mubr.msk.f32.gmra.mrb[26].mxu0 %vm566_vm4, %v561_v53 }
 0x1b6   :  { %4173 = vmatpush1.bf16.msk.msra.mxu0 %vm4777_vm2, %v4171_v54  ;;  %967 = vmatprep.mubr.f32.mxu0 %v6571_v8 }
 0x1b7   :  { %4185 = vmatprep.subr.bf16.mxu0 %v4184_v57 }
 0x1b9   :  { %3447 = vmatmul.mubr.msk.f32.vlgmr.msra.gmra.mrb[28].mxu0 %vm83_vm3, %v5083_v9 }
 0x1ba   :  { %973 = vmatprep.mubr.f32.mxu0 %v6571_v8  ;;  %4187 = vmatpush1.bf16.msra.mxu0 %v4186_v15  ;;  %v1450_v15 = vld [vmem:[%s6561_s4 + $0x88] sm:$0xff] }
 0x1bb   :  { %4190 = vmatprep.subr.msk.bf16.mxu0 %vm4777_vm2, %v4188_v18  ;;  %v1433_v18 = vld [vmem:[%s6561_s4] sm:$0xff]  ;;  %v4202_v23 = vpack.c.bf16 %v1450_v15, %v1449_v10  ;;  %v1436_v10 = vld [vmem:[%s6561_s4 + $0x18] sm:$0xff] }
 0x1bc   :  { %v1453_v15 = vld [vmem:[%s6561_s4 + $0xa0] sm:$0xff] }
 0x1bd   :  { %3448 = vmatmul.mubr.msk.f32.gmra.mrb[30].mxu0 %vm83_vm3, %v5095_v14 }
 0x1be   :  { %979 = vmatprep.mubr.f32.mxu0 %v6571_v8  ;;  %4193 = vmatpush1.bf16.msk.msra.mxu0 %vm4777_vm2, %v4191_v30  ;;  %v1451_v30 = vld [vmem:[%s6561_s4 + $0x90] sm:$0xff] }
 0x1bf   :  { %v4206_v51 = vpack.c.bf16 %v1452_v2, %v1451_v30  ;;  %4203 = vmatprep.subr.bf16.mxu0 %v4202_v23  ;;  %v1437_v30 = vld [vmem:[%s6561_s4 + $0x20] sm:$0xff]  ;;  %v1438_v2 = vld [vmem:[%s6561_s4 + $0x28] sm:$0xff] }
 0x1c1   :  { %3449 = vmatmul.mubr.msk.f32.gmra.mrb[32].mxu0 %vm83_vm3, %v5109_v22 }
 0x1c2   :  { %985 = vmatprep.mubr.f32.mxu0 %v6571_v8 }
 0x1c5   :  { %3450 = vmatmul.mubr.msk.f32.gmra.mrb[34].mxu0 %vm83_vm3, %v5123_v33 }
 0x1c6   :  { %1145 = vmatprep.mubr.f32.mxu0 %v6571_v8 }
 0x1c9   :  { %3459 = vmatmul.mubr.msk.f32.vlgmr.msra.gmra.mrb[36].mxu0 %vm83_vm3, %v5083_v9 }
 0x1ca   :  { %1151 = vmatprep.mubr.f32.mxu0 %v6571_v8 }
 0x1cd   :  { %3460 = vmatmul.mubr.msk.f32.gmra.mrb[38].mxu0 %vm83_vm3, %v5095_v14 }
 0x1ce   :  { %1157 = vmatprep.mubr.f32.mxu0 %v6571_v8 }
 0x1d1   :  { %3461 = vmatmul.mubr.msk.f32.gmra.mrb[40].mxu0 %vm83_vm3, %v5109_v22 }
 0x1d2   :  { %1163 = vmatprep.mubr.f32.mxu0 %v6571_v8  ;;  %v4204_v8 = vpack.c.bf16 %v1434_v26, %v1433_v18 }
 0x1d4   :  { %4205 = vmatpush3.bf16.msra.mxu0 %v4204_v8 }
 0x1d5   :  { %3462 = vmatmul.mubr.msk.f32.gmra.mrb[42].mxu0 %vm83_vm3, %v5123_v33  ;;  %4207 = vmatprep.subr.bf16.mxu0 %v4206_v51 }
 0x1e8   :  { %v5247_v11 = vpop.f32.mrb[8].mxu1 }
 0x1e9   :  { %6595 = vst [vmem:[#allocation8_spill] sm:$0xff] %v5247_v11  ;;  %v5249_v31 = vpop.f32.mrb[9].mxu1 }
 0x1ea   :  { %6596 = vst [vmem:[#allocation9_spill] sm:$0xff] %v5249_v31  ;;  %v1170_v9 = vadd.f32 %v5249_v31, %v5247_v11  ;;  %v1210_v14 = vmax.f32 %v5247_v11, %v5249_v31 }
 0x1ec   :  { %v5255_v34 = vpop.f32.mrb[10].mxu1 }
 0x1ed   :  { %6597 = vst [vmem:[#allocation10_spill] sm:$0xff] %v5255_v34  ;;  %v5257_v36 = vpop.f32.mrb[11].mxu1 }
 0x1ee   :  { %6598 = vst [vmem:[#allocation11_spill] sm:$0xff] %v5257_v36  ;;  %v1179_v37 = vadd.f32 %v5257_v36, %v5255_v34  ;;  %v1219_v33 = vmax.f32 %v5255_v34, %v5257_v36  ;;  %v4212_v34 = vpack.c.bf16 %v1438_v2, %v1437_v30 }
 0x1f0   :  { %v5259_v22 = vpop.f32.mrb[12].mxu1 }
 0x1f1   :  { %6599 = vst [vmem:[#allocation12_spill] sm:$0xff] %v5259_v22  ;;  %v5265_v39 = vpop.f32.mrb[13].mxu1 }
 0x1f2   :  { %6600 = vst [vmem:[#allocation13_spill] sm:$0xff] %v5265_v39  ;;  %v1188_v43 = vadd.f32 %v5265_v39, %v5259_v22  ;;  %v1228_v45 = vmax.f32 %v5259_v22, %v5265_v39  ;;  %v1435_v22 = vld [vmem:[%s6561_s4 + $0x10] sm:$0xff]  ;;  %v1454_v39 = vld [vmem:[%s6561_s4 + $0xa8] sm:$0xff] }
 0x1f3   :  { %v4208_v18 = vpack.c.bf16 %v1436_v10, %v1435_v22  ;;  %v4210_v26 = vpack.c.bf16 %v1454_v39, %v1453_v15 }
 0x1f4   :  { %v5267_v40 = vpop.f32.mrb[14].mxu1 }
 0x1f5   :  { %6601 = vst [vmem:[#allocation14_spill] sm:$0xff] %v5267_v40  ;;  %v5269_v42 = vpop.f32.mrb[15].mxu1  ;;  %4209 = vmatpush3.bf16.msra.mxu0 %v4208_v18 }
 0x1f6   :  { %6602 = vst [vmem:[#allocation15_spill] sm:$0xff] %v5269_v42  ;;  %v5281_v49 = vadd.f32 %v5269_v42, %v5267_v40  ;;  %4211 = vmatprep.subr.bf16.mxu0 %v4210_v26 }
 0x1f8   :  { %v5275_v46 = vpop.f32.mrb[16].mxu1 }
 0x1f9   :  { %6603 = vst [vmem:[#allocation16_spill] sm:$0xff] %v5275_v46  ;;  %v5277_v48 = vpop.f32.mrb[17].mxu1  ;;  %4213 = vmatpush3.bf16.msra.mxu0 %v4212_v34 }
 0x1fa   :  { %6604 = vst [vmem:[#allocation17_spill] sm:$0xff] %v5277_v48 }
 0x1fc   :  { %v5285_v52 = vpop.f32.mrb[18].mxu1 }
 0x1fd   :  { %6605 = vst [vmem:[#allocation18_spill] sm:$0xff] %v5285_v52  ;;  %v5287_v53 = vpop.f32.mrb[19].mxu1 }
 0x1fe   :  { %6606 = vst [vmem:[#allocation19_spill] sm:$0xff] %v5287_v53 }
 0x200   :  { %v5289_v54 = vpop.f32.mrb[20].mxu1 }
 0x201   :  { %6607 = vst [vmem:[#allocation20_spill] sm:$0xff] %v5289_v54  ;;  %v5291_v57 = vpop.f32.mrb[21].mxu1 }
 0x204   :  { %v5293_v58 = vpop.f32.mrb[22].mxu1 }
 0x205   :  { %6608 = vst [vmem:[#allocation21_spill] sm:$0xff] %v5293_v58  ;;  %v5295_v62 = vpop.f32.mrb[23].mxu1 }
 0x284   :  { %v3971_v23 = vpop.f32.mrb[24].mxu0 }
 0x285   :  { %v645_v36 = vpop.f32.mrb[25].mxu0 }
 0x288   :  { %v5333_v11 = vpop.f32.mrb[26].mxu0 }
 0x289   :  { %v655_v8 = vpop.f32.mrb[27].mxu0 }
 0x28c   :  { %v5335_v22 = vpop.f32.mrb[28].mxu0 }
 0x28d   :  { %6609 = vst [vmem:[#allocation22_spill] sm:$0xff] %v5335_v22  ;;  %v1171_v39 = vadd.f32 %v1170_v9, %v5335_v22  ;;  %v1211_v51 = vmax.f32 %v1210_v14, %v5335_v22  ;;  %v5339_v10 = vpop.f32.mrb[29].mxu0 }
 0x28f   :  { %v1172_v15 = vadd.f32 %v1171_v39, %v5339_v10  ;;  %v1212_v18 = vmax.f32 %v1211_v51, %v5339_v10 }
 0x290   :  { %v5343_v30 = vpop.f32.mrb[30].mxu0 }
 0x291   :  { %6610 = vst [vmem:[#allocation23_spill] sm:$0xff] %v5343_v30  ;;  %v1180_v34 = vadd.f32 %v1179_v37, %v5343_v30  ;;  %v1220_v26 = vmax.f32 %v1219_v33, %v5343_v30  ;;  %v1173_v2 = vadd.f32 %v1172_v15, %v5275_v46  ;;  %v1213_v31 = vmax.f32 %v1212_v18, %v5275_v46  ;;  %v5349_v25 = vpop.f32.mrb[31].mxu0 }
 0x293   :  { %v1181_v9 = vadd.f32 %v1180_v34, %v5349_v25  ;;  %v1221_v14 = vmax.f32 %v1220_v26, %v5349_v25  ;;  %v1174_v39 = vadd.f32 %v1173_v2, %v5277_v48  ;;  %v1214_v51 = vmax.f32 %v1213_v31, %v5277_v48 }
 0x294   :  { %v5355_v22 = vpop.f32.mrb[32].mxu0 }
 0x295   :  { %v1189_v37 = vadd.f32 %v1188_v43, %v5355_v22  ;;  %v1229_v33 = vmax.f32 %v1228_v45, %v5355_v22  ;;  %v1182_v15 = vadd.f32 %v1181_v9, %v5285_v52  ;;  %v5360_v30 = vpop.f32.mrb[33].mxu0  ;;  %v1222_v18 = vmax.f32 %v1221_v14, %v5285_v52 }
 0x296   :  { %v6612_v45 = vmax.f32 %v5267_v40, %v5269_v42 }
 0x297   :  { %v1190_v34 = vadd.f32 %v1189_v37, %v5360_v30  ;;  %v1230_v26 = vmax.f32 %v1229_v33, %v5360_v30  ;;  %v1183_v2 = vadd.f32 %v1182_v15, %v5287_v53  ;;  %v1223_v31 = vmax.f32 %v1222_v18, %v5287_v53  ;;  %v563_v33 = vld [vmem:[%s6560_s3 + $0x8] sm:$0xff]  ;;  %v562_v15 = vld [vmem:[%s6560_s3] sm:$0xff] }
 0x298   :  { %v5367_v46 = vpop.f32.mrb[34].mxu0  ;;  %v651_v42 = vadd.f32 %v3971_v23, %v563_v33 }
 0x299   :  { %6611 = vst [vmem:[#allocation24_spill] sm:$0xff] %v5367_v46  ;;  %v1198_v43 = vadd.f32 %v5281_v49, %v5367_v46  ;;  %v1238_v9 = vmax.f32 %v6612_v45, %v5367_v46  ;;  %v1191_v14 = vadd.f32 %v1190_v34, %v5289_v54  ;;  %v5376_v52 = vpop.f32.mrb[35].mxu0  ;;  %v1231_v37 = vmax.f32 %v1230_v26, %v5289_v54 }
 0x29b   :  { %v1199_v49 = vadd.f32 %v1198_v43, %v5376_v52  ;;  %v1239_v18 = vmax.f32 %v1238_v9, %v5376_v52  ;;  %v1192_v45 = vadd.f32 %v1191_v14, %v5291_v57  ;;  %v1232_v34 = vmax.f32 %v1231_v37, %v5291_v57  ;;  %v564_v9 = vld [vmem:[%s6560_s3 + $0x10] sm:$0xff] }
 0x29c   :  { %v5389_v53 = vpop.f32.mrb[36].mxu0  ;;  %v646_v43 = vadd.f32 %v645_v36, %v562_v15  ;;  %v656_v33 = vadd.f32 %v655_v8, %v564_v9 }
 0x29d   :  { %v1200_v26 = vadd.f32 %v1199_v49, %v5293_v58  ;;  %v1240_v54 = vmax.f32 %v1239_v18, %v5293_v58  ;;  %v5393_v48 = vpop.f32.mrb[37].mxu0  ;;  %v1175_v46 = vadd.f32 %v1174_v39, %v5389_v53  ;;  %v1215_v40 = vmax.f32 %v1214_v51, %v5389_v53 }
 0x29e   :  { %v3400_v51 = vmul.f32 -1.442695, %v651_v42  ;;  %v3399_v15 = vmul.f32 -1.442695, %v646_v43 }
 0x29f   :  { %v1201_v14 = vadd.f32 %v1200_v26, %v5295_v62  ;;  %v1241_v37 = vmax.f32 %v1240_v54, %v5295_v62  ;;  %v1176_v49 = vadd.f32 %v1175_v46, %v5393_v48  ;;  %v1216_v18 = vmax.f32 %v1215_v40, %v5393_v48  ;;  %v565_v54 = vld [vmem:[%s6560_s3 + $0x18] sm:$0xff] }
 0x2a0   :  { %v5404_v58 = vpop.f32.mrb[38].mxu0  ;;  %4601 = vpow2.f32 %v3400_v51  ;;  %v661_v8 = vadd.f32 %v5333_v11, %v565_v54 }
 0x2a1   :  { %1177 = vadd.xlane.f32.xlu0 %v1176_v49  ;;  %v5406_v39 = vpop.f32.mrb[39].mxu0  ;;  %v1184_v23 = vadd.f32 %v1183_v2, %v5404_v58  ;;  %v1224_v36 = vmax.f32 %v1223_v31, %v5404_v58  ;;  %v3401_v31 = vmul.f32 -1.442695, %v656_v33  ;;  %4603 = vpow2.f32 %v3399_v15  ;;  %v1455_v33 = vld [vmem:[%s6561_s4 + $0xb0] sm:$0xff]  ;;  %v1456_v15 = vld [vmem:[%s6561_s4 + $0xb8] sm:$0xff] }
 0x2a2   :  { %v4214_v54 = vpack.c.bf16 %v1456_v15, %v1455_v33  ;;  %v1459_v33 = vld [vmem:[%s6561_s4 + $0xd0] sm:$0xff]  ;;  %v1460_v15 = vld [vmem:[%s6561_s4 + $0xd8] sm:$0xff] }
 0x2a3   :  { %v1185_v46 = vadd.f32 %v1184_v23, %v5406_v39  ;;  %v1225_v40 = vmax.f32 %v1224_v36, %v5406_v39  ;;  %4605 = vpow2.f32 %v3401_v31  ;;  %v1458_v31 = vld [vmem:[%s6561_s4 + $0xc8] sm:$0xff] }
 0x2a4   :  { %v5415_v26 = vpop.f32.mrb[40].mxu0  ;;  %4215 = vmatprep.subr.bf16.mxu0 %v4214_v54  ;;  %v1443_v54 = vld [vmem:[%s6561_s4 + $0x50] sm:$0xff] }
 0x2a5   :  { %1217 = vmax.xlane.f32.xlu0 %v1216_v18  ;;  %1186 = vadd.xlane.f32.xlu1 %v1185_v46  ;;  %v5417_v49 = vpop.f32.mrb[41].mxu0  ;;  %v1193_v2 = vadd.f32 %v1192_v45, %v5415_v26  ;;  %v1233_v42 = vmax.f32 %v1232_v34, %v5415_v26  ;;  %v3402_v34 = vmul.f32 -1.442695, %v661_v8  ;;  %v1440_v46 = vld [vmem:[%s6561_s4 + $0x38] sm:$0xff]  ;;  %v1457_v8 = vld [vmem:[%s6561_s4 + $0xc0] sm:$0xff] }
 0x2a7   :  { %v1194_v43 = vadd.f32 %v1193_v2, %v5417_v49  ;;  %v1234_v9 = vmax.f32 %v1233_v42, %v5417_v49  ;;  %4607 = vpow2.f32 %v3402_v34  ;;  %v1442_v34 = vld [vmem:[%s6561_s4 + $0x48] sm:$0xff] }
 0x2a8   :  { %v5424_v23 = vpop.f32.mrb[42].mxu0 }
 0x2a9   :  { %6613 = vst [vmem:[#allocation25_spill] sm:$0xff] %v5424_v23  ;;  %1226 = vmax.xlane.f32.xlu1 %v1225_v40  ;;  %1195 = vadd.xlane.f32.xlu0 %v1194_v43  ;;  %v5426_v18 = vpop.f32.mrb[43].mxu0  ;;  %v1202_v36 = vadd.f32 %v1201_v14, %v5424_v23  ;;  %v1242_v45 = vmax.f32 %v1241_v37, %v5424_v23  ;;  %v1439_v14 = vld [vmem:[%s6561_s4 + $0x30] sm:$0xff]  ;;  %v1441_v43 = vld [vmem:[%s6561_s4 + $0x40] sm:$0xff] }
 0x2aa   :  { %v4602_v37 = vpop.eup %4601  ;;  %v4216_v2 = vpack.c.bf16 %v1440_v46, %v1439_v14  ;;  %v1444_v46 = vld [vmem:[%s6561_s4 + $0x58] sm:$0xff] }
 0x2ab   :  { %v1203_v11 = vadd.f32 %v1202_v36, %v5426_v18  ;;  %v1243_v51 = vmax.f32 %v1242_v45, %v5426_v18  ;;  %v4604_v40 = vpop.eup %4603  ;;  %v677_v42 = vadd.f32 1.0, %v4602_v37  ;;  %v4218_v45 = vpack.c.bf16 %v1458_v31, %v1457_v8  ;;  %v1462_v8 = vld [vmem:[%s6561_s4 + $0xe8] sm:$0xff] }
 0x2ac   :  { %4217 = vmatpush3.bf16.msra.mxu0 %v4216_v2  ;;  %v676_v36 = vadd.f32 1.0, %v4604_v40  ;;  %v4222_v37 = vpack.c.bf16 %v1460_v15, %v1459_v33  ;;  %v4224_v40 = vpack.c.bf16 %v1444_v46, %v1443_v54  ;;  %v1448_v33 = vld [vmem:[%s6561_s4 + $0x78] sm:$0xff]  ;;  %v1513_v54 = vld [vmem:[%s6561_s4 + $0x280] sm:$0xff]  ;;  %v1514_v46 = vld [vmem:[%s6561_s4 + $0x288] sm:$0xff] }
 0x2ad   :  { %1235 = vmax.xlane.f32.xlu0 %v1234_v9  ;;  %1204 = vadd.xlane.f32.xlu1 %v1203_v11  ;;  %v4606_v9 = vpop.eup %4605  ;;  %v4220_v11 = vpack.c.bf16 %v1442_v34, %v1441_v43  ;;  %4609 = vrcp.f32 %v677_v42  ;;  %v1461_v42 = vld [vmem:[%s6561_s4 + $0xe0] sm:$0xff]  ;;  %v1464_v34 = vld [vmem:[%s6561_s4 + $0xf8] sm:$0xff] }
 0x2ae   :  { %4219 = vmatprep.subr.bf16.mxu0 %v4218_v45  ;;  %4611 = vrcp.f32 %v676_v36  ;;  %v4226_v31 = vpack.c.bf16 %v1462_v8, %v1461_v42  ;;  %v1445_v43 = vld [vmem:[%s6561_s4 + $0x60] sm:$0xff]  ;;  %v1463_v45 = vld [vmem:[%s6561_s4 + $0xf0] sm:$0xff] }
 0x2af   :  { %v3463_v42 = vld [vmem:[%s6559_s2 + $0x20] sm:$0xff] }
 0x2b0   :  { %4221 = vmatpush3.bf16.msra.mxu0 %v4220_v11  ;;  %v4230_v11 = vpack.c.bf16 %v1464_v34, %v1463_v45  ;;  %3983 = vmatprep.mubr.msk.f32.mxu1 %vm566_vm4, %v3463_v42 }
 0x2b1   :  { %1244 = vmax.xlane.f32.xlu1 %v1243_v51  ;;  %v678_v51 = vadd.f32 1.0, %v4606_v9  ;;  %v4608_v14 = vpop.eup %4607  ;;  %4223 = vmatprep.subr.bf16.mxu0 %v4222_v37  ;;  %v1446_v9 = vld [vmem:[%s6561_s4 + $0x68] sm:$0xff] }
 0x2b2   :  { %v679_v2 = vadd.f32 1.0, %v4608_v14  ;;  %v4228_v36 = vpack.c.bf16 %v1446_v9, %v1445_v43  ;;  %v2486_v43 = vld [vmem:[%s6565_s8 + $0x18] sm:$0xff] }
 0x2b3   :  { %4613 = vrcp.f32 %v678_v51  ;;  %v1447_v51 = vld [vmem:[%s6561_s4 + $0x70] sm:$0xff] }
 0x2b4   :  { %4225 = vmatpush3.bf16.msra.mxu0 %v4224_v40  ;;  %4615 = vrcp.f32 %v679_v2  ;;  %v4232_v14 = vpack.c.bf16 %v1448_v33, %v1447_v51  ;;  %v4266_v40 = vpack.c.bf16 %v1514_v46, %v1513_v54 }
 0x2b5   :  { %4227 = vmatprep.subr.bf16.mxu0 %v4226_v31  ;;  %v2484_v31 = vld [vmem:[%s6565_s8 + $0x8] sm:$0xff] }
 0x2b7   :  { %v4610_v15 = vpop.eup %4609 }
 0x2b8   :  { %4229 = vmatpush3.bf16.msra.mxu0 %v4228_v36  ;;  %v4612_v37 = vpop.eup %4611 }
 0x2b9   :  { %4231 = vmatprep.subr.bf16.mxu0 %v4230_v11 }
 0x2bc   :  { %4233 = vmatpush3.bf16.msra.mxu0 %v4232_v14 }
 0x2bd   :  { %v4614_v2 = vpop.eup %4613  ;;  %4267 = vmatprep.subr.bf16.mxu0 %v4266_v40 }
 0x2be   :  { %v4616_v8 = vpop.eup %4615 }
 0x2c2   :  { %695 = vperm.xlu1 %4560, %v4610_v15  }
 0x2c3   :  { %690 = vperm.xlu0 %4559, %v4612_v37  }
 0x2c6   :  { %700 = vperm.xlu1 %4560, %v4614_v2  }
 0x2c7   :  { %2494 = vperm.xlu0 %4559, %v2484_v31   ;;  %v1482_v31 = vld [vmem:[%s6561_s4 + $0x188] sm:$0xff] }
 0x2ca   :  { %705 = vperm.xlu1 %4560, %v4616_v8   ;;  %v1481_v8 = vld [vmem:[%s6561_s4 + $0x180] sm:$0xff] }
 0x2cb   :  { %2504 = vperm.xlu0 %4559, %v2486_v43  }
 0x32e   :  { %v1178_v9 = vpop.xlane.xlu0 %1177 }
 0x32f   :  { %v1206_v34 = vmul.f32 0.0009765625, %v1178_v9 }
 0x332   :  { %v1218_v36 = vpop.xlane.xlu0 %1217  ;;  %v1187_v45 = vpop.xlane.xlu1 %1186 }
 0x333   :  { %v1207_v11 = vmul.f32 0.0009765625, %v1187_v45  ;;  %v1246_v15 = vadd.f32 %v1218_v36, %v1206_v34  ;;  %v1497_v36 = vld [vmem:[%s6561_s4 + $0x200] sm:$0xff]  ;;  %v1498_v45 = vld [vmem:[%s6561_s4 + $0x208] sm:$0xff] }
 0x336   :  { %v1227_v51 = vpop.xlane.xlu1 %1226  ;;  %v1196_v33 = vpop.xlane.xlu0 %1195 }
 0x337   :  { %v1247_v14 = vadd.f32 %v1227_v51, %v1207_v11  ;;  %v1208_v40 = vmul.f32 0.0009765625, %v1196_v33  ;;  %v4234_v11 = vpack.c.bf16 %v1482_v31, %v1481_v8  ;;  %v1465_v51 = vld [vmem:[%s6561_s4 + $0x100] sm:$0xff]  ;;  %v1466_v33 = vld [vmem:[%s6561_s4 + $0x108] sm:$0xff]  ;;  %v1483_v8 = vld [vmem:[%s6561_s4 + $0x190] sm:$0xff] }
 0x338   :  { %v1484_v31 = vld [vmem:[%s6561_s4 + $0x198] sm:$0xff] }
 0x339   :  { %v4194_v37 = vpack.c.bf16 %v1247_v14, %v1246_v15 }
 0x33a   :  { %v1205_v54 = vpop.xlane.xlu1 %1204  ;;  %v1236_v46 = vpop.xlane.xlu0 %1235 }
 0x33b   :  { %4195 = vmatprep.subr.bf16.mxu1 %v4194_v37  ;;  %v1209_v2 = vmul.f32 0.0009765625, %v1205_v54  ;;  %v1248_v43 = vadd.f32 %v1236_v46, %v1208_v40  ;;  %v1516_v54 = vld [vmem:[%s6561_s4 + $0x298] sm:$0xff] }
 0x33c   :  { %4197 = vmatpush3.bf16.msra.mxu1 %v4194_v37  ;;  %v1515_v37 = vld [vmem:[%s6561_s4 + $0x290] sm:$0xff] }
 0x33e   :  { %v1245_v42 = vpop.xlane.xlu1 %1244 }
 0x33f   :  { %v1249_v9 = vadd.f32 %v1245_v42, %v1209_v2  ;;  %v4268_v2 = vpack.c.bf16 %v1498_v45, %v1497_v36  ;;  %v3464_v42 = vld [vmem:[%s6559_s2 + $0x28] sm:$0xff]  ;;  %v4270_v36 = vpack.c.bf16 %v1516_v54, %v1515_v37  ;;  %v1468_v45 = vld [vmem:[%s6561_s4 + $0x118] sm:$0xff]  ;;  %v4238_v37 = vpack.c.bf16 %v1484_v31, %v1483_v8  ;;  %v1501_v31 = vld [vmem:[%s6561_s4 + $0x220] sm:$0xff] }
 0x340   :  { %v1486_v8 = vld [vmem:[%s6561_s4 + $0x1a8] sm:$0xff] }
 0x341   :  { %v4198_v34 = vpack.c.bf16 %v1249_v9, %v1248_v43  ;;  %v4236_v43 = vpack.c.bf16 %v1466_v33, %v1465_v51  ;;  %v1467_v9 = vld [vmem:[%s6561_s4 + $0x110] sm:$0xff]  ;;  %v1518_v51 = vld [vmem:[%s6561_s4 + $0x2a8] sm:$0xff] }
 0x342   :  { %v5526_v15 = vpop.permute.xlu1 %695  ;;  %v5528_v14 = vpop.permute.xlu0 %690 }
 0x343   :  { %4199 = vmatprep.subr.bf16.mxu1 %v4198_v34  ;;  %v709_v46 = vmul.f32 %v5528_v14, %v4926_v56  ;;  %v708_v40 = vmul.f32 %v5528_v14, %v4924_v55  ;;  %v1499_v56 = vld [vmem:[%s6561_s4 + $0x210] sm:$0xff]  ;;  %v1500_v55 = vld [vmem:[%s6561_s4 + $0x218] sm:$0xff]  ;;  %v5576_v54 = vmul.f32 %v5526_v15, %v4962_v12  ;;  %v716_v12 = vmul.f32 %v5526_v15, %v4932_v59  ;;  %v1470_v59 = vld [vmem:[%s6561_s4 + $0x128] sm:$0xff] }
 0x344   :  { %4201 = vmatpush3.bf16.msra.mxu1 %v4198_v34  ;;  %v1517_v34 = vld [vmem:[%s6561_s4 + $0x2a0] sm:$0xff]  ;;  %v4272_v23 = vpack.c.bf16 %v1500_v55, %v1499_v56  ;;  %v1502_v56 = vld [vmem:[%s6561_s4 + $0x228] sm:$0xff] }
 0x345   :  { %1625 = vmatprep.mubr.f32.mxu0 %v709_v46  ;;  %4235 = vmatprep.subr.bf16.mxu1 %v4234_v11  ;;  %v717_v46 = vmul.f32 %v5526_v15, %v4934_v60  ;;  %v3465_v11 = vld [vmem:[%s6559_s2 + $0x30] sm:$0xff]  ;;  %v1485_v60 = vld [vmem:[%s6561_s4 + $0x1a0] sm:$0xff] }
 0x346   :  { %v5567_v33 = vpop.permute.xlu1 %700  ;;  %1626 = vmatmul.mubr.f32.vlgmr.msra.gmra.mrb[44].mxu0 %v708_v40  ;;  %v3466_v40 = vld [vmem:[%s6559_s2 + $0x38] sm:$0xff]  ;;  %v1469_v55 = vld [vmem:[%s6561_s4 + $0x120] sm:$0xff] }
 0x347   :  { %4269 = vmatpush3.bf16.msra.mxu0 %v4268_v2  ;;  %3984 = vmatmul.mubr.msk.f32.vlgmr.msra.gmra.mrb[24].mxu1 %vm566_vm4, %v3464_v42  ;;  %v4240_v2 = vpack.c.bf16 %v1468_v45, %v1467_v9  ;;  %v4274_v42 = vpack.c.bf16 %v1518_v51, %v1517_v34  ;;  %v1520_v9 = vld [vmem:[%s6561_s4 + $0x2b8] sm:$0xff]  ;;  %v5611_v45 = vmul.f32 %v5526_v15, %v4956_v7  ;;  %v1487_v7 = vld [vmem:[%s6561_s4 + $0x1b0] sm:$0xff] }
 0x348   :  { %1630 = vmatprep.mubr.f32.mxu0 %v717_v46  ;;  %4237 = vmatpush3.bf16.msra.mxu1 %v4236_v43  ;;  %v1519_v43 = vld [vmem:[%s6561_s4 + $0x2b0] sm:$0xff]  ;;  %v5619_v34 = vmul.f32 %v5567_v33, %v4970_v17  ;;  %v725_v46 = vmul.f32 %v5567_v33, %v4942_v0  ;;  %v711_v17 = vmul.f32 %v5528_v14, %v4968_v16 }
 0x349   :  { %4271 = vmatprep.subr.bf16.mxu0 %v4270_v36  ;;  %3986 = vmatprep.mubr.msk.f32.mxu1 %vm566_vm4, %v3465_v11  ;;  %v5615_v36 = vmul.f32 %v5567_v33, %v4974_v20  ;;  %v4242_v11 = vpack.c.bf16 %v1486_v8, %v1485_v60  ;;  %v1488_v20 = vld [vmem:[%s6561_s4 + $0x1b8] sm:$0xff]  ;;  %v724_v0 = vmul.f32 %v5567_v33, %v4940_v63  ;;  %v1503_v8 = vld [vmem:[%s6561_s4 + $0x230] sm:$0xff] }
 0x34a   :  { %v5621_v51 = vpop.permute.xlu1 %705  ;;  %1631 = vmatmul.mubr.f32.gmra.mrb[46].mxu0 %v716_v12  ;;  %4239 = vmatprep.subr.bf16.mxu1 %v4238_v37  ;;  %v4276_v12 = vpack.c.bf16 %v1502_v56, %v1501_v31  ;;  %v4244_v37 = vpack.c.bf16 %v1470_v59, %v1469_v55  ;;  %v4278_v60 = vpack.c.bf16 %v1520_v9, %v1519_v43  ;;  %v1471_v16 = vld [vmem:[%s6561_s4 + $0x130] sm:$0xff]  ;;  %v1521_v31 = vld [vmem:[%s6561_s4 + $0x2c0] sm:$0xff]  ;;  %v1522_v56 = vld [vmem:[%s6561_s4 + $0x2c8] sm:$0xff] }
 0x34b   :  { %4273 = vmatpush3.bf16.msra.mxu0 %v4272_v23  ;;  %3987 = vmatmul.mubr.msk.f32.gmra.mrb[26].mxu1 %vm566_vm4, %v3466_v40  ;;  %v1504_v23 = vld [vmem:[%s6561_s4 + $0x238] sm:$0xff]  ;;  %v733_v40 = vmul.f32 %v5621_v51, %v4954_v6  ;;  %v4246_v63 = vpack.c.bf16 %v1488_v20, %v1487_v7  ;;  %v1490_v6 = vld [vmem:[%s6561_s4 + $0x1c8] sm:$0xff]  ;;  %v732_v59 = vmul.f32 %v5621_v51, %v4952_v5  ;;  %v1473_v7 = vld [vmem:[%s6561_s4 + $0x140] sm:$0xff] }
 0x34c   :  { %1635 = vmatprep.mubr.f32.mxu0 %v725_v46  ;;  %4241 = vmatpush3.bf16.msra.mxu1 %v4240_v2  ;;  %v1472_v2 = vld [vmem:[%s6561_s4 + $0x138] sm:$0xff]  ;;  %v4280_v55 = vpack.c.bf16 %v1504_v23, %v1503_v8  ;;  %v4282_v9 = vpack.c.bf16 %v1522_v56, %v1521_v31  ;;  %v1505_v46 = vld [vmem:[%s6561_s4 + $0x240] sm:$0xff]  ;;  %v713_v20 = vmul.f32 %v5528_v14, %v5008_v44  ;;  %v1474_v5 = vld [vmem:[%s6561_s4 + $0x148] sm:$0xff] }
 0x34d   :  { %1710 = vmatprep.mubr.f32.mxu1 %v711_v17  ;;  %4275 = vmatprep.subr.bf16.mxu0 %v4274_v42  ;;  %v1489_v42 = vld [vmem:[%s6561_s4 + $0x1c0] sm:$0xff]  ;;  %v4248_v43 = vpack.c.bf16 %v1472_v2, %v1471_v16  ;;  %v1492_v44 = vld [vmem:[%s6561_s4 + $0x1d8] sm:$0xff]  ;;  %v4252_v8 = vpack.c.bf16 %v1474_v5, %v1473_v7  ;;  %v1507_v16 = vld [vmem:[%s6561_s4 + $0x250] sm:$0xff] }
 0x34e   :  { %1636 = vmatmul.mubr.f32.gmra.mrb[48].mxu0 %v724_v0  ;;  %4243 = vmatprep.subr.bf16.mxu1 %v4242_v11  ;;  %v1506_v11 = vld [vmem:[%s6561_s4 + $0x248] sm:$0xff]  ;;  %v4250_v17 = vpack.c.bf16 %v1490_v6, %v1489_v42  ;;  %v1524_v0 = vld [vmem:[%s6561_s4 + $0x2d8] sm:$0xff]  ;;  %v1525_v56 = vld [vmem:[%s6561_s4 + $0x2e0] sm:$0xff] }
 0x34f   :  { %4277 = vmatpush3.bf16.msra.mxu0 %v4276_v12  ;;  %1640 = vmatprep.mubr.f32.mxu0 %v733_v40  ;;  %v1523_v12 = vld [vmem:[%s6561_s4 + $0x2d0] sm:$0xff]  ;;  %v1508_v40 = vld [vmem:[%s6561_s4 + $0x258] sm:$0xff]  ;;  %v1526_v42 = vld [vmem:[%s6561_s4 + $0x2e8] sm:$0xff] }
 0x350   :  { %4245 = vmatpush3.bf16.msra.mxu1 %v4244_v37  ;;  %4279 = vmatprep.subr.bf16.mxu0 %v4278_v60  ;;  %v1491_v37 = vld [vmem:[%s6561_s4 + $0x1d0] sm:$0xff]  ;;  %v4284_v60 = vpack.c.bf16 %v1506_v11, %v1505_v46  ;;  %v4286_v23 = vpack.c.bf16 %v1524_v0, %v1523_v12  ;;  %v1476_v31 = vld [vmem:[%s6561_s4 + $0x158] sm:$0xff]  ;;  %v1493_v6 = vld [vmem:[%s6561_s4 + $0x1e0] sm:$0xff] }
 0x351   :  { %4247 = vmatprep.subr.bf16.mxu1 %v4246_v63  ;;  %v1475_v63 = vld [vmem:[%s6561_s4 + $0x150] sm:$0xff]  ;;  %v4254_v2 = vpack.c.bf16 %v1492_v44, %v1491_v37  ;;  %v1509_v46 = vld [vmem:[%s6561_s4 + $0x260] sm:$0xff]  ;;  %v1510_v11 = vld [vmem:[%s6561_s4 + $0x268] sm:$0xff] }
 0x352   :  { %1641 = vmatmul.mubr.f32.gmra.mrb[50].mxu0 %v732_v59  ;;  %v4288_v59 = vpack.c.bf16 %v1508_v40, %v1507_v16  ;;  %v1477_v7 = vld [vmem:[%s6561_s4 + $0x160] sm:$0xff]  ;;  %v1527_v5 = vld [vmem:[%s6561_s4 + $0x2f0] sm:$0xff]  ;;  %v1528_v12 = vld [vmem:[%s6561_s4 + $0x2f8] sm:$0xff]  ;;  %v4292_v44 = vpack.c.bf16 %v1510_v11, %v1509_v46  ;;  %v712_v11 = vmul.f32 %v5528_v14, %v5004_v41  ;;  %v719_v41 = vmul.f32 %v5526_v15, %v4980_v24 }
 0x353   :  { %4281 = vmatpush3.bf16.msra.mxu0 %v4280_v55  ;;  %1795 = vmatprep.mubr.f32.mxu0 %v713_v20  ;;  %v1494_v55 = vld [vmem:[%s6561_s4 + $0x1e8] sm:$0xff]  ;;  %v1495_v0 = vld [vmem:[%s6561_s4 + $0x1f0] sm:$0xff]  ;;  %v1496_v37 = vld [vmem:[%s6561_s4 + $0x1f8] sm:$0xff]  ;;  %v718_v24 = vmul.f32 %v5526_v15, %v4976_v21 }
 0x354   :  { %4249 = vmatpush3.bf16.msra.mxu1 %v4248_v43  ;;  %4283 = vmatprep.subr.bf16.mxu0 %v4282_v9  ;;  %v4256_v43 = vpack.c.bf16 %v1476_v31, %v1475_v63  ;;  %v4290_v9 = vpack.c.bf16 %v1526_v42, %v1525_v56  ;;  %v4258_v20 = vpack.c.bf16 %v1494_v55, %v1493_v6  ;;  %v1512_v16 = vld [vmem:[%s6561_s4 + $0x278] sm:$0xff]  ;;  %v1479_v63 = vld [vmem:[%s6561_s4 + $0x170] sm:$0xff]  ;;  %v1545_v31 = vld [vmem:[%s6561_s4 + $0x380] sm:$0xff] }
 0x355   :  { %4251 = vmatprep.subr.bf16.mxu1 %v4250_v17  ;;  %v1478_v17 = vld [vmem:[%s6561_s4 + $0x168] sm:$0xff]  ;;  %v4262_v40 = vpack.c.bf16 %v1496_v37, %v1495_v0  ;;  %v1548_v46 = vld [vmem:[%s6561_s4 + $0x398] sm:$0xff]  ;;  %v720_v37 = vmul.f32 %v5526_v15, %v5012_v47  ;;  %v727_v47 = vmul.f32 %v5567_v33, %v4992_v32  ;;  %v726_v32 = vmul.f32 %v5567_v33, %v4988_v29 }
 0x356   :  { %v1546_v56 = vld [vmem:[%s6561_s4 + $0x388] sm:$0xff]  ;;  %v1532_v0 = vld [vmem:[%s6561_s4 + $0x318] sm:$0xff] }
 0x357   :  { %4285 = vmatpush3.bf16.msra.mxu0 %v4284_v60  ;;  %v4260_v60 = vpack.c.bf16 %v1478_v17, %v1477_v7  ;;  %v4298_v55 = vpack.c.bf16 %v1546_v56, %v1545_v31  ;;  %v710_v17 = vmul.f32 %v5528_v14, %v4964_v13  ;;  %v1550_v13 = vld [vmem:[%s6561_s4 + $0x3a8] sm:$0xff]  ;;  %v1552_v21 = vld [vmem:[%s6561_s4 + $0x3b8] sm:$0xff]  ;;  %v1535_v31 = vld [vmem:[%s6561_s4 + $0x330] sm:$0xff] }
 0x358   :  { %4253 = vmatpush3.bf16.msra.mxu1 %v4252_v8  ;;  %4287 = vmatprep.subr.bf16.mxu0 %v4286_v23  ;;  %v4294_v8 = vpack.c.bf16 %v1528_v12, %v1527_v5  ;;  %v1511_v23 = vld [vmem:[%s6561_s4 + $0x270] sm:$0xff]  ;;  %v1536_v56 = vld [vmem:[%s6561_s4 + $0x338] sm:$0xff]  ;;  %v1554_v29 = vld [vmem:[%s6561_s4 + $0x3c8] sm:$0xff] }
 0x359   :  { %4255 = vmatprep.subr.bf16.mxu1 %v4254_v2  ;;  %v1480_v2 = vld [vmem:[%s6561_s4 + $0x178] sm:$0xff]  ;;  %v4296_v42 = vpack.c.bf16 %v1512_v16, %v1511_v23  ;;  %v1531_v12 = vld [vmem:[%s6561_s4 + $0x310] sm:$0xff]  ;;  %v1533_v23 = vld [vmem:[%s6561_s4 + $0x320] sm:$0xff] }
 0x35a   :  { %v4264_v6 = vpack.c.bf16 %v1480_v2, %v1479_v63  ;;  %v1534_v16 = vld [vmem:[%s6561_s4 + $0x328] sm:$0xff]  ;;  %v737_v63 = vmul.f32 %v5621_v51, %v5040_v27  ;;  %v1553_v27 = vld [vmem:[%s6561_s4 + $0x3c0] sm:$0xff] }
 0x35b   :  { %4289 = vmatpush3.bf16.msra.mxu0 %v4288_v59  ;;  %v1529_v59 = vld [vmem:[%s6561_s4 + $0x300] sm:$0xff] }
 0x35c   :  { %4257 = vmatpush3.bf16.msra.mxu1 %v4256_v43  ;;  %4291 = vmatprep.subr.bf16.mxu0 %v4290_v9  ;;  %v1530_v43 = vld [vmem:[%s6561_s4 + $0x308] sm:$0xff]  ;;  %v1547_v9 = vld [vmem:[%s6561_s4 + $0x390] sm:$0xff] }
 0x35d   :  { %4259 = vmatprep.subr.bf16.mxu1 %v4258_v20  ;;  %v4300_v7 = vpack.c.bf16 %v1530_v43, %v1529_v59  ;;  %v721_v20 = vmul.f32 %v5526_v15, %v5016_v50  ;;  %v4302_v5 = vpack.c.bf16 %v1548_v46, %v1547_v9  ;;  %v1549_v50 = vld [vmem:[%s6561_s4 + $0x3a0] sm:$0xff]  ;;  %v728_v15 = vmul.f32 %v5567_v33, %v5024_v61  ;;  %v1538_v59 = vld [vmem:[%s6561_s4 + $0x348] sm:$0xff] }
 0x35e   :  { %v735_v61 = vmul.f32 %v5621_v51, %v5000_v38  ;;  %v4314_v38 = vpack.c.bf16 %v1554_v29, %v1553_v27  ;;  %v715_v43 = vmul.f32 %v5528_v14, %v4950_v4  ;;  %v1540_v4 = vld [vmem:[%s6561_s4 + $0x358] sm:$0xff]  ;;  %v1903_v27 = vld [vmem:[%s6562_s5 + $0x10] sm:$0xff] }
 0x35f   :  { %4293 = vmatpush3.bf16.msra.mxu0 %v4292_v44  ;;  %v4304_v44 = vpack.c.bf16 %v1532_v0, %v1531_v12  ;;  %v1541_v12 = vld [vmem:[%s6561_s4 + $0x360] sm:$0xff]  ;;  %v1542_v0 = vld [vmem:[%s6561_s4 + $0x368] sm:$0xff]  ;;  %v1904_v29 = vld [vmem:[%s6562_s5 + $0x18] sm:$0xff] }
 0x360   :  { %4261 = vmatpush3.bf16.msra.mxu1 %v4260_v60  ;;  %4295 = vmatprep.subr.bf16.mxu0 %v4294_v8  ;;  %v729_v60 = vmul.f32 %v5567_v33, %v5028_v3  ;;  %v4306_v8 = vpack.c.bf16 %v1550_v13, %v1549_v50  ;;  %v1551_v3 = vld [vmem:[%s6561_s4 + $0x3b0] sm:$0xff]  ;;  %v736_v33 = vmul.f32 %v5621_v51, %v5035_v19  ;;  %v1560_v50 = vld [vmem:[%s6561_s4 + $0x3f8] sm:$0xff] }
 0x361   :  { %4263 = vmatprep.subr.bf16.mxu1 %v4262_v40  ;;  %v4308_v40 = vpack.c.bf16 %v1534_v16, %v1533_v23  ;;  %v4310_v2 = vpack.c.bf16 %v1552_v21, %v1551_v3  ;;  %v1555_v19 = vld [vmem:[%s6561_s4 + $0x3d0] sm:$0xff]  ;;  %v4324_v13 = vpack.c.bf16 %v1542_v0, %v1541_v12  ;;  %v739_v23 = vmul.f32 %v5621_v51, %v4986_v28  ;;  %v6614_v16 = vld [vmem:[#allocation7_spill] sm:$0xff] }
 0x362   :  { %v1933_v21 = vld [vmem:[%s6562_s5 + $0x100] sm:$0xff]  ;;  %v1955_v12 = vld [vmem:[%s6562_s5 + $0x1b0] sm:$0xff] }
 0x363   :  { %4297 = vmatpush3.bf16.msra.mxu0 %v4296_v42  ;;  %v4312_v42 = vpack.c.bf16 %v1536_v56, %v1535_v31  ;;  %v1952_v31 = vld [vmem:[%s6562_s5 + $0x198] sm:$0xff] }
 0x364   :  { %4265 = vmatpush3.bf16.msra.mxu1 %v4264_v6  ;;  %v734_v6 = vmul.f32 %v5621_v51, %v4996_v35  ;;  %v1556_v35 = vld [vmem:[%s6561_s4 + $0x3d8] sm:$0xff] }
 0x365   :  { %4299 = vmatprep.subr.bf16.mxu1 %v4298_v55  ;;  %v1537_v55 = vld [vmem:[%s6561_s4 + $0x340] sm:$0xff]  ;;  %v4318_v46 = vpack.c.bf16 %v1556_v35, %v1555_v19  ;;  %v1954_v35 = vld [vmem:[%s6562_s5 + $0x1a8] sm:$0xff] }
 0x366   :  { %1796 = vmatmul.mubr.f32.vlgmr.msra.gmra.mrb[52].mxu0 %v712_v11  ;;  %v4316_v9 = vpack.c.bf16 %v1538_v59, %v1537_v55  ;;  %v1539_v11 = vld [vmem:[%s6561_s4 + $0x350] sm:$0xff]  ;;  %v1922_v55 = vld [vmem:[%s6562_s5 + $0xa8] sm:$0xff]  ;;  %v1953_v19 = vld [vmem:[%s6562_s5 + $0x1a0] sm:$0xff] }
 0x367   :  { %1800 = vmatprep.mubr.f32.mxu0 %v721_v20  ;;  %1711 = vmatmul.mubr.f32.vlgmr.msra.gmra.mrb[28].mxu1 %v710_v17  ;;  %v1558_v20 = vld [vmem:[%s6561_s4 + $0x3e8] sm:$0xff]  ;;  %v4320_v17 = vpack.c.bf16 %v1540_v4, %v1539_v11  ;;  %v1937_v4 = vld [vmem:[%s6562_s5 + $0x120] sm:$0xff] }
 0x368   :  { %1715 = vmatprep.mubr.f32.mxu1 %v719_v41  ;;  %4301 = vmatpush3.bf16.msra.mxu1 %v4300_v7  ;;  %v1557_v7 = vld [vmem:[%s6561_s4 + $0x3e0] sm:$0xff]  ;;  %v1559_v41 = vld [vmem:[%s6561_s4 + $0x3f0] sm:$0xff]  ;;  %v1906_v11 = vld [vmem:[%s6562_s5 + $0x28] sm:$0xff] }
 0x369   :  { %4303 = vmatprep.subr.bf16.mxu1 %v4302_v5  ;;  %v4322_v5 = vpack.c.bf16 %v1558_v20, %v1557_v7  ;;  %v1938_v7 = vld [vmem:[%s6562_s5 + $0x128] sm:$0xff] }
 0x36a   :  { %1801 = vmatmul.mubr.f32.gmra.mrb[54].mxu0 %v720_v37  ;;  %v4326_v37 = vpack.c.bf16 %v1560_v50, %v1559_v41  ;;  %v4372_v0 = vpack.c.bf16 %v1938_v7, %v1937_v4  ;;  %v1956_v50 = vld [vmem:[%s6562_s5 + $0x1b8] sm:$0xff]  ;;  %v1931_v4 = vld [vmem:[%s6562_s5 + $0xf0] sm:$0xff] }
 0x36b   :  { %1805 = vmatprep.mubr.f32.mxu0 %v729_v60  ;;  %1716 = vmatmul.mubr.f32.gmra.mrb[30].mxu1 %v718_v24  ;;  %v1544_v60 = vld [vmem:[%s6561_s4 + $0x378] sm:$0xff] }
 0x36c   :  { %1720 = vmatprep.mubr.f32.mxu1 %v727_v47  ;;  %4305 = vmatpush3.bf16.msra.mxu1 %v4304_v44  ;;  %v1543_v44 = vld [vmem:[%s6561_s4 + $0x370] sm:$0xff]  ;;  %v738_v47 = vmul.f32 %v5621_v51, %v6614_v16  ;;  %v1957_v16 = vld [vmem:[%s6562_s5 + $0x1c0] sm:$0xff]  ;;  %v1932_v7 = vld [vmem:[%s6562_s5 + $0xf8] sm:$0xff] }
 0x36d   :  { %4307 = vmatprep.subr.bf16.mxu1 %v4306_v8  ;;  %v4328_v24 = vpack.c.bf16 %v1544_v60, %v1543_v44  ;;  %v714_v8 = vmul.f32 %v5528_v14, %v4944_v1  ;;  %v1917_v1 = vld [vmem:[%s6562_s5 + $0x80] sm:$0xff]  ;;  %v1918_v14 = vld [vmem:[%s6562_s5 + $0x88] sm:$0xff]  ;;  %v4374_v44 = vpack.c.bf16 %v1956_v50, %v1955_v12  ;;  %v1939_v60 = vld [vmem:[%s6562_s5 + $0x130] sm:$0xff] }
 0x36e   :  { %1806 = vmatmul.mubr.f32.gmra.mrb[56].mxu0 %v728_v15  ;;  %v4330_v28 = vpack.c.bf16 %v1918_v14, %v1917_v1  ;;  %v1934_v15 = vld [vmem:[%s6562_s5 + $0x108] sm:$0xff] }
 0x36f   :  { %1810 = vmatprep.mubr.f32.mxu0 %v737_v63  ;;  %1721 = vmatmul.mubr.f32.gmra.mrb[32].mxu1 %v726_v32  ;;  %v4364_v63 = vpack.c.bf16 %v1934_v15, %v1933_v21  ;;  %v1920_v32 = vld [vmem:[%s6562_s5 + $0x98] sm:$0xff]  ;;  %v1959_v15 = vld [vmem:[%s6562_s5 + $0x1d0] sm:$0xff]  ;;  %v3468_v50 = vld [vmem:[%s6560_s3 + $0x28] sm:$0xff] }
 0x370   :  { %1725 = vmatprep.mubr.f32.mxu1 %v735_v61  ;;  %4309 = vmatpush3.bf16.msra.mxu1 %v4308_v40  ;;  %v1919_v40 = vld [vmem:[%s6562_s5 + $0x90] sm:$0xff]  ;;  %v1928_v21 = vld [vmem:[%s6562_s5 + $0xd8] sm:$0xff] }
 0x371   :  { %4311 = vmatprep.subr.bf16.mxu1 %v4310_v2  ;;  %4331 = vmatprep.subr.bf16.mxu0 %v4330_v28  ;;  %v1951_v2 = vld [vmem:[%s6562_s5 + $0x190] sm:$0xff]  ;;  %v4334_v56 = vpack.c.bf16 %v1920_v32, %v1919_v40  ;;  %v1909_v28 = vld [vmem:[%s6562_s5 + $0x40] sm:$0xff]  ;;  %v1960_v40 = vld [vmem:[%s6562_s5 + $0x1d8] sm:$0xff] }
 0x372   :  { %1811 = vmatmul.mubr.f32.gmra.mrb[58].mxu0 %v736_v33  ;;  %v4366_v61 = vpack.c.bf16 %v1952_v31, %v1951_v2  ;;  %v1935_v33 = vld [vmem:[%s6562_s5 + $0x110] sm:$0xff] }
 0x373   :  { %1726 = vmatmul.mubr.f32.gmra.mrb[34].mxu1 %v734_v6  ;;  %v1936_v6 = vld [vmem:[%s6562_s5 + $0x118] sm:$0xff]  ;;  %v1911_v31 = vld [vmem:[%s6562_s5 + $0x50] sm:$0xff] }
 0x374   :  { %4313 = vmatpush3.bf16.msra.mxu1 %v4312_v42  ;;  %1880 = vmatprep.mubr.f32.mxu1 %v715_v43  ;;  %v4336_v42 = vpack.c.bf16 %v1904_v29, %v1903_v27  ;;  %v4368_v59 = vpack.c.bf16 %v1936_v6, %v1935_v33  ;;  %v4382_v27 = vpack.c.bf16 %v1960_v40, %v1959_v15  ;;  %v1944_v29 = vld [vmem:[%s6562_s5 + $0x158] sm:$0xff]  ;;  %v1929_v33 = vld [vmem:[%s6562_s5 + $0xe0] sm:$0xff] }
 0x375   :  { %4315 = vmatprep.subr.bf16.mxu1 %v4314_v38  ;;  %v1921_v38 = vld [vmem:[%s6562_s5 + $0xa0] sm:$0xff] }
 0x376   :  { %v4338_v43 = vpack.c.bf16 %v1922_v55, %v1921_v38  ;;  %v1961_v6 = vld [vmem:[%s6562_s5 + $0x1e0] sm:$0xff]  ;;  %v1962_v38 = vld [vmem:[%s6562_s5 + $0x1e8] sm:$0xff] }
 0x378   :  { %4317 = vmatpush3.bf16.msra.mxu1 %v4316_v9  ;;  %v1905_v9 = vld [vmem:[%s6562_s5 + $0x20] sm:$0xff] }
 0x379   :  { %4319 = vmatprep.subr.bf16.mxu1 %v4318_v46  ;;  %v4370_v46 = vpack.c.bf16 %v1954_v35, %v1953_v19  ;;  %v4340_v20 = vpack.c.bf16 %v1906_v11, %v1905_v9  ;;  %v1913_v19 = vld [vmem:[%s6562_s5 + $0x60] sm:$0xff]  ;;  %v1914_v35 = vld [vmem:[%s6562_s5 + $0x68] sm:$0xff] }
 0x37a   :  { %v1945_v9 = vld [vmem:[%s6562_s5 + $0x160] sm:$0xff]  ;;  %v1946_v11 = vld [vmem:[%s6562_s5 + $0x168] sm:$0xff] }
 0x37b   :  { %v4388_v12 = vpack.c.bf16 %v1946_v11, %v1945_v9  ;;  %v1947_v9 = vld [vmem:[%s6562_s5 + $0x170] sm:$0xff]  ;;  %v1948_v11 = vld [vmem:[%s6562_s5 + $0x178] sm:$0xff] }
 0x37c   :  { %4321 = vmatpush3.bf16.msra.mxu1 %v4320_v17  ;;  %v1923_v17 = vld [vmem:[%s6562_s5 + $0xb0] sm:$0xff] }
 0x37d   :  { %4323 = vmatprep.subr.bf16.mxu1 %v4322_v5  ;;  %v1924_v5 = vld [vmem:[%s6562_s5 + $0xb8] sm:$0xff] }
 0x37e   :  { %v4342_v41 = vpack.c.bf16 %v1924_v5, %v1923_v17  ;;  %v1964_v17 = vld [vmem:[%s6562_s5 + $0x1f8] sm:$0xff]  ;;  %v4356_v5 = vpack.c.bf16 %v1914_v35, %v1913_v19  ;;  %v1915_v19 = vld [vmem:[%s6562_s5 + $0x70] sm:$0xff] }
 0x37f   :  { %v1916_v35 = vld [vmem:[%s6562_s5 + $0x78] sm:$0xff] }
 0x380   :  { %4325 = vmatpush3.bf16.msra.mxu1 %v4324_v13  ;;  %v1907_v13 = vld [vmem:[%s6562_s5 + $0x30] sm:$0xff] }
 0x381   :  { %4327 = vmatprep.subr.bf16.mxu1 %v4326_v37  ;;  %v1908_v37 = vld [vmem:[%s6562_s5 + $0x38] sm:$0xff] }
 0x382   :  { %v4344_v1 = vpack.c.bf16 %v1908_v37, %v1907_v13  ;;  %v3467_v37 = vld [vmem:[%s6560_s3 + $0x20] sm:$0xff] }
 0x384   :  { %4329 = vmatpush3.bf16.msra.mxu1 %v4328_v24  ;;  %v1940_v24 = vld [vmem:[%s6562_s5 + $0x138] sm:$0xff] }
 0x385   :  { %v4376_v14 = vpack.c.bf16 %v1940_v24, %v1939_v60 }
 0x387   :  { %1881 = vmatmul.mubr.f32.vlgmr.msra.gmra.mrb[36].mxu1 %v714_v8  ;;  %v1925_v8 = vld [vmem:[%s6562_s5 + $0xc0] sm:$0xff] }
 0x388   :  { %1885 = vmatprep.mubr.f32.mxu1 %v5576_v54  ;;  %v1949_v54 = vld [vmem:[%s6562_s5 + $0x180] sm:$0xff] }
 0x38b   :  { %1886 = vmatmul.mubr.f32.gmra.mrb[38].mxu1 %v5611_v45  ;;  %v1950_v45 = vld [vmem:[%s6562_s5 + $0x188] sm:$0xff] }
 0x38c   :  { %1890 = vmatprep.mubr.f32.mxu1 %v5615_v36  ;;  %v1901_v36 = vld [vmem:[%s6562_s5] sm:$0xff]  ;;  %v4362_v51 = vpack.c.bf16 %v1950_v45, %v1949_v54  ;;  %v1910_v45 = vld [vmem:[%s6562_s5 + $0x48] sm:$0xff] }
 0x38e   :  { %4363 = vmatprep.subr.bf16.mxu1 %v4362_v51  ;;  %v1942_v51 = vld [vmem:[%s6562_s5 + $0x148] sm:$0xff] }
 0x38f   :  { %1891 = vmatmul.mubr.f32.gmra.mrb[40].mxu1 %v5619_v34  ;;  %v1902_v34 = vld [vmem:[%s6562_s5 + $0x8] sm:$0xff] }
 0x390   :  { %1895 = vmatprep.mubr.f32.mxu1 %v739_v23  ;;  %v4332_v3 = vpack.c.bf16 %v1902_v34, %v1901_v36  ;;  %4365 = vmatpush3.bf16.msra.mxu1 %v4364_v63  ;;  %v1926_v23 = vld [vmem:[%s6562_s5 + $0xc8] sm:$0xff]  ;;  %v1941_v36 = vld [vmem:[%s6562_s5 + $0x140] sm:$0xff]  ;;  %v4348_v63 = vpack.c.bf16 %v1910_v45, %v1909_v28 }
 0x391   :  { %4367 = vmatprep.subr.bf16.mxu1 %v4366_v61  ;;  %v4346_v54 = vpack.c.bf16 %v1926_v23, %v1925_v8  ;;  %v4380_v32 = vpack.c.bf16 %v1942_v51, %v1941_v36  ;;  %v1943_v61 = vld [vmem:[%s6562_s5 + $0x150] sm:$0xff] }
 0x392   :  { %4333 = vmatpush3.bf16.msra.mxu0 %v4332_v3  ;;  %v1927_v3 = vld [vmem:[%s6562_s5 + $0xd0] sm:$0xff] }
 0x393   :  { %1896 = vmatmul.mubr.f32.gmra.mrb[42].mxu1 %v738_v47  ;;  %4335 = vmatprep.subr.bf16.mxu0 %v4334_v56  ;;  %v1958_v47 = vld [vmem:[%s6562_s5 + $0x1c8] sm:$0xff]  ;;  %v4350_v2 = vpack.c.bf16 %v1928_v21, %v1927_v3  ;;  %v1912_v56 = vld [vmem:[%s6562_s5 + $0x58] sm:$0xff] }
 0x394   :  { %4369 = vmatpush3.bf16.msra.mxu1 %v4368_v59  ;;  %v4378_v34 = vpack.c.bf16 %v1958_v47, %v1957_v16  ;;  %v4352_v55 = vpack.c.bf16 %v1912_v56, %v1911_v31  ;;  %v4384_v59 = vpack.c.bf16 %v1944_v29, %v1943_v61  ;;  %v3470_v47 = vld [vmem:[%s6560_s3 + $0x38] sm:$0xff] }
 0x395   :  { %4371 = vmatprep.subr.bf16.mxu1 %v4370_v46  ;;  %v4386_v46 = vpack.c.bf16 %v1962_v38, %v1961_v6 }
 0x396   :  { %4337 = vmatpush3.bf16.msra.mxu0 %v4336_v42  ;;  %v1930_v42 = vld [vmem:[%s6562_s5 + $0xe8] sm:$0xff] }
 0x397   :  { %4339 = vmatprep.subr.bf16.mxu0 %v4338_v43  ;;  %v4354_v43 = vpack.c.bf16 %v1930_v42, %v1929_v33 }
 0x398   :  { %4373 = vmatpush3.bf16.msra.mxu1 %v4372_v0  ;;  %v4358_v0 = vpack.c.bf16 %v1932_v7, %v1931_v4  ;;  %v4392_v7 = vpack.c.bf16 %v1948_v11, %v1947_v9 }
 0x399   :  { %4375 = vmatprep.subr.bf16.mxu1 %v4374_v44 }
 0x39a   :  { %4341 = vmatpush3.bf16.msra.mxu0 %v4340_v20  ;;  %v1963_v20 = vld [vmem:[%s6562_s5 + $0x1f0] sm:$0xff] }
 0x39b   :  { %4343 = vmatprep.subr.bf16.mxu0 %v4342_v41  ;;  %v4390_v41 = vpack.c.bf16 %v1964_v17, %v1963_v20 }
 0x39c   :  { %4377 = vmatpush3.bf16.msra.mxu1 %v4376_v14 }
 0x39d   :  { %4379 = vmatprep.subr.bf16.mxu1 %v4378_v34 }
 0x39e   :  { %4345 = vmatpush3.bf16.msra.mxu0 %v4344_v1 }
 0x39f   :  { %4347 = vmatprep.subr.bf16.mxu0 %v4346_v54  ;;  %v3469_v54 = vld [vmem:[%s6560_s3 + $0x30] sm:$0xff] }
 0x3a0   :  { %4381 = vmatpush3.bf16.msra.mxu1 %v4380_v32 }
 0x3a1   :  { %4383 = vmatprep.subr.bf16.mxu1 %v4382_v27 }
 0x3a2   :  { %4349 = vmatpush3.bf16.msra.mxu0 %v4348_v63 }
 0x3a3   :  { %4351 = vmatprep.subr.bf16.mxu0 %v4350_v2 }
 0x3a4   :  { %4385 = vmatpush3.bf16.msra.mxu1 %v4384_v59 }
 0x3a5   :  { %4387 = vmatprep.subr.bf16.mxu1 %v4386_v46  ;;  %v4360_v46 = vpack.c.bf16 %v1916_v35, %v1915_v19 }
 0x3a6   :  { %4353 = vmatpush3.bf16.msra.mxu0 %v4352_v55 }
 0x3a7   :  { %4355 = vmatprep.subr.bf16.mxu0 %v4354_v43 }
 0x3a8   :  { %4389 = vmatpush3.bf16.msra.mxu1 %v4388_v12  ;;  %v1982_v12 = vld [vmem:[%s6562_s5 + $0x288] sm:$0xff] }
 0x3a9   :  { %4391 = vmatprep.subr.bf16.mxu1 %v4390_v41 }
 0x3aa   :  { %4357 = vmatpush3.bf16.msra.mxu0 %v4356_v5  ;;  %v1981_v5 = vld [vmem:[%s6562_s5 + $0x280] sm:$0xff] }
 0x3ab   :  { %4359 = vmatprep.subr.bf16.mxu0 %v4358_v0  ;;  %v2013_v0 = vld [vmem:[%s6562_s5 + $0x380] sm:$0xff] }
 0x3ac   :  { %4393 = vmatpush3.bf16.msra.mxu1 %v4392_v7 }
 0x3ae   :  { %4361 = vmatpush3.bf16.msra.mxu0 %v4360_v46 }
 0x419   :  { %v3576_v13 = vpop.f32.mrb[44].mxu0 }
 0x41a   :  { %v3985_v44 = vpop.f32.mrb[24].mxu1  ;;  %v3577_v60 = vpop.f32.mrb[45].mxu0 }
 0x41b   :  { %v1344_v24 = vadd.f32 %v3985_v44, %v3468_v50  ;;  %v6072_v8 = vadd.f32 %v3577_v60, %v3576_v13  ;;  %v1338_v23 = vpop.f32.mrb[25].mxu1  ;;  %v2014_v44 = vld [vmem:[%s6562_s5 + $0x388] sm:$0xff] }
 0x41c   :  { %v1339_v16 = vadd.f32 %v3467_v37, %v1338_v23  ;;  %v4394_v37 = vpack.c.bf16 %v1982_v12, %v1981_v5 }
 0x41d   :  { %v3476_v1 = vmul.f32 -1.442695, %v1344_v24  ;;  %v3579_v14 = vpop.f32.mrb[46].mxu0  ;;  %v4426_v24 = vpack.c.bf16 %v2014_v44, %v2013_v0  ;;  %v1966_v44 = vld [vmem:[%s6562_s5 + $0x208] sm:$0xff] }
 0x41e   :  { %v3475_v28 = vmul.f32 -1.442695, %v1339_v16  ;;  %v3580_v45 = vpop.f32.mrb[47].mxu0  ;;  %v3988_v36 = vpop.f32.mrb[26].mxu1  ;;  %4395 = vmatprep.subr.bf16.mxu0 %v4394_v37  ;;  %v1965_v37 = vld [vmem:[%s6562_s5 + $0x200] sm:$0xff] }
 0x41f   :  { %4617 = vpow2.f32 %v3476_v1  ;;  %v6080_v34 = vadd.f32 %v3580_v45, %v3579_v14  ;;  %v1354_v51 = vadd.f32 %v3988_v36, %v3470_v47  ;;  %v1348_v3 = vpop.f32.mrb[27].mxu1  ;;  %4427 = vmatprep.subr.bf16.mxu1 %v4426_v24  ;;  %v1998_v24 = vld [vmem:[%s6562_s5 + $0x308] sm:$0xff] }
 0x420   :  { %4619 = vpow2.f32 %v3475_v28  ;;  %v1349_v21 = vadd.f32 %v3469_v54, %v1348_v3 }
 0x421   :  { %v3582_v15 = vpop.f32.mrb[48].mxu0  ;;  %v3478_v40 = vmul.f32 -1.442695, %v1354_v51 }
 0x422   :  { %v3583_v63 = vpop.f32.mrb[49].mxu0  ;;  %v3477_v32 = vmul.f32 -1.442695, %v1349_v21 }
 0x423   :  { %v6082_v2 = vadd.f32 %v3583_v63, %v3582_v15 }
 0x424   :  { %4621 = vpow2.f32 %v3477_v32 }
 0x425   :  { %v3585_v31 = vpop.f32.mrb[50].mxu0  ;;  %4623 = vpow2.f32 %v3478_v40 }
 0x426   :  { %v3586_v56 = vpop.f32.mrb[51].mxu0 }
 0x427   :  { %v6084_v61 = vadd.f32 %v3586_v56, %v3585_v31 }
 0x429   :  { %v4618_v27 = vpop.eup %4617 }
 0x42a   :  { %v4620_v29 = vpop.eup %4619  ;;  %v1370_v42 = vadd.f32 1.0, %v4618_v27  ;;  %v2483_v27 = vld [vmem:[%s6565_s8] sm:$0xff] }
 0x42b   :  { %v1369_v33 = vadd.f32 1.0, %v4620_v29 }
 0x42d   :  { %4625 = vrcp.f32 %v1369_v33 }
 0x42e   :  { %v4622_v6 = vpop.eup %4621  ;;  %4627 = vrcp.f32 %v1370_v42 }
 0x42f   :  { %v1371_v38 = vadd.f32 1.0, %v4622_v6  ;;  %v4624_v55 = vpop.eup %4623 }
 0x430   :  { %v1372_v59 = vadd.f32 1.0, %v4624_v55 }
 0x431   :  { %4629 = vrcp.f32 %v1371_v38 }
 0x432   :  { %4631 = vrcp.f32 %v1372_v59  ;;  %v2485_v59 = vld [vmem:[%s6565_s8 + $0x10] sm:$0xff]  ;;  %s4678_s8 = smov 126  }
 0x437   :  { %v4626_v43 = vpop.eup %4625 }
 0x438   :  { %1383 = vperm.xlu1 %4560, %v4626_v43   ;;  %v4628_v41 = vpop.eup %4627 }
 0x439   :  { %v3664_v4 = vpop.f32.mrb[52].mxu0 }
 0x43a   :  { %v3665_v20 = vpop.f32.mrb[53].mxu0  ;;  %v3620_v17 = vpop.f32.mrb[28].mxu1 }
 0x43b   :  { %v3666_v50 = vadd.f32 %v3665_v20, %v3664_v4  ;;  %v3621_v13 = vpop.f32.mrb[29].mxu1  ;;  %v4630_v23 = vpop.eup %4629 }
 0x43c   :  { %v3622_v60 = vadd.f32 %v3621_v13, %v3620_v17  ;;  %1388 = vperm.xlu1 %4560, %v4628_v41   ;;  %v4632_v51 = vpop.eup %4631 }
 0x43d   :  { %v3667_v16 = vpop.f32.mrb[54].mxu0 }
 0x43e   :  { %v1713_v47 = vadd.f32 %v3622_v60, %v6072_v8  ;;  %v3668_v1 = vpop.f32.mrb[55].mxu0  ;;  %v3623_v14 = vpop.f32.mrb[30].mxu1  ;;  %v1997_v60 = vld [vmem:[%s6562_s5 + $0x300] sm:$0xff] }
 0x43f   :  { %v3669_v54 = vadd.f32 %v3668_v1, %v3667_v16  ;;  %v3624_v28 = vpop.f32.mrb[31].mxu1  ;;  %v1984_v16 = vld [vmem:[%s6562_s5 + $0x298] sm:$0xff] }
 0x440   :  { %v3625_v45 = vadd.f32 %v3624_v28, %v3623_v14  ;;  %1393 = vperm.xlu1 %4560, %v4630_v23   ;;  %v1798_v36 = vadd.f32 %v3666_v50, %v1713_v47  ;;  %v1983_v23 = vld [vmem:[%s6562_s5 + $0x290] sm:$0xff]  ;;  %v2016_v1 = vld [vmem:[%s6562_s5 + $0x398] sm:$0xff]  ;;  %v4428_v28 = vpack.c.bf16 %v1998_v24, %v1997_v60 }
 0x441   :  { %v3670_v3 = vpop.f32.mrb[56].mxu0  ;;  %v2015_v47 = vld [vmem:[%s6562_s5 + $0x390] sm:$0xff] }
 0x442   :  { %v1718_v21 = vadd.f32 %v3625_v45, %v6080_v34  ;;  %v3671_v15 = vpop.f32.mrb[57].mxu0  ;;  %v3626_v40 = vpop.f32.mrb[32].mxu1  ;;  %v1967_v45 = vld [vmem:[%s6562_s5 + $0x210] sm:$0xff] }
 0x443   :  { %v3672_v63 = vadd.f32 %v3671_v15, %v3670_v3  ;;  %v3627_v32 = vpop.f32.mrb[33].mxu1  ;;  %v1971_v24 = vld [vmem:[%s6562_s5 + $0x230] sm:$0xff] }
 0x444   :  { %v3628_v31 = vadd.f32 %v3627_v32, %v3626_v40  ;;  %1398 = vperm.xlu1 %4560, %v4632_v51   ;;  %v1803_v56 = vadd.f32 %v3669_v54, %v1718_v21  ;;  %v4396_v54 = vpack.c.bf16 %v1966_v44, %v1965_v37  ;;  %v6616_v21 = vld [vmem:[#allocation8_spill] sm:$0xff]  ;;  %v6617_v40 = vld [vmem:[#allocation22_spill] sm:$0xff] }
 0x445   :  { %v3673_v8 = vpop.f32.mrb[58].mxu0  ;;  %v1968_v32 = vld [vmem:[%s6562_s5 + $0x218] sm:$0xff] }
 0x446   :  { %v1723_v29 = vadd.f32 %v3628_v31, %v6082_v2  ;;  %v3674_v33 = vpop.f32.mrb[59].mxu0  ;;  %v3629_v42 = vpop.f32.mrb[34].mxu1  ;;  %v1999_v31 = vld [vmem:[%s6562_s5 + $0x310] sm:$0xff] }
 0x447   :  { %v3675_v6 = vadd.f32 %v3674_v33, %v3673_v8  ;;  %v3630_v38 = vpop.f32.mrb[35].mxu1  ;;  %v4398_v8 = vpack.c.bf16 %v1984_v16, %v1983_v23  ;;  %v2017_v33 = vld [vmem:[%s6562_s5 + $0x3a0] sm:$0xff]  ;;  %v6621_v23 = vld [vmem:[#allocation13_spill] sm:$0xff] }
 0x448   :  { %v3631_v55 = vadd.f32 %v3630_v38, %v3629_v42  ;;  %2489 = vperm.xlu1 %4560, %v2483_v27   ;;  %v1808_v34 = vadd.f32 %v3672_v63, %v1723_v29  ;;  %v1985_v27 = vld [vmem:[%s6562_s5 + $0x2a0] sm:$0xff]  ;;  %v1986_v29 = vld [vmem:[%s6562_s5 + $0x2a8] sm:$0xff]  ;;  %v4400_v38 = vpack.c.bf16 %v1968_v32, %v1967_v45  ;;  %v2003_v45 = vld [vmem:[%s6562_s5 + $0x330] sm:$0xff] }
 0x449   :  { %v2018_v42 = vld [vmem:[%s6562_s5 + $0x3a8] sm:$0xff] }
 0x44a   :  { %v1728_v43 = vadd.f32 %v3631_v55, %v6084_v61  ;;  %v1990_v32 = vld [vmem:[%s6562_s5 + $0x2c8] sm:$0xff] }
 0x44c   :  { %2499 = vperm.xlu1 %4560, %v2485_v59   ;;  %v1813_v19 = vadd.f32 %v3675_v6, %v1728_v43  ;;  %v6618_v59 = vld [vmem:[#allocation11_spill] sm:$0xff] }
 0x45a   :  { %v3708_v35 = vpop.f32.mrb[36].mxu1 }
 0x45b   :  { %v3709_v9 = vpop.f32.mrb[37].mxu1 }
 0x45c   :  { %v3710_v46 = vadd.f32 %v3709_v9, %v3708_v35  ;;  %v6619_v35 = vld [vmem:[#allocation10_spill] sm:$0xff] }
 0x45e   :  { %v6120_v11 = vadd.f32 %v3710_v46, %v1798_v36  ;;  %v3711_v2 = vpop.f32.mrb[38].mxu1  ;;  %v6615_v36 = vld [vmem:[#allocation9_spill] sm:$0xff]  ;;  %v1970_v46 = vld [vmem:[%s6562_s5 + $0x228] sm:$0xff] }
 0x45f   :  { %v3712_v4 = vpop.f32.mrb[39].mxu1 }
 0x460   :  { %v3713_v7 = vadd.f32 %v3712_v4, %v3711_v2  ;;  %v2001_v2 = vld [vmem:[%s6562_s5 + $0x320] sm:$0xff]  ;;  %v2002_v4 = vld [vmem:[%s6562_s5 + $0x328] sm:$0xff] }
 0x461   :  { %v4436_v60 = vpack.c.bf16 %v2002_v4, %v2001_v2  ;;  %v6626_v2 = vld [vmem:[#allocation17_spill] sm:$0xff] }
 0x462   :  { %v6122_v20 = vadd.f32 %v3713_v7, %v1803_v56  ;;  %v3714_v17 = vpop.f32.mrb[40].mxu1  ;;  %v2000_v56 = vld [vmem:[%s6562_s5 + $0x318] sm:$0xff]  ;;  %v6620_v7 = vld [vmem:[#allocation23_spill] sm:$0xff] }
 0x463   :  { %v3715_v5 = vpop.f32.mrb[41].mxu1  ;;  %v4432_v55 = vpack.c.bf16 %v2000_v56, %v1999_v31  ;;  %v2022_v31 = vld [vmem:[%s6562_s5 + $0x3c8] sm:$0xff] }
 0x464   :  { %v3716_v12 = vadd.f32 %v3715_v5, %v3714_v17  ;;  %v4402_v17 = vpack.c.bf16 %v1986_v29, %v1985_v27  ;;  %v4434_v5 = vpack.c.bf16 %v2018_v42, %v2017_v33  ;;  %v6623_v56 = vld [vmem:[#allocation15_spill] sm:$0xff]  ;;  %v6624_v27 = vld [vmem:[#allocation14_spill] sm:$0xff] }
 0x465   :  { %v1973_v33 = vld [vmem:[%s6562_s5 + $0x240] sm:$0xff]  ;;  %v1974_v42 = vld [vmem:[%s6562_s5 + $0x248] sm:$0xff] }
 0x466   :  { %v6124_v0 = vadd.f32 %v3716_v12, %v1808_v34  ;;  %v3717_v41 = vpop.f32.mrb[42].mxu1  ;;  %v1969_v34 = vld [vmem:[%s6562_s5 + $0x220] sm:$0xff]  ;;  %v1987_v12 = vld [vmem:[%s6562_s5 + $0x2b0] sm:$0xff] }
 0x467   :  { %v3718_v50 = vpop.f32.mrb[43].mxu1  ;;  %v4404_v44 = vpack.c.bf16 %v1970_v46, %v1969_v34  ;;  %v2006_v34 = vld [vmem:[%s6562_s5 + $0x348] sm:$0xff]  ;;  %v2024_v46 = vld [vmem:[%s6562_s5 + $0x3d8] sm:$0xff] }
 0x468   :  { %v3719_v61 = vadd.f32 %v3718_v50, %v3717_v41  ;;  %v1988_v41 = vld [vmem:[%s6562_s5 + $0x2b8] sm:$0xff]  ;;  %v2019_v50 = vld [vmem:[%s6562_s5 + $0x3b0] sm:$0xff] }
 0x46a   :  { %v6126_v13 = vadd.f32 %v3719_v61, %v1813_v19  ;;  %v2020_v61 = vld [vmem:[%s6562_s5 + $0x3b8] sm:$0xff] }
 0x4b7   :  { %v6152_v14 = vpop.permute.xlu1 %1383 }
 0x4b8   :  { %v1402_v51 = vmul.f32 %v6152_v14, %v6615_v36  ;;  %v1404_v3 = vmul.f32 %v6152_v14, %v5339_v10  ;;  %v1401_v15 = vmul.f32 %v6152_v14, %v6616_v21  ;;  %v1403_v63 = vmul.f32 %v6152_v14, %v6617_v40  ;;  %v2004_v36 = vld [vmem:[%s6562_s5 + $0x338] sm:$0xff]  ;;  %v1989_v21 = vld [vmem:[%s6562_s5 + $0x2c0] sm:$0xff] }
 0x4b9   :  { %v4430_v10 = vpack.c.bf16 %v2016_v1, %v2015_v47  ;;  %v6622_v1 = vld [vmem:[#allocation12_spill] sm:$0xff]  ;;  %v1406_v4 = vmul.f32 %v6152_v14, %v6626_v2 }
 0x4ba   :  { %2093 = vmatprep.mubr.f32.mxu0 %v1402_v51  ;;  %2178 = vmatprep.mubr.f32.mxu1 %v1404_v3  ;;  %v4406_v51 = vpack.c.bf16 %v1988_v41, %v1987_v12  ;;  %v4438_v3 = vpack.c.bf16 %v2020_v61, %v2019_v50  ;;  %v1976_v12 = vld [vmem:[%s6562_s5 + $0x258] sm:$0xff] }
 0x4bb   :  { %v6186_v6 = vpop.permute.xlu1 %1388  ;;  %2094 = vmatmul.mubr.f32.vlgmr.msra.gmra.mrb[60].mxu0 %v1401_v15  ;;  %2179 = vmatmul.mubr.f32.vlgmr.msra.gmra.mrb[44].mxu1 %v1403_v63  ;;  %v4440_v63 = vpack.c.bf16 %v2004_v36, %v2003_v45  ;;  %v2008_v61 = vld [vmem:[%s6562_s5 + $0x358] sm:$0xff]  ;;  %v2009_v36 = vld [vmem:[%s6562_s5 + $0x360] sm:$0xff] }
 0x4bc   :  { %4397 = vmatpush3.bf16.msra.mxu0 %v4396_v54  ;;  %4429 = vmatpush3.bf16.msra.mxu1 %v4428_v28  ;;  %v1410_v43 = vmul.f32 %v6186_v6, %v6618_v59  ;;  %v1412_v19 = vmul.f32 %v6186_v6, %v5349_v25  ;;  %v1409_v9 = vmul.f32 %v6186_v6, %v6619_v35  ;;  %v1972_v28 = vld [vmem:[%s6562_s5 + $0x238] sm:$0xff]  ;;  %v1991_v59 = vld [vmem:[%s6562_s5 + $0x2d0] sm:$0xff] }
 0x4bd   :  { %4399 = vmatprep.subr.bf16.mxu0 %v4398_v8  ;;  %4431 = vmatprep.subr.bf16.mxu1 %v4430_v10  ;;  %v1411_v25 = vmul.f32 %v6186_v6, %v6620_v7  ;;  %v4408_v40 = vpack.c.bf16 %v1972_v28, %v1971_v24  ;;  %v1992_v35 = vld [vmem:[%s6562_s5 + $0x2d8] sm:$0xff]  ;;  %v1408_v7 = vmul.f32 %v6152_v14, %v5393_v48  ;;  %v2007_v48 = vld [vmem:[%s6562_s5 + $0x350] sm:$0xff]  ;;  %v2025_v24 = vld [vmem:[%s6562_s5 + $0x3e0] sm:$0xff] }
 0x4be   :  { %2098 = vmatprep.mubr.f32.mxu0 %v1410_v43  ;;  %2183 = vmatprep.mubr.f32.mxu1 %v1412_v19  ;;  %v4410_v43 = vpack.c.bf16 %v1990_v32, %v1989_v21  ;;  %v4414_v41 = vpack.c.bf16 %v1992_v35, %v1991_v59  ;;  %v2027_v21 = vld [vmem:[%s6562_s5 + $0x3f0] sm:$0xff]  ;;  %v1416_v59 = vmul.f32 %v6186_v6, %v5406_v39 }
 0x4bf   :  { %v6220_v37 = vpop.permute.xlu1 %1393  ;;  %2099 = vmatmul.mubr.f32.gmra.mrb[62].mxu0 %v1409_v9  ;;  %2184 = vmatmul.mubr.f32.gmra.mrb[46].mxu1 %v1411_v25  ;;  %v2023_v9 = vld [vmem:[%s6562_s5 + $0x3d0] sm:$0xff]  ;;  %v4412_v25 = vpack.c.bf16 %v1974_v42, %v1973_v33  ;;  %v1415_v35 = vmul.f32 %v6186_v6, %v5404_v58 }
 0x4c0   :  { %4401 = vmatpush3.bf16.msra.mxu0 %v4400_v38  ;;  %4433 = vmatpush3.bf16.msra.mxu1 %v4432_v55  ;;  %v1418_v16 = vmul.f32 %v6220_v37, %v6621_v23  ;;  %v1420_v47 = vmul.f32 %v6220_v37, %v5360_v30  ;;  %v1417_v54 = vmul.f32 %v6220_v37, %v6622_v1  ;;  %v6625_v38 = vld [vmem:[#allocation24_spill] sm:$0xff]  ;;  %v1977_v1 = vld [vmem:[%s6562_s5 + $0x260] sm:$0xff] }
 0x4c1   :  { %4403 = vmatprep.subr.bf16.mxu0 %v4402_v17  ;;  %4435 = vmatprep.subr.bf16.mxu1 %v4434_v5  ;;  %v1419_v30 = vmul.f32 %v6220_v37, %v5355_v22  ;;  %v2021_v22 = vld [vmem:[%s6562_s5 + $0x3c0] sm:$0xff]  ;;  %v1975_v5 = vld [vmem:[%s6562_s5 + $0x250] sm:$0xff]  ;;  %v4446_v50 = vpack.c.bf16 %v2024_v46, %v2023_v9  ;;  %v2026_v23 = vld [vmem:[%s6562_s5 + $0x3e8] sm:$0xff]  ;;  %v1422_v9 = vmul.f32 %v6220_v37, %v5291_v57 }
 0x4c2   :  { %2103 = vmatprep.mubr.f32.mxu0 %v1418_v16  ;;  %2188 = vmatprep.mubr.f32.mxu1 %v1420_v47  ;;  %v4442_v19 = vpack.c.bf16 %v2022_v31, %v2021_v22  ;;  %v4416_v16 = vpack.c.bf16 %v1976_v12, %v1975_v5  ;;  %v4448_v47 = vpack.c.bf16 %v2008_v61, %v2007_v48  ;;  %v1979_v22 = vld [vmem:[%s6562_s5 + $0x270] sm:$0xff] }
 0x4c3   :  { %v6245_v15 = vpop.permute.xlu1 %1398  ;;  %2104 = vmatmul.mubr.f32.gmra.mrb[64].mxu0 %v1417_v54  ;;  %2189 = vmatmul.mubr.f32.gmra.mrb[48].mxu1 %v1419_v30  ;;  %v1978_v54 = vld [vmem:[%s6562_s5 + $0x268] sm:$0xff]  ;;  %v4450_v45 = vpack.c.bf16 %v2026_v23, %v2025_v24  ;;  %v1423_v46 = vmul.f32 %v6220_v37, %v5415_v26  ;;  %v6631_v57 = vld [vmem:[#allocation21_spill] sm:$0xff]  ;;  %v2373_v26 = vld [vmem:[%s6563_s6] sm:$0xff] }
 0x4c4   :  { %4405 = vmatpush3.bf16.msra.mxu0 %v4404_v44  ;;  %4437 = vmatpush3.bf16.msra.mxu1 %v4436_v60  ;;  %v1426_v8 = vmul.f32 %v6245_v15, %v6623_v56  ;;  %v1428_v10 = vmul.f32 %v6245_v15, %v5376_v52  ;;  %v1425_v29 = vmul.f32 %v6245_v15, %v6624_v27  ;;  %v2005_v52 = vld [vmem:[%s6562_s5 + $0x340] sm:$0xff]  ;;  %v1994_v60 = vld [vmem:[%s6562_s5 + $0x2e8] sm:$0xff]  ;;  %v2012_v27 = vld [vmem:[%s6562_s5 + $0x378] sm:$0xff] }
 0x4c5   :  { %4407 = vmatprep.subr.bf16.mxu0 %v4406_v51  ;;  %4439 = vmatprep.subr.bf16.mxu1 %v4438_v3  ;;  %v1427_v55 = vmul.f32 %v6245_v15, %v6625_v38  ;;  %v4444_v17 = vpack.c.bf16 %v2006_v34, %v2005_v52  ;;  %v1993_v44 = vld [vmem:[%s6562_s5 + $0x2e0] sm:$0xff]  ;;  %v2010_v30 = vld [vmem:[%s6562_s5 + $0x368] sm:$0xff]  ;;  %v1995_v51 = vld [vmem:[%s6562_s5 + $0x2f0] sm:$0xff]  ;;  %v1430_v2 = vmul.f32 %v6245_v15, %v5295_v62 }
 0x4c6   :  { %2108 = vmatprep.mubr.f32.mxu0 %v1426_v8  ;;  %2193 = vmatprep.mubr.f32.mxu1 %v1428_v10  ;;  %v4418_v28 = vpack.c.bf16 %v1994_v60, %v1993_v44  ;;  %v1996_v3 = vld [vmem:[%s6562_s5 + $0x2f8] sm:$0xff]  ;;  %v4452_v32 = vpack.c.bf16 %v2010_v30, %v2009_v36  ;;  %v2011_v10 = vld [vmem:[%s6562_s5 + $0x370] sm:$0xff]  ;;  %v6628_v52 = vld [vmem:[#allocation19_spill] sm:$0xff]  ;;  %v1432_v58 = vmul.f32 %v6245_v15, %v5426_v18 }
 0x4c7   :  { %2109 = vmatmul.mubr.f32.gmra.mrb[66].mxu0 %v1425_v29  ;;  %2194 = vmatmul.mubr.f32.gmra.mrb[50].mxu1 %v1427_v55  ;;  %v4422_v31 = vpack.c.bf16 %v1996_v3, %v1995_v51  ;;  %v1980_v8 = vld [vmem:[%s6562_s5 + $0x278] sm:$0xff]  ;;  %v4456_v33 = vpack.c.bf16 %v2012_v27, %v2011_v10  ;;  %v6627_v42 = vld [vmem:[#allocation16_spill] sm:$0xff]  ;;  %v1407_v55 = vmul.f32 %v6152_v14, %v5389_v53 }
 0x4c8   :  { %4409 = vmatpush3.bf16.msra.mxu0 %v4408_v40  ;;  %4441 = vmatpush3.bf16.msra.mxu1 %v4440_v63  ;;  %v2028_v40 = vld [vmem:[%s6562_s5 + $0x3f8] sm:$0xff]  ;;  %v4420_v63 = vpack.c.bf16 %v1978_v54, %v1977_v1  ;;  %v4424_v29 = vpack.c.bf16 %v1980_v8, %v1979_v22  ;;  %v1405_v38 = vmul.f32 %v6152_v14, %v6627_v42  ;;  %v6630_v39 = vld [vmem:[#allocation20_spill] sm:$0xff]  ;;  %s4677_s5 = smov 127  }
 0x4c9   :  { %2263 = vmatprep.mubr.f32.mxu0 %v1406_v4  ;;  %2348 = vmatprep.mubr.f32.mxu1 %v1408_v7  ;;  %v4454_v56 = vpack.c.bf16 %v2028_v40, %v2027_v21  ;;  %v1414_v34 = vmul.f32 %v6186_v6, %v6628_v52  ;;  %v1424_v53 = vmul.f32 %v6220_v37, %v5417_v49  ;;  %v2374_v62 = vld [vmem:[%s6563_s6 + $0x8] sm:$0xff]  ;;  %v2379_v12 = vld [vmem:[%s6563_s6 + $0x30] sm:$0xff] }
 0x4ca   :  { %4411 = vmatprep.subr.bf16.mxu0 %v4410_v43  ;;  %4443 = vmatprep.subr.bf16.mxu1 %v4442_v19  ;;  %v6629_v43 = vld [vmem:[#allocation18_spill] sm:$0xff]  ;;  %v1421_v14 = vmul.f32 %v6220_v37, %v6630_v39  ;;  %v1429_v49 = vmul.f32 %v6245_v15, %v6631_v57  ;;  %v4458_v18 = vpack.c.bf16 %v2374_v62, %v2373_v26  ;;  %v2375_v37 = vld [vmem:[%s6563_s6 + $0x10] sm:$0xff] }
 0x4cb   :  { %v1413_v19 = vmul.f32 %v6186_v6, %v6629_v43  ;;  %v6632_v6 = vld [vmem:[#allocation25_spill] sm:$0xff] }
 0x4cc   :  { %4413 = vmatpush3.bf16.msra.mxu0 %v4412_v25  ;;  %4445 = vmatpush3.bf16.msra.mxu1 %v4444_v17  ;;  %v1431_v4 = vmul.f32 %v6245_v15, %v6632_v6  ;;  %v2376_v15 = vld [vmem:[%s6563_s6 + $0x18] sm:$0xff]  ;;  %v2377_v25 = vld [vmem:[%s6563_s6 + $0x20] sm:$0xff]  ;;  %v2378_v17 = vld [vmem:[%s6563_s6 + $0x28] sm:$0xff] }
 0x4cd   :  { %4415 = vmatprep.subr.bf16.mxu0 %v4414_v41  ;;  %4447 = vmatprep.subr.bf16.mxu1 %v4446_v50  ;;  %v4462_v7 = vpack.c.bf16 %v2376_v15, %v2375_v37  ;;  %v4466_v5 = vpack.c.bf16 %v2378_v17, %v2377_v25  ;;  %v2380_v41 = vld [vmem:[%s6563_s6 + $0x38] sm:$0xff] }
 0x4ce   :  { %v4470_v50 = vpack.c.bf16 %v2380_v41, %v2379_v12 }
 0x4d0   :  { %4417 = vmatpush3.bf16.msra.mxu0 %v4416_v16  ;;  %4449 = vmatpush3.bf16.msra.mxu1 %v4448_v47 }
 0x4d1   :  { %4419 = vmatprep.subr.bf16.mxu0 %v4418_v28  ;;  %4451 = vmatprep.subr.bf16.mxu1 %v4450_v45 }
 0x4d4   :  { %4421 = vmatpush3.bf16.msra.mxu0 %v4420_v63  ;;  %4453 = vmatpush3.bf16.msra.mxu1 %v4452_v32 }
 0x4d5   :  { %4423 = vmatprep.subr.bf16.mxu0 %v4422_v31  ;;  %4455 = vmatprep.subr.bf16.mxu1 %v4454_v56 }
 0x4d8   :  { %4425 = vmatpush3.bf16.msra.mxu0 %v4424_v29  ;;  %4457 = vmatpush3.bf16.msra.mxu1 %v4456_v33 }
 0x4d9   :  { %4459 = vmatprep.subr.bf16.mxu0 %v4458_v18 }
 0x4db   :  { %2264 = vmatmul.mubr.f32.vlgmr.msra.gmra.mrb[68].mxu0 %v1405_v38  ;;  %2349 = vmatmul.mubr.f32.vlgmr.msra.gmra.mrb[52].mxu1 %v1407_v55 }
 0x4dc   :  { %2268 = vmatprep.mubr.f32.mxu0 %v1414_v34  ;;  %2353 = vmatprep.mubr.f32.mxu1 %v1416_v59 }
 0x4dd   :  { %4461 = vmatpush3.bf16.msra.mxu0 %v4458_v18 }
 0x4de   :  { %4463 = vmatprep.subr.bf16.mxu0 %v4462_v7 }
 0x4df   :  { %2269 = vmatmul.mubr.f32.gmra.mrb[70].mxu0 %v1413_v19  ;;  %2354 = vmatmul.mubr.f32.gmra.mrb[54].mxu1 %v1415_v35 }
 0x4e0   :  { %2273 = vmatprep.mubr.f32.mxu0 %v1422_v9  ;;  %2358 = vmatprep.mubr.f32.mxu1 %v1424_v53 }
 0x4e1   :  { %4465 = vmatpush3.bf16.msra.mxu0 %v4462_v7 }
 0x4e2   :  { %4467 = vmatprep.subr.bf16.mxu0 %v4466_v5 }
 0x4e3   :  { %2274 = vmatmul.mubr.f32.gmra.mrb[72].mxu0 %v1421_v14  ;;  %2359 = vmatmul.mubr.f32.gmra.mrb[56].mxu1 %v1423_v46 }
 0x4e4   :  { %2278 = vmatprep.mubr.f32.mxu0 %v1430_v2  ;;  %2363 = vmatprep.mubr.f32.mxu1 %v1432_v58 }
 0x4e5   :  { %4469 = vmatpush3.bf16.msra.mxu0 %v4466_v5 }
 0x4e6   :  { %4471 = vmatprep.subr.bf16.mxu0 %v4470_v50 }
 0x4e7   :  { %2279 = vmatmul.mubr.f32.gmra.mrb[74].mxu0 %v1429_v49  ;;  %2364 = vmatmul.mubr.f32.gmra.mrb[58].mxu1 %v1431_v4 }
 0x4e9   :  { %4473 = vmatpush3.bf16.msra.mxu0 %v4470_v50 }
 0x58e   :  { %v3752_v48 = vpop.f32.mrb[60].mxu0  ;;  %v3796_v61 = vpop.f32.mrb[44].mxu1 }
 0x58f   :  { %v3753_v44 = vpop.f32.mrb[61].mxu0  ;;  %v3797_v60 = vpop.f32.mrb[45].mxu1 }
 0x590   :  { %v3754_v24 = vadd.f32 %v3753_v44, %v3752_v48  ;;  %v3798_v23 = vadd.f32 %v3797_v60, %v3796_v61 }
 0x592   :  { %v2096_v16 = vadd.f32 1.0, %v3754_v24  ;;  %v3755_v47 = vpop.f32.mrb[62].mxu0  ;;  %v3799_v1 = vpop.f32.mrb[46].mxu1 }
 0x593   :  { %v3756_v54 = vpop.f32.mrb[63].mxu0  ;;  %v3800_v28 = vpop.f32.mrb[47].mxu1 }
 0x594   :  { %v2181_v45 = vadd.f32 %v3798_v23, %v2096_v16  ;;  %v3757_v36 = vadd.f32 %v3756_v54, %v3755_v47  ;;  %v3801_v30 = vadd.f32 %v3800_v28, %v3799_v1 }
 0x596   :  { %v2101_v51 = vadd.f32 1.0, %v3757_v36  ;;  %v3758_v3 = vpop.f32.mrb[64].mxu0  ;;  %v3802_v21 = vpop.f32.mrb[48].mxu1  ;;  %v2481_v36 = vld [vmem:[%s6564_s7 + $0x10] sm:$0xff] }
 0x597   :  { %v3759_v40 = vpop.f32.mrb[65].mxu0  ;;  %v3803_v63 = vpop.f32.mrb[49].mxu1 }
 0x598   :  { %v2186_v32 = vadd.f32 %v3801_v30, %v2101_v51  ;;  %v3760_v22 = vadd.f32 %v3759_v40, %v3758_v3  ;;  %v3804_v31 = vadd.f32 %v3803_v63, %v3802_v21  ;;  %v2482_v30 = vld [vmem:[%s6564_s7 + $0x18] sm:$0xff]  ;;  %v6633_v51 = vmov 0.0   ;;  %v2495_v3 = vpop.permute.xlu0 %2494  ;;  %v2490_v21 = vpop.permute.xlu1 %2489 }
 0x599   :  { %2606 = vst.msk [vmem:[#allocation2 + $0x8] sm:$0xff] %vm2604_vm6, %v6633_v51  ;;  %2605 = vst.msk [vmem:[#allocation2] sm:$0xff] %vm2604_vm6, %v6633_v51 }
 0x59a   :  { %v2106_v56 = vadd.f32 1.0, %v3760_v22  ;;  %v3761_v8 = vpop.f32.mrb[66].mxu0  ;;  %v3805_v10 = vpop.f32.mrb[50].mxu1  ;;  %2607 = vst.msk [vmem:[#allocation2 + $0x10] sm:$0xff] %vm2604_vm6, %v6633_v51  ;;  %2608 = vst.msk [vmem:[#allocation2 + $0x18] sm:$0xff] %vm2604_vm6, %v6633_v51 }
 0x59b   :  { %v3762_v27 = vpop.f32.mrb[67].mxu0  ;;  %v3806_v29 = vpop.f32.mrb[51].mxu1 }
 0x59c   :  { %v2191_v33 = vadd.f32 %v3804_v31, %v2106_v56  ;;  %v3763_v42 = vadd.f32 %v3762_v27, %v3761_v8  ;;  %v3807_v38 = vadd.f32 %v3806_v29, %v3805_v10  ;;  %v2505_v31 = vpop.permute.xlu0 %2504  ;;  %v2500_v8 = vpop.permute.xlu1 %2499 }
 0x59e   :  { %v2111_v55 = vadd.f32 1.0, %v3763_v42 }
 0x5a0   :  { %v2196_v52 = vadd.f32 %v3807_v38, %v2111_v55  ;;  %v2634_v38 = vld [vmem:[%s6566_s9] sm:$0xff] }
 0x5a1   :  { %4033 = vmatprep.mubr.msk.f32.mxu1 %vm566_vm4, %v2634_v38  ;;  %v3508_v38 = vld [vmem:[%s6566_s9 + $0x68] sm:$0xff] }
 0x5ae   :  { %v3840_v34 = vpop.f32.mrb[68].mxu0  ;;  %v3884_v59 = vpop.f32.mrb[52].mxu1 }
 0x5af   :  { %v3841_v43 = vpop.f32.mrb[69].mxu0  ;;  %v3885_v19 = vpop.f32.mrb[53].mxu1 }
 0x5b0   :  { %v3842_v35 = vadd.f32 %v3841_v43, %v3840_v34  ;;  %v3886_v9 = vadd.f32 %v3885_v19, %v3884_v59 }
 0x5b2   :  { %v2266_v53 = vadd.f32 %v3842_v35, %v2181_v45  ;;  %v3843_v39 = vpop.f32.mrb[70].mxu0  ;;  %v3887_v14 = vpop.f32.mrb[54].mxu1 }
 0x5b3   :  { %v3844_v46 = vpop.f32.mrb[71].mxu0  ;;  %v3888_v2 = vpop.f32.mrb[55].mxu1 }
 0x5b4   :  { %v2351_v58 = vadd.f32 %v3886_v9, %v2266_v53  ;;  %v3845_v57 = vadd.f32 %v3844_v46, %v3843_v39  ;;  %v3889_v49 = vadd.f32 %v3888_v2, %v3887_v14  ;;  %v2635_v14 = vld [vmem:[%s6566_s9 + $0x8] sm:$0xff]  ;;  %v2636_v46 = vld [vmem:[%s6566_s9 + $0x10] sm:$0xff]  ;;  %v2637_v2 = vld [vmem:[%s6566_s9 + $0x18] sm:$0xff] }
 0x5b6   :  { %v2369_v6 = vmul.f32 %v2351_v58, %v6120_v11  ;;  %v2271_v4 = vadd.f32 %v3845_v57, %v2186_v32  ;;  %v3846_v26 = vpop.f32.mrb[72].mxu0  ;;  %v3890_v62 = vpop.f32.mrb[56].mxu1  ;;  %v3491_v58 = vld [vmem:[%s6566_s9 + $0x20] sm:$0xff] }
 0x5b7   :  { %v3847_v18 = vpop.f32.mrb[73].mxu0  ;;  %v3891_v37 = vpop.f32.mrb[57].mxu1  ;;  %v2630_v57 = vld [vmem:[%s6567_s10] sm:$0xff] }
 0x5b8   :  { %v2356_v15 = vadd.f32 %v3889_v49, %v2271_v4  ;;  %v3848_v7 = vadd.f32 %v3847_v18, %v3846_v26  ;;  %v3892_v25 = vadd.f32 %v3891_v37, %v3890_v62  ;;  %4005 = vmatprep.mubr.msk.f32.mxu0 %vm2381_vm5, %v2369_v6  ;;  %v2632_v49 = vld [vmem:[%s6567_s10 + $0x10] sm:$0xff]  ;;  %v2631_v6 = vld [vmem:[%s6567_s10 + $0x8] sm:$0xff]  ;;  %v3272_v4 = vld [vmem:[#allocation3] sm:$0x1] }
 0x5b9   :  { %v2633_v26 = vld [vmem:[%s6567_s10 + $0x18] sm:$0xff] }
 0x5ba   :  { %v2370_v17 = vmul.f32 %v2356_v15, %v6122_v20  ;;  %v2276_v5 = vadd.f32 %v3848_v7, %v2191_v33  ;;  %v3849_v12 = vpop.f32.mrb[74].mxu0  ;;  %v3893_v41 = vpop.f32.mrb[58].mxu1  ;;  %v2479_v20 = vld [vmem:[%s6564_s7] sm:$0xff] }
 0x5bb   :  { %v3850_v50 = vpop.f32.mrb[75].mxu0  ;;  %v3894_v48 = vpop.f32.mrb[59].mxu1 }
 0x5bc   :  { %v2361_v61 = vadd.f32 %v3892_v25, %v2276_v5  ;;  %v3851_v44 = vadd.f32 %v3850_v50, %v3849_v12  ;;  %v3895_v11 = vadd.f32 %v3894_v48, %v3893_v41  ;;  %4006 = vmatmul.mubr.msk.f32.vlgmr.msra.gmra.mrb[76].mxu0 %vm2381_vm5, %v2370_v17 }
 0x5be   :  { %v2371_v60 = vmul.f32 %v2361_v61, %v6124_v0  ;;  %v2281_v24 = vadd.f32 %v3851_v44, %v2196_v52 }
 0x5c0   :  { %v2366_v23 = vadd.f32 %v3895_v11, %v2281_v24  ;;  %4008 = vmatprep.mubr.msk.f32.mxu0 %vm2381_vm5, %v2371_v60  ;;  %v3492_v24 = vld [vmem:[%s6566_s9 + $0x28] sm:$0xff] }
 0x5c2   :  { %v2372_v16 = vmul.f32 %v2366_v23, %v6126_v13  ;;  %v2480_v13 = vld [vmem:[%s6564_s7 + $0x8] sm:$0xff]  ;;  %s4676_s7 = smov 2   ;;  %v3493_v23 = vld [vmem:[%s6566_s9 + $0x30] sm:$0xff] }
 0x5c4   :  { %4009 = vmatmul.mubr.msk.f32.gmra.mrb[78].mxu0 %vm2381_vm5, %v2372_v16 }
 0x5c5   :  { %4019 = vmatprep.mubr.msk.f32.mxu0 %vm566_vm4, %v2479_v20 }
 0x68f   :  { %v4007_v47 = vpop.f32.mrb[76].mxu0 }
 0x690   :  { %v2460_v1 = vpop.f32.mrb[77].mxu0 }
 0x691   :  { %v4474_v54 = vpack.c.bf16 %v4007_v47, %v2460_v1 }
 0x693   :  { %4475 = vmatprep.subr.bf16.mxu0 %v4474_v54 }
 0x694   :  { %4477 = vmatpush3.bf16.msra.mxu0 %v4474_v54  ;;  %v3494_v54 = vld [vmem:[%s6566_s9 + $0x38] sm:$0xff] }
 0x697   :  { %v4010_v0 = vpop.f32.mrb[78].mxu0 }
 0x698   :  { %v2470_v28 = vpop.f32.mrb[79].mxu0 }
 0x699   :  { %v4478_v45 = vpack.c.bf16 %v4010_v0, %v2470_v28  ;;  %v3499_v0 = vld [vmem:[%s6566_s9 + $0x40] sm:$0xff] }
 0x69b   :  { %4479 = vmatprep.subr.bf16.mxu0 %v4478_v45 }
 0x69c   :  { %4481 = vmatpush3.bf16.msra.mxu0 %v4478_v45 }
 0x69f   :  { %4020 = vmatmul.mubr.msk.f32.vlgmr.msra.gmra.mrb[80].mxu0 %vm566_vm4, %v2480_v13 }
 0x6a0   :  { %4022 = vmatprep.mubr.msk.f32.mxu0 %vm566_vm4, %v2481_v36 }
 0x6a3   :  { %4023 = vmatmul.mubr.msk.f32.gmra.mrb[82].mxu0 %vm566_vm4, %v2482_v30  ;;  %v3500_v30 = vld [vmem:[%s6566_s9 + $0x48] sm:$0xff] }
 0x6a4   :  { %4103 = vmatprep.mubr.msk.f32.mxu0 %vm4682_vm8, %v6633_v51 }
 0x772   :  { %v4021_v40 = vpop.f32.mrb[80].mxu0 }
 0x773   :  { %v6432_v63 = vadd.f32 %v4021_v40, %v2495_v3  ;;  %v2585_v32 = vpop.f32.mrb[81].mxu0  ;;  %v3501_v3 = vld [vmem:[%s6566_s9 + $0x50] sm:$0xff] }
 0x774   :  { %v6434_v22 = vadd.f32 %v2585_v32, %v2490_v21 }
 0x775   :  { %2615 = vrot.lane.b32.xlu0 %v6432_v63, %s4676_s7 }
 0x776   :  { %v4024_v56 = vpop.f32.mrb[82].mxu0  ;;  %2613 = vrot.lane.b32.xlu1 %v6434_v22, %s4676_s7 }
 0x777   :  { %v6438_v10 = vadd.f32 %v4024_v56, %v2505_v31  ;;  %v2595_v27 = vpop.f32.mrb[83].mxu0  ;;  %v3502_v56 = vld [vmem:[%s6566_s9 + $0x58] sm:$0xff] }
 0x778   :  { %v6440_v29 = vadd.f32 %v2595_v27, %v2500_v8  ;;  %v3507_v8 = vld [vmem:[%s6566_s9 + $0x60] sm:$0xff] }
 0x779   :  { %2619 = vrot.lane.b32.xlu0 %v6438_v10, %s4676_s7 }
 0x77a   :  { %2617 = vrot.lane.b32.xlu1 %v6440_v29, %s4676_s7  ;;  %s4649_s7 = scalar_lea.vmem %s3364_s15, 16 }
 0x77b   :  { %p4650_p0 = scmp.ne.s32.totalorder %s3364_s15, %s4649_s7  ;;  %p4655_p2 = scmp.lt.s32.totalorder %s4653_s0, %s4649_s7 }
 0x77d   :  { %p4656_p3 = por %p4655_p2, %p4654_p1 }
 0x77f   :  { %p4657_p4 = pnand %p4656_p3, %p4650_p0 }
 0x7e7   :  { %v2616_v33 = vpop.permute.xlu0 %2615 }
 0x7e8   :  { %2627 = vst.msk [vmem:[#allocation2 + $0x8] sm:$0xff] %vm2625_vm7, %v2616_v33  ;;  %v2614_v42 = vpop.permute.xlu1 %2613 }
 0x7e9   :  { %2626 = vst.msk [vmem:[#allocation2] sm:$0xff] %vm2625_vm7, %v2614_v42 }
 0x7eb   :  { %v2620_v55 = vpop.permute.xlu0 %2619 }
 0x7ec   :  { %2629 = vst.msk [vmem:[#allocation2 + $0x18] sm:$0xff] %vm2625_vm7, %v2620_v55  ;;  %v2618_v52 = vpop.permute.xlu1 %2617  ;;  %v3509_v55 = vld [vmem:[%s6566_s9 + $0x70] sm:$0xff] }
 0x7ed   :  { %2628 = vst.msk [vmem:[#allocation2 + $0x10] sm:$0xff] %vm2625_vm7, %v2618_v52 }
 0x7ef   :  { %v2639_v34 = vld [vmem:[#allocation2 + $0x8] sm:$0xff] }
 0x7f0   :  { %v2638_v59 = vld [vmem:[#allocation2] sm:$0xff] }
 0x7f1   :  { %v4561_v43 = vpack.i.bf16 %v2639_v34, %v2638_v59  ;;  %v4482_v19 = vpack.c.bf16 %v2639_v34, %v2638_v59  ;;  %v3510_v34 = vld [vmem:[%s6566_s9 + $0x78] sm:$0xff]  ;;  %v3515_v59 = vld [vmem:[%s6566_s9 + $0x80] sm:$0xff] }
 0x7f3   :  { %4562 = vrot.lane.b32.xlu1 %v4561_v43, %s4677_s5  ;;  %4483 = vmatprep.subr.bf16.mxu1 %v4482_v19  ;;  %v2641_v35 = vld [vmem:[#allocation2 + $0x18] sm:$0xff] }
 0x7f4   :  { %4485 = vmatpush3.bf16.msra.mxu1 %v4482_v19  ;;  %v2640_v9 = vld [vmem:[#allocation2 + $0x10] sm:$0xff] }
 0x7f5   :  { %v4566_v53 = vpack.i.bf16 %v2641_v35, %v2640_v9  ;;  %v4486_v39 = vpack.c.bf16 %v2641_v35, %v2640_v9  ;;  %v3517_v19 = vld [vmem:[%s6566_s9 + $0x90] sm:$0xff]  ;;  %v3518_v35 = vld [vmem:[%s6566_s9 + $0x98] sm:$0xff]  ;;  %v4681_v9 = vmov 0.0|0.0  }
 0x7f6   :  { %4522 = vmatprep.subr.bf16.mxu0 %v4681_v9 }
 0x7f7   :  { %4572 = vrot.lane.b32.xlu1 %v4561_v43, %s4678_s8  ;;  %4567 = vrot.lane.b32.xlu0 %v4566_v53, %s4677_s5 }
 0x7f8   :  { %4487 = vmatprep.subr.bf16.mxu1 %v4486_v39 }
 0x7f9   :  { %4489 = vmatpush3.bf16.msra.mxu1 %v4486_v39 }
 0x7fb   :  { %4582 = vrot.lane.b32.xlu1 %v4561_v43, %s4679_s18  ;;  %4577 = vrot.lane.b32.xlu0 %v4566_v53, %s4678_s8 }
 0x7fc   :  { %4034 = vmatmul.mubr.msk.f32.vlgmr.msra.gmra.mrb[60].mxu1 %vm566_vm4, %v2635_v14 }
 0x7fd   :  { %4036 = vmatprep.mubr.msk.f32.mxu1 %vm566_vm4, %v2636_v46 }
 0x7ff   :  { %4592 = vrot.lane.b32.xlu1 %v4561_v43, %s4680_s21  ;;  %4587 = vrot.lane.b32.xlu0 %v4566_v53, %s4679_s18  ;;  %v3516_v43 = vld [vmem:[%s6566_s9 + $0x88] sm:$0xff] }
 0x800   :  { %4037 = vmatmul.mubr.msk.f32.gmra.mrb[62].mxu1 %vm566_vm4, %v2637_v2 }
 0x801   :  { %4047 = vmatprep.mubr.msk.f32.mxu1 %vm566_vm4, %v3491_v58 }
 0x803   :  { %2741 = vperm.xlu1 %4560, %v2630_v57   ;;  %4597 = vrot.lane.b32.xlu0 %v4566_v53, %s4680_s21 }
 0x807   :  { %2751 = vperm.xlu1 %4560, %v2632_v49   ;;  %2746 = vperm.xlu0 %4559, %v2631_v6  }
 0x80b   :  { %3275 = vperm.xlu1 %4560, %v3272_v4   ;;  %2756 = vperm.xlu0 %4559, %v2633_v26  }
 0x865   :  { %v4563_v62 = vpop.permute.xlu1 %4562 }
 0x866   :  { %v4565_v18 = vunpack.i.h.bf16 %v4563_v62  ;;  %v4564_v37 = vunpack.i.l.bf16 %v4563_v62 }
 0x868   :  { %v4490_v15 = vpack.c.bf16 %v4565_v18, %v4564_v37 }
 0x869   :  { %v4573_v7 = vpop.permute.xlu1 %4572  ;;  %v4568_v25 = vpop.permute.xlu0 %4567 }
 0x86a   :  { %v4575_v17 = vunpack.i.h.bf16 %v4573_v7  ;;  %v4574_v5 = vunpack.i.l.bf16 %v4573_v7  ;;  %v4570_v12 = vunpack.i.h.bf16 %v4568_v25  ;;  %v4569_v41 = vunpack.i.l.bf16 %v4568_v25  ;;  %4491 = vmatprep.subr.bf16.mxu1 %v4490_v15 }
 0x86b   :  { %4493 = vmatpush3.bf16.msra.mxu1 %v4490_v15 }
 0x86c   :  { %v4494_v50 = vpack.c.bf16 %v4570_v12, %v4569_v41  ;;  %v4498_v61 = vpack.c.bf16 %v4575_v17, %v4574_v5 }
 0x86d   :  { %v4578_v48 = vpop.permute.xlu0 %4577  ;;  %v4583_v60 = vpop.permute.xlu1 %4582 }
 0x86e   :  { %v4580_v44 = vunpack.i.h.bf16 %v4578_v48  ;;  %v4579_v11 = vunpack.i.l.bf16 %v4578_v48  ;;  %4495 = vmatprep.subr.bf16.mxu1 %v4494_v50  ;;  %v4585_v16 = vunpack.i.h.bf16 %v4583_v60  ;;  %v4584_v20 = vunpack.i.l.bf16 %v4583_v60 }
 0x86f   :  { %4497 = vmatpush3.bf16.msra.mxu1 %v4494_v50 }
 0x870   :  { %4499 = vmatprep.subr.bf16.mxu1 %v4498_v61  ;;  %v4502_v47 = vpack.c.bf16 %v4580_v44, %v4579_v11  ;;  %v4506_v28 = vpack.c.bf16 %v4585_v16, %v4584_v20 }
 0x871   :  { %v4588_v1 = vpop.permute.xlu0 %4587  ;;  %v4593_v36 = vpop.permute.xlu1 %4592 }
 0x872   :  { %4048 = vmatmul.mubr.msk.f32.vlgmr.msra.gmra.mrb[60].mxu1 %vm566_vm4, %v3492_v24  ;;  %v4590_v45 = vunpack.i.h.bf16 %v4588_v1  ;;  %v4589_v13 = vunpack.i.l.bf16 %v4588_v1  ;;  %v4595_v21 = vunpack.i.h.bf16 %v4593_v36  ;;  %v4594_v40 = vunpack.i.l.bf16 %v4593_v36 }
 0x873   :  { %4501 = vmatpush3.bf16.msra.mxu1 %v4498_v61  ;;  %4050 = vmatprep.mubr.msk.f32.mxu1 %vm566_vm4, %v3493_v23 }
 0x874   :  { %4503 = vmatprep.subr.bf16.mxu1 %v4502_v47  ;;  %v4510_v32 = vpack.c.bf16 %v4590_v45, %v4589_v13  ;;  %v4514_v27 = vpack.c.bf16 %v4595_v21, %v4594_v40  ;;  %v3271_v13 = vld [vmem:[%s6568_s11] sm:$0x1] }
 0x875   :  { %v4598_v31 = vpop.permute.xlu0 %4597 }
 0x876   :  { %4051 = vmatmul.mubr.msk.f32.gmra.mrb[62].mxu1 %vm566_vm4, %v3494_v54  ;;  %v4600_v33 = vunpack.i.h.bf16 %v4598_v31  ;;  %v4599_v42 = vunpack.i.l.bf16 %v4598_v31 }
 0x877   :  { %4505 = vmatpush3.bf16.msra.mxu1 %v4502_v47  ;;  %4061 = vmatprep.mubr.msk.f32.mxu1 %vm566_vm4, %v3499_v0 }
 0x878   :  { %4507 = vmatprep.subr.bf16.mxu1 %v4506_v28  ;;  %v4518_v52 = vpack.c.bf16 %v4600_v33, %v4599_v42 }
 0x87a   :  { %4062 = vmatmul.mubr.msk.f32.vlgmr.msra.gmra.mrb[60].mxu1 %vm566_vm4, %v3500_v30 }
 0x87b   :  { %4509 = vmatpush3.bf16.msra.mxu1 %v4506_v28  ;;  %4064 = vmatprep.mubr.msk.f32.mxu1 %vm566_vm4, %v3501_v3 }
 0x87c   :  { %4511 = vmatprep.subr.bf16.mxu1 %v4510_v32 }
 0x87e   :  { %4065 = vmatmul.mubr.msk.f32.gmra.mrb[62].mxu1 %vm566_vm4, %v3502_v56 }
 0x87f   :  { %4513 = vmatpush3.bf16.msra.mxu1 %v4510_v32  ;;  %4075 = vmatprep.mubr.msk.f32.mxu1 %vm566_vm4, %v3507_v8 }
 0x880   :  { %4515 = vmatprep.subr.bf16.mxu1 %v4514_v27 }
 0x882   :  { %4076 = vmatmul.mubr.msk.f32.vlgmr.msra.gmra.mrb[60].mxu1 %vm566_vm4, %v3508_v38  ;;  %v2742_v39 = vpop.permute.xlu1 %2741 }
 0x883   :  { %4517 = vmatpush3.bf16.msra.mxu1 %v4514_v27  ;;  %4078 = vmatprep.mubr.msk.f32.mxu1 %vm566_vm4, %v3509_v55 }
 0x884   :  { %4519 = vmatprep.subr.bf16.mxu1 %v4518_v52 }
 0x886   :  { %4079 = vmatmul.mubr.msk.f32.gmra.mrb[62].mxu1 %vm566_vm4, %v3510_v34  ;;  %v2747_v53 = vpop.permute.xlu0 %2746  ;;  %v2752_v26 = vpop.permute.xlu1 %2751 }
 0x887   :  { %4521 = vmatpush3.bf16.msra.mxu1 %v4518_v52  ;;  %4089 = vmatprep.mubr.msk.f32.mxu1 %vm566_vm4, %v3515_v59 }
 0x88a   :  { %4090 = vmatmul.mubr.msk.f32.vlgmr.msra.gmra.mrb[60].mxu1 %vm566_vm4, %v3516_v43  ;;  %v2757_v49 = vpop.permute.xlu0 %2756  ;;  %v3276_v30 = vpop.permute.xlu1 %3275 }
 0x88b   :  { %4092 = vmatprep.mubr.msk.f32.mxu1 %vm566_vm4, %v3517_v19 }
 0x88e   :  { %4093 = vmatmul.mubr.msk.f32.gmra.mrb[62].mxu1 %vm566_vm4, %v3518_v35 }
 0x95d   :  { %v4091_v14 = vpop.f32.mrb[60].mxu1 }
 0x95e   :  { %v4528_v46 = vadd.f32 %v4091_v14, %v2747_v53  ;;  %v3216_v2 = vpop.f32.mrb[61].mxu1 }
 0x95f   :  { %v4529_v58 = vadd.f32 %v3216_v2, %v2742_v39 }
 0x960   :  { %v3524_v57 = vmul.f32 -1.442695, %v4528_v46 }
 0x961   :  { %v3523_v6 = vmul.f32 -1.442695, %v4529_v58  ;;  %v4094_v4 = vpop.f32.mrb[62].mxu1 }
 0x962   :  { %4633 = vpow2.f32 %v3524_v57  ;;  %v4530_v62 = vadd.f32 %v4094_v4, %v2757_v49  ;;  %v3226_v18 = vpop.f32.mrb[63].mxu1 }
 0x963   :  { %4635 = vpow2.f32 %v3523_v6  ;;  %v4531_v37 = vadd.f32 %v3226_v18, %v2752_v26 }
 0x964   :  { %v3526_v15 = vmul.f32 -1.442695, %v4530_v62 }
 0x965   :  { %v3525_v7 = vmul.f32 -1.442695, %v4531_v37 }
 0x966   :  { %4637 = vpow2.f32 %v3526_v15 }
 0x967   :  { %4639 = vpow2.f32 %v3525_v7 }
 0x96c   :  { %v4634_v51 = vpop.eup %4633 }
 0x96d   :  { %v4636_v25 = vpop.eup %4635  ;;  %v3252_v17 = vadd.f32 1.0, %v4634_v51 }
 0x96e   :  { %v3251_v5 = vadd.f32 1.0, %v4636_v25 }
 0x96f   :  { %4641 = vrcp.f32 %v3252_v17 }
 0x970   :  { %v4638_v12 = vpop.eup %4637  ;;  %4643 = vrcp.f32 %v3251_v5 }
 0x971   :  { %v4640_v41 = vpop.eup %4639  ;;  %v3254_v50 = vadd.f32 1.0, %v4638_v12 }
 0x972   :  { %v3253_v48 = vadd.f32 1.0, %v4640_v41 }
 0x973   :  { %4645 = vrcp.f32 %v3254_v50 }
 0x974   :  { %4647 = vrcp.f32 %v3253_v48 }
 0x979   :  { %v4642_v61 = vpop.eup %4641 }
 0x97a   :  { %v4644_v44 = vpop.eup %4643  ;;  %v3264_v11 = vadd.f32 1.0, %v4642_v61 }
 0x97b   :  { %v3263_v60 = vadd.f32 1.0, %v4644_v44 }
 0x97c   :  { %v3268_v24 = vmul.f32 %v3264_v11, %v6432_v63  ;;  %v3278_v63 = vlaneseq }
 0x97d   :  { %v4646_v23 = vpop.eup %4645  ;;  %v3267_v16 = vmul.f32 %v3263_v60, %v6434_v22 }
 0x97e   :  { %v4648_v20 = vpop.eup %4647  ;;  %v3266_v47 = vadd.f32 1.0, %v4646_v23  ;;  %v3279_v22 = vshrl.u32 %v3278_v63, 7 }
 0x97f   :  { %v3265_v1 = vadd.f32 1.0, %v4648_v20  ;;  %v4523_v54 = vpack.c.bf16 %v3268_v24, %v3267_v16 }
 0x980   :  { %v3270_v0 = vmul.f32 %v3266_v47, %v6438_v10  ;;  %v3280_v36 = vsub.s32 0, %v3279_v22 }
 0x981   :  { %4524 = vmatpush3.bf16.msra.mxu0 %v4523_v54  ;;  %v3269_v28 = vmul.f32 %v3265_v1, %v6440_v29 }
 0x982   :  { %4525 = vmatprep.subr.bf16.mxu0 %v4681_v9  ;;  %v3281_v3 = vrot.slane %v3276_v30, %v3280_v36 }
 0x983   :  { %v4526_v45 = vpack.c.bf16 %v3270_v0, %v3269_v28 }
 0x985   :  { %4527 = vmatpush3.bf16.msra.mxu0 %v4526_v45 }
 0x988   :  { %4104 = vmatmul.mubr.msk.f32.vlgmr.msra.gmra.mrb[84].mxu0 %vm566_vm4, %v3271_v13 }
 0xa5b   :  { %v3351_v10 = vpop.f32.mrb[84].mxu0 }
 0xa5c   :  { %v3352_v21 = vadd.f32 %v3351_v10, %v3281_v3  ;;  %v4105_v29 = vpop.f32.mrb[85].mxu0 }
 0xa5e   :  { %3356 = vst.msk [vmem:[#allocation4] sm:$0x1] %vm3355_vm9, %v3352_v21 }
 0xa5f   :  { %4660 = shalt.err (!%p4657_p4)
}
 0xa60   :  { %s4661_s5 = scalar_lea.hbm %s6570_s13, 16 }
 0xa61   :  { %p4662_p5 = scmp.ne.s32.totalorder %s6570_s13, %s4661_s5  ;;  %p4665_p6 = scmp.lt.u32.totalorder %s4661_s5, %s6570_s13 }
 0xa63   :  { %p4667_p7 = pnand %p4665_p6, %p4662_p5 }
 0xa65   :  { %4670 = shalt.err (!%p4667_p7)
}
 0xa66   :  { %3366 = dma.vmem_to_hbm [thread:$0]  %s3364_s15, 16, %s6570_s13, [#allocation5]  }
 0xa67   :  { %4671 = dma.done.wait [#allocation5], 16  }
 0xa68   :  { %4672 = vsyncadd [#allocation5], 4294967280 }
 0xa69   :  { %3370 = vsyncpa [#allocation5], 1 }

</bundles_post_ra>
